<compile_context>
chip_gen: v7x
topology: tpu7x:2x2x1
jax: 0.10.0
libtpu: 0.0.40
codegen_flags: <defaults>
</compile_context>

<pallas_src>
import functools

import jax
import jax.numpy as jnp
from jax import lax
from jax.experimental import pallas as pl
from jax.experimental.pallas import tpu as pltpu

ALPHA = 0.6          # self.alpha
NEG_SLOPE = 0.2      # GATConv default negative_slope
NEG_BIG = -1e30      # finite mask value for non-edges (exp underflows to 0)
M_INIT = -1e20       # online-softmax running-max init; >> NEG_BIG so an
                     # all-masked source chunk contributes exactly zero.


# ----------------------------------------------------------------------------
# Pallas kernel: grid = (dst tiles [parallel], source chunks [arbitrary]).
# ----------------------------------------------------------------------------
def gap_kernel(x_ref, ag_ref, asrc_ref, proj0_ref, xg_ref, m_ref, mT_ref,
               wpack_ref, bgat_ref,
               num_ref, stats_ref,
               m_sc, l_sc, acc_sc, score_sc):
    dot = functools.partial(jnp.dot, preferred_element_type=jnp.float32)
    j = pl.program_id(1)

    @pl.when(j == 0)
    def _():
        m_sc[...] = jnp.full_like(m_sc, M_INIT)
        l_sc[...] = jnp.zeros_like(l_sc)
        acc_sc[...] = jnp.zeros_like(acc_sc)
        score_sc[...] = jnp.zeros_like(score_sc)

    # dst-side rank-1 projections: col0 = (1-alpha)*w_lin, col1 = att_dst@w_gat
    proj_dst = dot(x_ref[...], wpack_ref[...])              # (T, 2)
    a_dst = proj_dst[:, 1:2]                                # (T, 1)

    ag = ag_ref[...].astype(jnp.float32)                    # (T, Nc) upcast once

    # --- blended pooling score: GCN propagation term (VPU mul + XLU reduce) --
    score_sc[...] += jnp.sum(ag * proj0_ref[...], axis=1, keepdims=True)

    # --- GAT edge softmax over source chunks (online / flash style) ----------
    raw = a_dst + asrc_ref[...]                             # (T,1)+(1,Nc)->(T,Nc)
    lrelu = jnp.maximum(raw, NEG_SLOPE * raw)               # leaky_relu, no select
    e = jnp.where(ag > 0.0, lrelu, NEG_BIG)                 # single select: edges
    m_new = jnp.maximum(m_sc[...], jnp.max(e, axis=1, keepdims=True))
    corr = jnp.exp(m_sc[...] - m_new)                       # (T, 1)
    p = jnp.exp(e - m_new)                                  # non-edges underflow -> 0
    l_sc[...] = corr * l_sc[...] + jnp.sum(p, axis=1, keepdims=True)
    acc_sc[...] = corr * acc_sc[...] + dot(p.astype(xg_ref.dtype), xg_ref[...])
    m_sc[...] = m_new

    # --- finalize this destination tile on the last source chunk -------------
    @pl.when(j == pl.num_programs(1) - 1)
    def _():
        fused = acc_sc[...] * pl.reciprocal(l_sc[...], approx=True) + bgat_ref[...]
        score = score_sc[...] + proj_dst[:, 0:1]            # (T, 1)
        mm = m_ref[...]                                     # (T, B) one-hot batch
        masked = jnp.where(mm > 0.0, score, NEG_BIG)        # (T, B)
        tmax = jnp.max(masked, axis=0, keepdims=True)       # (1, B) tile-local max
        node_max = jnp.sum(mm * tmax, axis=1, keepdims=True)  # (T, 1)
        ex = jnp.exp(score - node_max)                      # (T, 1), exponent <= 0
        den = jnp.sum(mm * ex, axis=0, keepdims=True)       # (1, B)
        num = dot(mT_ref[0], fused * ex)                    # (B, C)
        num_ref[0] = num
        stats_ref[0] = jnp.concatenate([tmax, den], axis=0)  # (2, B)


# ----------------------------------------------------------------------------
# Plain-JAX glue.
# ----------------------------------------------------------------------------
def build_aux(edge_index, batch, num_nodes, num_graphs):
    src, dst = edge_index[0], edge_index[1]
    loop = jnp.arange(num_nodes)
    s = jnp.concatenate([src, loop])                        # add self-loops
    t = jnp.concatenate([dst, loop])
    adjT = jnp.zeros((num_nodes, num_nodes), jnp.float32).at[t, s].set(1.0)
    deg = jnp.sum(adjT, axis=1)                             # in-degree (incl. loop)
    dinv = jnp.where(deg > 0, lax.rsqrt(deg), 0.0)
    a_gcn = adjT * dinv[:, None] * dinv[None, :]            # D^-1/2 (A+I) D^-1/2
    m = (batch[:, None] == jnp.arange(num_graphs)[None, :]).astype(jnp.float32)
    return a_gcn, m


def _finalize(num_t, stats_t):
    # Exact combination of per-tile partials (tiny: num_tiles x B x C).
    tmax_t = stats_t[:, 0, :]                               # (nt, B)
    den_t = stats_t[:, 1, :]                                # (nt, B)
    gmax = jnp.max(tmax_t, axis=0)                          # (B,)
    w = jnp.exp(tmax_t - gmax)                              # (nt, B)
    den = jnp.sum(den_t * w, axis=0)                        # (B,)
    num = jnp.sum(num_t * w[:, :, None], axis=0)            # (B, C)
    return num / den[:, None]


def global_attention_pool(x, edge_index, batch, num_graphs, params,
                          tile_dst=128, src_chunk=128):
    n, c = x.shape
    b = num_graphs
    tile_dst = min(tile_dst, n)
    src_chunk = min(src_chunk, n)
    assert n % tile_dst == 0 and n % src_chunk == 0, \
        "pad node count to a multiple of the tile sizes"
    assert src_chunk == n or src_chunk % 128 == 0, \
        "src_chunk must be a multiple of 128 (lane dim) or the full node count"
    nt, nk = n // tile_dst, n // src_chunk

    w_gcn, b_gcn, w_lin, b_lin, w_gat, att_src, att_dst, b_gat = params
    del b_gcn, b_lin                                        # cancel in segment softmax
    a_gcn, m = build_aux(edge_index, batch, n, b)

    # Grid-invariant projections hoisted to plain XLA (computed once, f32).
    xg = (x @ w_gat.T).astype(jnp.float32)                  # (N, C) GAT transform
    asrc_row = (xg @ att_src.T).T                           # (1, N) per-source attn
    proj0_row = (ALPHA * (x @ w_gcn.T)).T                   # (1, N) alpha * GCN proj
    # dst-side packed rank-1 weights: col0=(1-alpha)*w_lin, col1=att_dst@w_gat
    w_pack = jnp.stack([(1.0 - ALPHA) * w_lin[0],
                        (att_dst @ w_gat)[0]], axis=1).astype(jnp.float32)
    mT3 = m.T.reshape(b, nt, tile_dst).transpose(1, 0, 2)   # (nt, B, T)

    # Big streams in bf16 (f32 accumulation; ag > 0 edge mask stays exact).
    a_gcn_lo = a_gcn.astype(jnp.bfloat16)
    xg_lo = xg.astype(jnp.bfloat16)

    flops = (2 * n * n * c          # p @ xg
             + 2 * n * n            # GCN propagation (VPU mul-reduce)
             + 2 * b * n * c        # pooled numerator
             + 4 * n * c * nk       # per-chunk dst-side projection
             + 6 * n * n)           # mask / leaky-relu / online-softmax elementwise
    cost = pl.CostEstimate(
        flops=int(flops),
        transcendentals=int(n * n + 2 * n * nk + 2 * n),
        bytes_accessed=int(2 * n * n + 2 * n * c * nt + 4 * n * c
                           + 8 * n * nt + 4 * (n * b + nt * b * (c + 2))))

    blk_bytes = (tile_dst * c * 4 + tile_dst * src_chunk * 2 + 2 * src_chunk * 4
                 + src_chunk * c * 2 + tile_dst * b * 4 + b * tile_dst * 4
                 + c * 2 * 4 + c * 4 + b * c * 4 + 2 * b * 4)
    scratch_bytes = tile_dst * (c + 3) * 4
    vmem_limit = int(min(max(16 * blk_bytes + 2 * scratch_bytes, 32 * 2**20),
                         64 * 2**20))                       # v7x-safe cap

    num_t, stats_t = pl.pallas_call(
        gap_kernel,
        grid=(nt, nk),
        in_specs=[
            pl.BlockSpec((tile_dst, c), lambda i, j: (i, 0)),         # x dst rows
            pl.BlockSpec((tile_dst, src_chunk), lambda i, j: (i, j)), # a_gcn tile
            pl.BlockSpec((1, src_chunk), lambda i, j: (0, j)),        # a_src row
            pl.BlockSpec((1, src_chunk), lambda i, j: (0, j)),        # alpha*gcn row
            pl.BlockSpec((src_chunk, c), lambda i, j: (j, 0)),        # xg chunk
            pl.BlockSpec((tile_dst, b), lambda i, j: (i, 0)),         # m rows
            pl.BlockSpec((1, b, tile_dst), lambda i, j: (i, 0, 0)),   # mT tile
            pl.BlockSpec((c, 2), lambda i, j: (0, 0)),                # packed dst W
            pl.BlockSpec((1, c), lambda i, j: (0, 0)),                # gat bias
        ],
        out_specs=(
            pl.BlockSpec((1, b, c), lambda i, j: (i, 0, 0)),          # num partial
            pl.BlockSpec((1, 2, b), lambda i, j: (i, 0, 0)),          # [tmax; den]
        ),
        out_shape=(
            jax.ShapeDtypeStruct((nt, b, c), jnp.float32),
            jax.ShapeDtypeStruct((nt, 2, b), jnp.float32),
        ),
        scratch_shapes=[
            pltpu.VMEM((tile_dst, 1), jnp.float32),   # running max
            pltpu.VMEM((tile_dst, 1), jnp.float32),   # running denom
            pltpu.VMEM((tile_dst, c), jnp.float32),   # running numerator
            pltpu.VMEM((tile_dst, 1), jnp.float32),   # pooling score accumulator
        ],
        compiler_params=pltpu.CompilerParams(
            dimension_semantics=("parallel", "arbitrary"),
            vmem_limit_bytes=vmem_limit),
        cost_estimate=cost,
    )(x.astype(jnp.float32), a_gcn_lo, asrc_row, proj0_row, xg_lo,
      m, mT3, w_pack, b_gat.astype(jnp.float32))

    return _finalize(num_t, stats_t)


# ----------------------------------------------------------------------------
# Pure-JAX reference (scatter/segment formulation, mirrors PyG semantics).
# ----------------------------------------------------------------------------
def reference(x, edge_index, batch, num_graphs, params):
    w_gcn, b_gcn, w_lin, b_lin, w_gat, att_src, att_dst, b_gat = params
    n = x.shape[0]
    src, dst = edge_index[0], edge_index[1]
    loop = jnp.arange(n)
    s = jnp.concatenate([src, loop])
    t = jnp.concatenate([dst, loop])
    # GCNConv(in, 1)
    xl = x @ w_gcn.T
    deg = jax.ops.segment_sum(jnp.ones_like(t, dtype=jnp.float32), t, n)
    dinv = jnp.where(deg > 0, 1.0 / jnp.sqrt(deg), 0.0)
    norm = dinv[s] * dinv[t]
    score_s = jax.ops.segment_sum(norm[:, None] * xl[s], t, n) + b_gcn
    # Linear(in, 1)
    score_f = x @ w_lin.T + b_lin
    score = ALPHA * score_s + (1.0 - ALPHA) * score_f
    # GATConv(in, in, heads=1)
    xg = x @ w_gat.T
    a_s = jnp.sum(xg * att_src, axis=-1)
    a_d = jnp.sum(xg * att_dst, axis=-1)
    e = a_s[s] + a_d[t]
    e = jnp.where(e > 0, e, NEG_SLOPE * e)
    emax = jax.ops.segment_max(e, t, n)
    pe = jnp.exp(e - emax[t])
    psum = jax.ops.segment_sum(pe, t, n)
    alpha = pe / psum[t]
    fused = jax.ops.segment_sum(alpha[:, None] * xg[s], t, n) + b_gat
    # segment softmax over batch + global_add_pool
    smax = jax.ops.segment_max(score[:, 0], batch, num_graphs)
    ex = jnp.exp(score[:, 0] - smax[batch])
    ssum = jax.ops.segment_sum(ex, batch, num_graphs)
    scores = (ex / ssum[batch])[:, None]
    return jax.ops.segment_sum(fused * scores, batch, num_graphs)


# ----------------------------------------------------------------------------
if __name__ == "__main__":
    C, B = 32, 2
    sizes = [100, 156]              # 2 graphs, 256 nodes total (multiple of 128)
    N = sum(sizes)                  # exercises nt=2 dst tiles and nk=2 src chunks

    # deterministic synthetic graph: a bidirectional ring per graph
    src_list, dst_list = [], []
    off = 0
    for ng in sizes:
        for i in range(ng):
            a, bb = off + i, off + (i + 1) % ng
            src_list += [a, bb]
            dst_list += [bb, a]
        off += ng
    edge_index = jnp.array([src_list, dst_list], dtype=jnp.int32)
    batch = jnp.concatenate(
        [jnp.full((sz,), g, jnp.int32) for g, sz in enumerate(sizes)])

    # deterministic parameters (shapes from the module's __init__)
    key = jax.random.PRNGKey(0)
    ks = jax.random.split(key, 9)
    w_gcn = 0.3 * jax.random.normal(ks[0], (1, C), jnp.float32)   # GCNConv lin
    b_gcn = jnp.full((1,), 0.1, jnp.float32)                      # GCNConv bias
    w_lin = 0.3 * jax.random.normal(ks[1], (1, C), jnp.float32)   # Linear(in,1)
    b_lin = jnp.full((1,), -0.05, jnp.float32)
    w_gat = 0.2 * jax.random.normal(ks[2], (C, C), jnp.float32)   # GATConv lin
    att_src = 0.2 * jax.random.normal(ks[3], (1, C), jnp.float32)
    att_dst = 0.2 * jax.random.normal(ks[4], (1, C), jnp.float32)
    b_gat = 0.1 * jax.random.normal(ks[5], (1, C), jnp.float32)   # GATConv bias
    params = (w_gcn, b_gcn, w_lin, b_lin, w_gat, att_src, att_dst, b_gat)

    x = jax.random.normal(ks[6], (N, C), jnp.float32)

    gx = global_attention_pool(x, edge_index, batch, B, params,
                               tile_dst=128, src_chunk=128)
    gx = jax.block_until_ready(gx)

    gx_ref = jax.block_until_ready(reference(x, edge_index, batch, B, params))
    assert gx.shape == (B, C)
    # Tolerance covers bf16 streaming of a_gcn/xg (f32 MXU accumulation) and
    # the approx reciprocal in the attention normalization.
    err = jnp.max(jnp.abs(gx - gx_ref))
    assert jnp.allclose(gx, gx_ref, rtol=2e-2, atol=2e-2), f"max abs err {err}"

    print("KERNEL_OK")
</pallas_src>

<mosaic_0001>
module attributes {stable_mosaic.version = 11 : i64} {
  func.func @gap_kernel(%arg0: i32, %arg1: i32, %arg2: memref<128x32xf32, #tpu.memory_space<vmem>>, %arg3: memref<128x128xbf16, #tpu.memory_space<vmem>>, %arg4: memref<1x128xf32, #tpu.memory_space<vmem>>, %arg5: memref<1x128xf32, #tpu.memory_space<vmem>>, %arg6: memref<128x32xbf16, #tpu.memory_space<vmem>>, %arg7: memref<128x2xf32, #tpu.memory_space<vmem>>, %arg8: memref<1x2x128xf32, #tpu.memory_space<vmem>>, %arg9: memref<32x2xf32, #tpu.memory_space<vmem>>, %arg10: memref<1x32xf32, #tpu.memory_space<vmem>>, %arg11: memref<1x2x32xf32, #tpu.memory_space<vmem>>, %arg12: memref<1x2x2xf32, #tpu.memory_space<vmem>>, %arg13: memref<128x1xf32, #tpu.memory_space<vmem>>, %arg14: memref<128x1xf32, #tpu.memory_space<vmem>>, %arg15: memref<128x32xf32, #tpu.memory_space<vmem>>, %arg16: memref<128x1xf32, #tpu.memory_space<vmem>>) attributes {dimension_semantics = [#tpu.dimension_semantics<parallel>, #tpu.dimension_semantics<arbitrary>], iteration_bounds = array<i64: 2, 2>, scalar_prefetch = 0 : i64, scratch_operands = 4 : i64, tpu.core_type = #tpu.core_type<tc>, window_params = [{transform_indices = @transform_0, window_bounds = array<i64: 128, 32>}, {transform_indices = @transform_1, window_bounds = array<i64: 128, 128>}, {transform_indices = @transform_2, window_bounds = array<i64: 1, 128>}, {transform_indices = @transform_3, window_bounds = array<i64: 1, 128>}, {transform_indices = @transform_4, window_bounds = array<i64: 128, 32>}, {transform_indices = @transform_5, window_bounds = array<i64: 128, 2>}, {transform_indices = @transform_6, window_bounds = array<i64: 1, 2, 128>}, {pipeline_mode = #tpu.pipeline_mode<synchronous>, transform_indices = @transform_7, window_bounds = array<i64: 32, 2>}, {pipeline_mode = #tpu.pipeline_mode<synchronous>, transform_indices = @transform_8, window_bounds = array<i64: 1, 32>}, {transform_indices = @transform_9, window_bounds = array<i64: 1, 2, 32>}, {transform_indices = @transform_10, window_bounds = array<i64: 1, 2, 2>}]} {
    %c0_i32 = arith.constant 0 : i32
    %0 = arith.cmpi eq, %arg1, %c0_i32 : i32
    %1 = arith.extui %0 : i1 to i32
    %c0_i32_0 = arith.constant 0 : i32
    %2 = arith.cmpi ne, %1, %c0_i32_0 : i32
    scf.if %2 {
      %cst_38 = arith.constant -1.000000e+20 : f32
      %56 = vector.broadcast %cst_38 : f32 to vector<128x1xf32>
      %c0_39 = arith.constant 0 : index
      %c0_40 = arith.constant 0 : index
      %57 = vector.load %arg13[%c0_39, %c0_40] : memref<128x1xf32, #tpu.memory_space<vmem>>, vector<128x1xf32>
      tpu.vector_store %arg13[%c0_39, %c0_40], %56 {strides = array<i32>} : memref<128x1xf32, #tpu.memory_space<vmem>>, vector<128x1xf32>,
      %cst_41 = arith.constant 0.000000e+00 : f32
      %58 = vector.broadcast %cst_41 : f32 to vector<128x1xf32>
      %c0_42 = arith.constant 0 : index
      %c0_43 = arith.constant 0 : index
      %59 = vector.load %arg14[%c0_42, %c0_43] : memref<128x1xf32, #tpu.memory_space<vmem>>, vector<128x1xf32>
      tpu.vector_store %arg14[%c0_42, %c0_43], %58 {strides = array<i32>} : memref<128x1xf32, #tpu.memory_space<vmem>>, vector<128x1xf32>,
      %cst_44 = arith.constant 0.000000e+00 : f32
      %60 = vector.broadcast %cst_44 : f32 to vector<128x32xf32>
      %c0_45 = arith.constant 0 : index
      %c0_46 = arith.constant 0 : index
      %61 = vector.load %arg15[%c0_45, %c0_46] : memref<128x32xf32, #tpu.memory_space<vmem>>, vector<128x32xf32>
      tpu.vector_store %arg15[%c0_45, %c0_46], %60 {strides = array<i32>} : memref<128x32xf32, #tpu.memory_space<vmem>>, vector<128x32xf32>,
      %cst_47 = arith.constant 0.000000e+00 : f32
      %62 = vector.broadcast %cst_47 : f32 to vector<128x1xf32>
      %c0_48 = arith.constant 0 : index
      %c0_49 = arith.constant 0 : index
      %63 = vector.load %arg16[%c0_48, %c0_49] : memref<128x1xf32, #tpu.memory_space<vmem>>, vector<128x1xf32>
      tpu.vector_store %arg16[%c0_48, %c0_49], %62 {strides = array<i32>} : memref<128x1xf32, #tpu.memory_space<vmem>>, vector<128x1xf32>,
    } else {
    }
    %c0 = arith.constant 0 : index
    %c0_1 = arith.constant 0 : index
    %3 = vector.load %arg2[%c0, %c0_1] : memref<128x32xf32, #tpu.memory_space<vmem>>, vector<128x32xf32>
    %c0_2 = arith.constant 0 : index
    %c0_3 = arith.constant 0 : index
    %4 = vector.load %arg9[%c0_2, %c0_3] : memref<32x2xf32, #tpu.memory_space<vmem>>, vector<32x2xf32>
    %cst = arith.constant dense<0.000000e+00> : vector<128x2xf32>
    %5 = tpu.matmul %3, %4, %cst {dimension_numbers = #tpu.dot_dimension_numbers<[1], [0], [0], [1], [0, 0, 1, 1], [], []>} : vector<128x32xf32>, vector<32x2xf32>, vector<128x2xf32> -> vector<128x2xf32>
    %6 = vector.extract_strided_slice %5 {offsets = [0, 1], sizes = [128, 1], strides = [1, 1]} : vector<128x2xf32> to vector<128x1xf32>
    %c0_4 = arith.constant 0 : index
    %c0_5 = arith.constant 0 : index
    %7 = vector.load %arg3[%c0_4, %c0_5] : memref<128x128xbf16, #tpu.memory_space<vmem>>, vector<128x128xbf16>
    %8 = arith.extf %7 : vector<128x128xbf16> to vector<128x128xf32>
    %c0_6 = arith.constant 0 : index
    %c0_7 = arith.constant 0 : index
    %9 = vector.load %arg16[%c0_6, %c0_7] : memref<128x1xf32, #tpu.memory_space<vmem>>, vector<128x1xf32>
    %c0_8 = arith.constant 0 : index
    %c0_9 = arith.constant 0 : index
    %10 = vector.load %arg5[%c0_8, %c0_9] : memref<1x128xf32, #tpu.memory_space<vmem>>, vector<1x128xf32>
    %11 = vector.broadcast %10 : vector<1x128xf32> to vector<128x128xf32>
    %12 = arith.mulf %8, %11 : vector<128x128xf32>
    %cst_10 = arith.constant dense<0.000000e+00> : vector<128xf32>
    %13 = vector.multi_reduction <add>, %12, %cst_10 [1] : vector<128x128xf32> to vector<128xf32>
    %14 = vector.shape_cast %13 : vector<128xf32> to vector<128x1xf32>
    %15 = arith.addf %9, %14 : vector<128x1xf32>
    %c0_11 = arith.constant 0 : index
    %c0_12 = arith.constant 0 : index
    %16 = vector.load %arg16[%c0_11, %c0_12] : memref<128x1xf32, #tpu.memory_space<vmem>>, vector<128x1xf32>
    tpu.vector_store %arg16[%c0_11, %c0_12], %15 {strides = array<i32>} : memref<128x1xf32, #tpu.memory_space<vmem>>, vector<128x1xf32>,
    %c0_13 = arith.constant 0 : index
    %c0_14 = arith.constant 0 : index
    %17 = vector.load %arg4[%c0_13, %c0_14] : memref<1x128xf32, #tpu.memory_space<vmem>>, vector<1x128xf32>
    %18 = vector.broadcast %6 : vector<128x1xf32> to vector<128x128xf32>
    %19 = vector.broadcast %17 : vector<1x128xf32> to vector<128x128xf32>
    %20 = arith.addf %18, %19 : vector<128x128xf32>
    %cst_15 = arith.constant 2.000000e-01 : f32
    %21 = vector.broadcast %cst_15 : f32 to vector<128x128xf32>
    %22 = arith.mulf %21, %20 : vector<128x128xf32>
    %23 = arith.maximumf %20, %22 : vector<128x128xf32>
    %cst_16 = arith.constant 0.000000e+00 : f32
    %24 = vector.broadcast %cst_16 : f32 to vector<128x128xf32>
    %25 = arith.cmpf ogt, %8, %24 : vector<128x128xf32>
    %cst_17 = arith.constant -1.000000e+30 : f32
    %26 = vector.broadcast %cst_17 : f32 to vector<128x128xf32>
    %27 = arith.select %25, %23, %26 : vector<128x128xi1>, vector<128x128xf32>
    %c0_18 = arith.constant 0 : index
    %c0_19 = arith.constant 0 : index
    %28 = vector.load %arg13[%c0_18, %c0_19] : memref<128x1xf32, #tpu.memory_space<vmem>>, vector<128x1xf32>
    %cst_20 = arith.constant dense<0xFF800000> : vector<128xf32>
    %29 = vector.multi_reduction <maximumf>, %27, %cst_20 [1] : vector<128x128xf32> to vector<128xf32>
    %30 = vector.shape_cast %29 : vector<128xf32> to vector<128x1xf32>
    %31 = arith.maximumf %28, %30 : vector<128x1xf32>
    %c0_21 = arith.constant 0 : index
    %c0_22 = arith.constant 0 : index
    %32 = vector.load %arg13[%c0_21, %c0_22] : memref<128x1xf32, #tpu.memory_space<vmem>>, vector<128x1xf32>
    %33 = arith.subf %32, %31 : vector<128x1xf32>
    %34 = math.exp %33 : vector<128x1xf32>
    %35 = vector.broadcast %31 : vector<128x1xf32> to vector<128x128xf32>
    %36 = arith.subf %27, %35 : vector<128x128xf32>
    %37 = math.exp %36 : vector<128x128xf32>
    %c0_23 = arith.constant 0 : index
    %c0_24 = arith.constant 0 : index
    %38 = vector.load %arg14[%c0_23, %c0_24] : memref<128x1xf32, #tpu.memory_space<vmem>>, vector<128x1xf32>
    %39 = arith.mulf %34, %38 : vector<128x1xf32>
    %cst_25 = arith.constant dense<0.000000e+00> : vector<128xf32>
    %40 = vector.multi_reduction <add>, %37, %cst_25 [1] : vector<128x128xf32> to vector<128xf32>
    %41 = vector.shape_cast %40 : vector<128xf32> to vector<128x1xf32>
    %42 = arith.addf %39, %41 : vector<128x1xf32>
    %c0_26 = arith.constant 0 : index
    %c0_27 = arith.constant 0 : index
    %43 = vector.load %arg14[%c0_26, %c0_27] : memref<128x1xf32, #tpu.memory_space<vmem>>, vector<128x1xf32>
    tpu.vector_store %arg14[%c0_26, %c0_27], %42 {strides = array<i32>} : memref<128x1xf32, #tpu.memory_space<vmem>>, vector<128x1xf32>,
    %c0_28 = arith.constant 0 : index
    %c0_29 = arith.constant 0 : index
    %44 = vector.load %arg15[%c0_28, %c0_29] : memref<128x32xf32, #tpu.memory_space<vmem>>, vector<128x32xf32>
    %45 = vector.broadcast %34 : vector<128x1xf32> to vector<128x32xf32>
    %46 = arith.mulf %45, %44 : vector<128x32xf32>
    %47 = arith.truncf %37 : vector<128x128xf32> to vector<128x128xbf16>
    %c0_30 = arith.constant 0 : index
    %c0_31 = arith.constant 0 : index
    %48 = vector.load %arg6[%c0_30, %c0_31] : memref<128x32xbf16, #tpu.memory_space<vmem>>, vector<128x32xbf16>
    %cst_32 = arith.constant dense<0.000000e+00> : vector<128x32xf32>
    %49 = tpu.matmul %47, %48, %cst_32 {dimension_numbers = #tpu.dot_dimension_numbers<[1], [0], [0], [1], [0, 0, 1, 1], [], []>} : vector<128x128xbf16>, vector<128x32xbf16>, vector<128x32xf32> -> vector<128x32xf32>
    %50 = arith.addf %46, %49 : vector<128x32xf32>
    %c0_33 = arith.constant 0 : index
    %c0_34 = arith.constant 0 : index
    %51 = vector.load %arg15[%c0_33, %c0_34] : memref<128x32xf32, #tpu.memory_space<vmem>>, vector<128x32xf32>
    tpu.vector_store %arg15[%c0_33, %c0_34], %50 {strides = array<i32>} : memref<128x32xf32, #tpu.memory_space<vmem>>, vector<128x32xf32>,
    %c0_35 = arith.constant 0 : index
    %c0_36 = arith.constant 0 : index
    %52 = vector.load %arg13[%c0_35, %c0_36] : memref<128x1xf32, #tpu.memory_space<vmem>>, vector<128x1xf32>
    tpu.vector_store %arg13[%c0_35, %c0_36], %31 {strides = array<i32>} : memref<128x1xf32, #tpu.memory_space<vmem>>, vector<128x1xf32>,
    %c1_i32 = arith.constant 1 : i32
    %53 = arith.cmpi eq, %arg1, %c1_i32 : i32
    %54 = arith.extui %53 : i1 to i32
    %c0_i32_37 = arith.constant 0 : i32
    %55 = arith.cmpi ne, %54, %c0_i32_37 : i32
    scf.if %55 {
      %c0_38 = arith.constant 0 : index
      %c0_39 = arith.constant 0 : index
      %56 = vector.load %arg15[%c0_38, %c0_39] : memref<128x32xf32, #tpu.memory_space<vmem>>, vector<128x32xf32>
      %c0_40 = arith.constant 0 : index
      %c0_41 = arith.constant 0 : index
      %57 = vector.load %arg14[%c0_40, %c0_41] : memref<128x1xf32, #tpu.memory_space<vmem>>, vector<128x1xf32>
      %58 = tpu.reciprocal %57 {approx = true} : vector<128x1xf32> -> vector<128x1xf32>
      %59 = vector.broadcast %58 : vector<128x1xf32> to vector<128x32xf32>
      %60 = arith.mulf %56, %59 : vector<128x32xf32>
      %c0_42 = arith.constant 0 : index
      %c0_43 = arith.constant 0 : index
      %61 = vector.load %arg10[%c0_42, %c0_43] : memref<1x32xf32, #tpu.memory_space<vmem>>, vector<1x32xf32>
      %62 = vector.broadcast %61 : vector<1x32xf32> to vector<128x32xf32>
      %63 = arith.addf %60, %62 : vector<128x32xf32>
      %c0_44 = arith.constant 0 : index
      %c0_45 = arith.constant 0 : index
      %64 = vector.load %arg16[%c0_44, %c0_45] : memref<128x1xf32, #tpu.memory_space<vmem>>, vector<128x1xf32>
      %65 = vector.extract_strided_slice %5 {offsets = [0, 0], sizes = [128, 1], strides = [1, 1]} : vector<128x2xf32> to vector<128x1xf32>
      %66 = arith.addf %64, %65 : vector<128x1xf32>
      %c0_46 = arith.constant 0 : index
      %c0_47 = arith.constant 0 : index
      %67 = vector.load %arg7[%c0_46, %c0_47] : memref<128x2xf32, #tpu.memory_space<vmem>>, vector<128x2xf32>
      %cst_48 = arith.constant 0.000000e+00 : f32
      %68 = vector.broadcast %cst_48 : f32 to vector<128x2xf32>
      %69 = arith.cmpf ogt, %67, %68 : vector<128x2xf32>
      %cst_49 = arith.constant -1.000000e+30 : f32
      %70 = vector.shape_cast %66 : vector<128x1xf32> to vector<128x1xf32>
      %71 = vector.broadcast %70 : vector<128x1xf32> to vector<128x2xf32>
      %72 = vector.broadcast %cst_49 : f32 to vector<128x2xf32>
      %73 = arith.select %69, %71, %72 : vector<128x2xi1>, vector<128x2xf32>
      %cst_50 = arith.constant dense<0xFF800000> : vector<2xf32>
      %74 = vector.multi_reduction <maximumf>, %73, %cst_50 [0] : vector<128x2xf32> to vector<2xf32>
      %75 = vector.shape_cast %74 : vector<2xf32> to vector<1x2xf32>
      %76 = vector.broadcast %75 : vector<1x2xf32> to vector<128x2xf32>
      %77 = arith.mulf %67, %76 : vector<128x2xf32>
      %cst_51 = arith.constant dense<0.000000e+00> : vector<128xf32>
      %78 = vector.multi_reduction <add>, %77, %cst_51 [1] : vector<128x2xf32> to vector<128xf32>
      %79 = vector.shape_cast %78 : vector<128xf32> to vector<128x1xf32>
      %80 = arith.subf %66, %79 : vector<128x1xf32>
      %81 = math.exp %80 : vector<128x1xf32>
      %82 = vector.broadcast %81 : vector<128x1xf32> to vector<128x2xf32>
      %83 = arith.mulf %67, %82 : vector<128x2xf32>
      %cst_52 = arith.constant dense<0.000000e+00> : vector<2xf32>
      %84 = vector.multi_reduction <add>, %83, %cst_52 [0] : vector<128x2xf32> to vector<2xf32>
      %85 = vector.shape_cast %84 : vector<2xf32> to vector<1x2xf32>
      %c0_53 = arith.constant 0 : index
      %c0_54 = arith.constant 0 : index
      %c0_55 = arith.constant 0 : index
      %86 = vector.load %arg8[%c0_53, %c0_54, %c0_55] : memref<1x2x128xf32, #tpu.memory_space<vmem>>, vector<1x2x128xf32>
      %87 = vector.shape_cast %86 : vector<1x2x128xf32> to vector<2x128xf32>
      %88 = vector.broadcast %81 : vector<128x1xf32> to vector<128x32xf32>
      %89 = arith.mulf %63, %88 : vector<128x32xf32>
      %cst_56 = arith.constant dense<0.000000e+00> : vector<2x32xf32>
      %90 = tpu.matmul %87, %89, %cst_56 {dimension_numbers = #tpu.dot_dimension_numbers<[1], [0], [0], [1], [0, 0, 1, 1], [], []>} : vector<2x128xf32>, vector<128x32xf32>, vector<2x32xf32> -> vector<2x32xf32>
      %c0_57 = arith.constant 0 : index
      %c0_58 = arith.constant 0 : index
      %c0_59 = arith.constant 0 : index
      %91 = vector.load %arg11[%c0_57, %c0_58, %c0_59] : memref<1x2x32xf32, #tpu.memory_space<vmem>>, vector<1x2x32xf32>
      %92 = vector.shape_cast %91 : vector<1x2x32xf32> to vector<2x32xf32>
      %93 = vector.shape_cast %90 : vector<2x32xf32> to vector<1x2x32xf32>
      tpu.vector_store %arg11[%c0_57, %c0_58, %c0_59], %93 {strides = array<i32>} : memref<1x2x32xf32, #tpu.memory_space<vmem>>, vector<1x2x32xf32>,
      %94 = tpu.concatenate %75, %85 in 0 : vector<1x2xf32>, vector<1x2xf32> -> vector<2x2xf32>
      %c0_60 = arith.constant 0 : index
      %c0_61 = arith.constant 0 : index
      %c0_62 = arith.constant 0 : index
      %95 = vector.load %arg12[%c0_60, %c0_61, %c0_62] : memref<1x2x2xf32, #tpu.memory_space<vmem>>, vector<1x2x2xf32>
      %96 = vector.shape_cast %95 : vector<1x2x2xf32> to vector<2x2xf32>
      %97 = vector.shape_cast %94 : vector<2x2xf32> to vector<1x2x2xf32>
      tpu.vector_store %arg12[%c0_60, %c0_61, %c0_62], %97 {strides = array<i32>} : memref<1x2x2xf32, #tpu.memory_space<vmem>>, vector<1x2x2xf32>,
    } else {
    }
    return
  }
  func.func @transform_0(%arg0: i32, %arg1: i32) -> (i32, i32) {
    %c0_i32 = arith.constant 0 : i32
    %c0_i32_0 = arith.constant 0 : i32
    return %arg0, %c0_i32 : i32, i32
  }
  func.func @transform_1(%arg0: i32, %arg1: i32) -> (i32, i32) {
    %c0_i32 = arith.constant 0 : i32
    return %arg0, %arg1 : i32, i32
  }
  func.func @transform_2(%arg0: i32, %arg1: i32) -> (i32, i32) {
    %c0_i32 = arith.constant 0 : i32
    %c0_i32_0 = arith.constant 0 : i32
    return %c0_i32, %arg1 : i32, i32
  }
  func.func @transform_3(%arg0: i32, %arg1: i32) -> (i32, i32) {
    %c0_i32 = arith.constant 0 : i32
    %c0_i32_0 = arith.constant 0 : i32
    return %c0_i32, %arg1 : i32, i32
  }
  func.func @transform_4(%arg0: i32, %arg1: i32) -> (i32, i32) {
    %c0_i32 = arith.constant 0 : i32
    %c0_i32_0 = arith.constant 0 : i32
    return %arg1, %c0_i32 : i32, i32
  }
  func.func @transform_5(%arg0: i32, %arg1: i32) -> (i32, i32) {
    %c0_i32 = arith.constant 0 : i32
    %c0_i32_0 = arith.constant 0 : i32
    return %arg0, %c0_i32 : i32, i32
  }
  func.func @transform_6(%arg0: i32, %arg1: i32) -> (i32, i32, i32) {
    %c0_i32 = arith.constant 0 : i32
    %c0_i32_0 = arith.constant 0 : i32
    %c0_i32_1 = arith.constant 0 : i32
    return %arg0, %c0_i32, %c0_i32_0 : i32, i32, i32
  }
  func.func @transform_7(%arg0: i32, %arg1: i32) -> (i32, i32) {
    %c0_i32 = arith.constant 0 : i32
    %c0_i32_0 = arith.constant 0 : i32
    %c0_i32_1 = arith.constant 0 : i32
    return %c0_i32, %c0_i32_0 : i32, i32
  }
  func.func @transform_8(%arg0: i32, %arg1: i32) -> (i32, i32) {
    %c0_i32 = arith.constant 0 : i32
    %c0_i32_0 = arith.constant 0 : i32
    %c0_i32_1 = arith.constant 0 : i32
    return %c0_i32, %c0_i32_0 : i32, i32
  }
  func.func @transform_9(%arg0: i32, %arg1: i32) -> (i32, i32, i32) {
    %c0_i32 = arith.constant 0 : i32
    %c0_i32_0 = arith.constant 0 : i32
    %c0_i32_1 = arith.constant 0 : i32
    return %arg0, %c0_i32, %c0_i32_0 : i32, i32, i32
  }
  func.func @transform_10(%arg0: i32, %arg1: i32) -> (i32, i32, i32) {
    %c0_i32 = arith.constant 0 : i32
    %c0_i32_0 = arith.constant 0 : i32
    %c0_i32_1 = arith.constant 0 : i32
    return %arg0, %c0_i32, %c0_i32_0 : i32, i32, i32
  }
}

</mosaic_0001>

<bundles_post_ra>
// kernel: tpu_custom_call.1
= control target key start
LH: loop header
LB: loop body
LE: loop exit
PB: predicated region body
PF: predicated region fallthrough
CT: control target
= control target key end

     0   :  { %s4833_s0 = inlined_call_operand.vmem [shape: f32[256,32], index: 0, kind: input, shape index: {}]   ;;  %s4834_s1 = inlined_call_operand.vmem [shape: bf16[256,256], index: 1, kind: input, shape index: {}]   ;;  %s4835_s2 = inlined_call_operand.vmem [shape: f32[1,256], index: 2, kind: input, shape index: {}]   ;;  %s4836_s3 = inlined_call_operand.vmem [shape: f32[1,256], index: 3, kind: input, shape index: {}]   ;;  %s4837_s4 = inlined_call_operand.vmem [shape: bf16[256,32], index: 4, kind: input, shape index: {}]   ;;  %s4838_s5 = inlined_call_operand.vmem [shape: f32[256,2], index: 5, kind: input, shape index: {}]   ;;  %s4839_s6 = inlined_call_operand.vmem [shape: f32[2,2,128], index: 6, kind: input, shape index: {}]   ;;  %s4840_s7 = inlined_call_operand.vmem [shape: f32[32,2], index: 7, kind: input, shape index: {}]   ;;  %s4841_s8 = inlined_call_operand.vmem [shape: f32[1,32], index: 8, kind: input, shape index: {}]   ;;  %s4842_s9 = inlined_call_operand.hbm [shape: f32[2,2,32], index: 9, kind: output, shape index: {0}]   ;;  %s4843_s10 = inlined_call_operand.hbm [shape: f32[2,2,2], index: 10, kind: output, shape index: {1}]  }
   0x1   :  { %4896 = sst [smem:[#allocation47_spill]] %s4833_s0 }
   0x2   :  { %4897 = sst [smem:[#allocation48_spill]] %s4834_s1 }
   0x3   :  { %4898 = sst [smem:[#allocation49_spill]] %s4842_s9 }
   0x4   :  { %4899 = sst [smem:[#allocation50_spill]] %s4843_s10 }
   0x5   :  { %16 = vsyncpa [#allocation8], 0 }
   0x6   :  { %18 = vsyncpa [#allocation8 + $0x1], 0 }
   0x7   :  { %19 = vsyncpa [#allocation10], 0 }
   0x8   :  { %21 = vsyncpa [#allocation10 + $0x1], 0  ;;  %s3512_s13 = smov 0   ;;  %s3514_s14 = smov 0  }
   0x9   :  { %s3516_s15 = smov 0   ;;  %s3518_s16 = smov 0  }
   0xa   :  { %s3520_s17 = smov 0   ;;  %s3522_s18 = smov 0  }
   0xb   :  { %s3524_s19 = smov 0   ;;  %s3526_s20 = smov 0  }
   0xc   :  { %s3528_s21 = smov 0   ;;  %s3530_s22 = smov 0  }
   0xd LB: > { %4900 = sst [smem:[#allocation13_spill]] %s3409_s13  ;;  %s2767_s23 = sadd.s32 4294967295, %s3445_s22   ;;  %s3445_s22 = sphi %s3530_s22, %s27_s22   ;;  %s3441_s21 = sphi %s3528_s21, %s5056_s21   ;;  %s3437_s20 = sphi %s3526_s20, %s5055_s20   ;;  %s3433_s19 = sphi %s3524_s19, %s5054_s19   ;;  %s3429_s18 = sphi %s3522_s18, %s5053_s18   ;;  %s3425_s17 = sphi %s3520_s17, %s5052_s17   ;;  %s3421_s16 = sphi %s3518_s16, %s5051_s16   ;;  %s3417_s15 = sphi %s3516_s15, %s5050_s15   ;;  %s3413_s14 = sphi %s3514_s14, %s5049_s14   ;;  %s3409_s13 = sphi %s3512_s13, %s5048_s13  }
   0xe   : > { %4901 = sst [smem:[#allocation14_spill]] %s3413_s14  ;;  %s2768_s24 = sadd.s32 4294967294, %s3445_s22  }
   0xf   : > { %4902 = sst [smem:[#allocation15_spill]] %s3417_s15  ;;  %s36_s25 = sadd.s32 1, %s3437_s20 }
  0x10   : > { %4903 = sst [smem:[#allocation16_spill]] %s3425_s17  ;;  %s39_s26 = sadd.s32 1, %s3441_s21 }
  0x11   : > { %4904 = sst [smem:[#allocation17_spill]] %s3437_s20  ;;  %p37_p0 = scmp.ge.s32.totalorder %s36_s25, 2 }
  0x12   : > { %4905 = sst [smem:[#allocation18_spill]] %s3441_s21  ;;  %s74_s27 = sadd.s32 1, %s3425_s17 }
  0x13   : > { %4906 = sst [smem:[#allocation19_spill]] %s3445_s22  ;;  %p81_p1 = scmp.ne.s32.totalorder %s3425_s17, %s3421_s16 }
  0x14   : > { %p82_p2 = scmp.eq.s32.totalorder %s3445_s22, 0  ;;  %s5058_s25 = smov (%p37_p0, %s36_s25), 0 }
  0x15   : > { %4907 = sst [smem:[#allocation20_spill]] %s5058_s25  ;;  %s5060_s26 = smov (!%p37_p0, %s39_s26), %s3441_s21 }
  0x16   : > { %s70_s28 = ssub.s32 %s3437_s20, %s5058_s25  ;;  %p3575_p3 = por %p82_p2, %p81_p1 }
  0x17   : > { %p41_p4 = scmp.ge.s32.totalorder %s5060_s26, 2  ;;  %s272_s30 = sadd.s32 1, %s3417_s15 }
  0x18   : > { %p282_p5 = scmp.ne.s32.totalorder %s3417_s15, %s3413_s14  ;;  %p283_p6 = scmp.eq.s32.totalorder %s2767_s23, 3 }
  0x19   : > { %s5062_s26 = smov (%p41_p4, %s5060_s26), 0  ;;  %p288_p8 = scmp.ne.s32.totalorder %s3413_s14, %s3409_s13 }
  0x1a   : > { %4909 = sst [smem:[#allocation21_spill]] %s5062_s26  ;;  %p3584_p7 = por %p283_p6, %p282_p5 }
  0x1b   : > { %s69_s12 = ssub.s32 %s3441_s21, %s5062_s26  ;;  %p289_p9 = scmp.eq.s32.totalorder %s2768_s24, 3 }
  0x1c   : > { %s4910_s11 = scalar_select %p3584_p7, 1, 0 }
  0x1d   : > { %s71_s25 = sor.u32 %s70_s28, %s69_s12  ;;  %p270_p10 = scmp.eq.s32.totalorder %s69_s12, 0 }
  0x1e   : > { %4911 = sst [smem:[#allocation22_spill]] %s4910_s11  ;;  %p72_p11 = scmp.eq.s32.totalorder %s71_s25, 0 }
  0x1f   : > { %p3592_p12 = por %p289_p9, %p288_p8  ;;  %p2770_p13 = scmp.ge.s32.totalorder %s3445_s22, 4 }
  0x20   : > { %s3597_s9 = scalar_select %p270_p10, %s3417_s15, %s272_s30  }
  0x21   : > { %s4912_s10 = scalar_select %p3592_p12, 1, 0 }
  0x22   : > { %4914 = sst [smem:[#allocation24_spill]] %s3597_s9  ;;  %337 = sbr.rel (%p2770_p13) target bundleno = 61 (0x3d), region = 24 }
  0x23   : > { %4913 = sst [smem:[#allocation23_spill]] %s4912_s10 }
  0x24   : > { %s3600_s23 = scalar_select %p72_p11, %s3425_s17, %s74_s27  }
  0x26   : > { %4915 = sst [smem:[#allocation25_spill]] %s3600_s23 }
  0x29   : > { %349 = sbr.rel (!%p3575_p3) target bundleno = 61 (0x3d), region = 32  ;;  %s351_s24 = sand.u32 (%p3575_p3), 1, %s3425_s17  }
  0x2a   : > { %s2821_s28 = sshll.u32 (%p3575_p3), %s3441_s21, 5  ;;  %s2771_s25 = sshll.u32 (%p3575_p3), %s351_s24, 6 }
  0x2b   : > { %s356_s12 = sadd.s32 (%p3575_p3), %s3437_s20, %s2821_s28  ;;  %s4916_s1 = sld [smem:[#allocation48_spill]] (%p3575_p3) }
  0x2c   : > { %s2774_s26 = sshll.u32 (%p3575_p3), %s356_s12, 2  ;;  %s353_s27 = scalar_lea.vmem (%p3575_p3), [#allocation6], %s2771_s25 }
  0x31   : > { %s3611_s30 = scalar_lea.vmem %s4916_s1, %s2774_s26 }
  0x32   : > { %v374_v0 = vld [vmem:[%s3611_s30] sm:$0xf]  ;;  %v376_v1 = vld [vmem:[%s3611_s30 + $0x8] sm:$0xf]  ;;  %v378_v2 = vld [vmem:[%s3611_s30 + $0x10] sm:$0xf] }
  0x33   : > { %375 = vst [vmem:[%s353_s27] sm:$0xf] %v374_v0  ;;  %377 = vst [vmem:[%s353_s27 + $0x4] sm:$0xf] %v376_v1  ;;  %v380_v3 = vld [vmem:[%s3611_s30 + $0x18] sm:$0xf] }
  0x34   : > { %379 = vst [vmem:[%s353_s27 + $0x8] sm:$0xf] %v378_v2  ;;  %v382_v4 = vld [vmem:[%s3611_s30 + $0x20] sm:$0xf]  ;;  %v384_v5 = vld [vmem:[%s3611_s30 + $0x28] sm:$0xf] }
  0x35   : > { %381 = vst [vmem:[%s353_s27 + $0xc] sm:$0xf] %v380_v3  ;;  %383 = vst [vmem:[%s353_s27 + $0x10] sm:$0xf] %v382_v4  ;;  %v386_v6 = vld [vmem:[%s3611_s30 + $0x30] sm:$0xf] }
  0x36   : > { %385 = vst [vmem:[%s353_s27 + $0x14] sm:$0xf] %v384_v5  ;;  %v388_v7 = vld [vmem:[%s3611_s30 + $0x38] sm:$0xf]  ;;  %v390_v8 = vld [vmem:[%s3611_s30 + $0x40] sm:$0xf] }
  0x37   : > { %387 = vst [vmem:[%s353_s27 + $0x18] sm:$0xf] %v386_v6  ;;  %389 = vst [vmem:[%s353_s27 + $0x1c] sm:$0xf] %v388_v7  ;;  %v392_v9 = vld [vmem:[%s3611_s30 + $0x48] sm:$0xf] }
  0x38   : > { %391 = vst [vmem:[%s353_s27 + $0x20] sm:$0xf] %v390_v8  ;;  %v394_v10 = vld [vmem:[%s3611_s30 + $0x50] sm:$0xf]  ;;  %v396_v11 = vld [vmem:[%s3611_s30 + $0x58] sm:$0xf] }
  0x39   : > { %393 = vst [vmem:[%s353_s27 + $0x24] sm:$0xf] %v392_v9  ;;  %395 = vst [vmem:[%s353_s27 + $0x28] sm:$0xf] %v394_v10  ;;  %v398_v12 = vld [vmem:[%s3611_s30 + $0x60] sm:$0xf] }
  0x3a   : > { %397 = vst [vmem:[%s353_s27 + $0x2c] sm:$0xf] %v396_v11  ;;  %v400_v13 = vld [vmem:[%s3611_s30 + $0x68] sm:$0xf]  ;;  %v402_v14 = vld [vmem:[%s3611_s30 + $0x70] sm:$0xf] }
  0x3b   : > { %399 = vst [vmem:[%s353_s27 + $0x30] sm:$0xf] %v398_v12  ;;  %401 = vst [vmem:[%s353_s27 + $0x34] sm:$0xf] %v400_v13  ;;  %v404_v15 = vld [vmem:[%s3611_s30 + $0x78] sm:$0xf] }
  0x3c   : > { %403 = vst [vmem:[%s353_s27 + $0x38] sm:$0xf] %v402_v14  ;;  %405 = vst [vmem:[%s353_s27 + $0x3c] sm:$0xf] %v404_v15 }
  0x3d PF: > { %p2775_p0 = scmp.ge.s32.totalorder %s3445_s22, 1  ;;  %p496_p1 = scmp.lt.s32.totalorder %s3445_s22, 5 }
  0x3f   : > { %p497_p2 = pnand %p2775_p0, %p496_p1 }
  0x41   : > { %500 = sbr.rel (%p497_p2) target bundleno = 1764 (0x6e4), region = 93 }
  0x48   : > { %s503_s10 = sand.u32 1, %s3421_s16   ;;  %s3633_s13 = sand.u32 1, %s3413_s14  }
  0x49   : > { %s2776_s26 = sshll.u32 %s503_s10, 6  ;;  %s2777_s29 = sshll.u32 %s3633_s13, 1 }
  0x4a   : > { %s2779_s24 = sshll.u32 %s3433_s19, 4  ;;  %p577_p4 = scmp.lt.s32.totalorder %s3429_s18, 1 }
  0x4b   : > { %p571_p3 = scmp.lt.s32.totalorder %s2779_s24, 31  ;;  %s2781_s28 = sshll.u32 %s3429_s18, 4 }
  0x4c   : > { %p595_p5 = scmp.lt.s32.totalorder %s3433_s19, 1  ;;  %p584_p6 = scmp.lt.s32.totalorder %s2781_s28, 31 }
  0x4d   : > { %s5064_s24 = smov (!%p571_p3, %s2779_s24), 31  ;;  %s4917_s0 = sld [smem:[#allocation47_spill]] }
  0x4e   : > { %s3641_s25 = scalar_select %p577_p4, %s3429_s18, 1 }
  0x4f   : > { %s2780_s12 = sshll.u32 %s5064_s24, 3  ;;  %s5066_s28 = smov (!%p584_p6, %s2781_s28), 31 }
  0x50   : > { %s582_s17 = scalar_lea.vmem %s4836_s3, %s3641_s25  ;;  %s3659_s14 = scalar_lea.vmem %s4838_s5, %s2780_s12 }
  0x51   : > { %s596_s24 = scalar_select %p595_p5, %s3433_s19, 1 }
  0x52   : > { %s2782_s22 = sshll.u32 %s5066_s28, 2  ;;  %s3672_s20 = scalar_lea.vmem [#allocation6], %s2776_s26 }
  0x53   : > { %s3646_s27 = scalar_lea.vmem %s4917_s0, %s2780_s12  ;;  %s3665_s16 = scalar_lea.vmem %s4837_s4, %s2782_s22 }
  0x54   : > { %s2785_s0 = sshll.u32 %s596_s24, 1  ;;  %s3674_s23 = scalar_lea.vmem [#allocation7], %s2777_s29 }
  0x55   : > { %s3670_s21 = scalar_lea.vmem %s4839_s6, %s2785_s0  ;;  %s3676_s9 = scalar_lea.vmem [#allocation9], %s2777_s29 }
  0x56   : > { %p2786_p8 = scmp.ne.s32.totalorder %s3429_s18, 0 }
  0x57   : > { %vm604_vm0 = vcmask (!%p2786_p8), 7168   ;;  %vm637_vm1 = vcmask (!%p2786_p8), 261120   ;;  %v3447_v16 = vmov (!%p2786_p8), -1e+20   ;;  %v3448_v17 = vmov (!%p2786_p8), 0.0  }
  0x58   : > { %603 = sbr.rel (%p2786_p8) target bundleno = 120 (0x78), region = 101  ;;  %605 = vst.msk [vmem:[#allocation2] sm:$0xff] (!%p2786_p8), %vm604_vm0, %v3447_v16  ;;  %606 = vst.msk [vmem:[#allocation2 + $0x8] sm:$0xff] (!%p2786_p8), %vm604_vm0, %v3447_v16 }
  0x59   : > { %607 = vst.msk [vmem:[#allocation2 + $0x10] sm:$0xff] (!%p2786_p8), %vm604_vm0, %v3447_v16  ;;  %608 = vst.msk [vmem:[#allocation2 + $0x18] sm:$0xff] (!%p2786_p8), %vm604_vm0, %v3447_v16 }
  0x5a   : > { %609 = vst.msk [vmem:[#allocation2 + $0x20] sm:$0xff] (!%p2786_p8), %vm604_vm0, %v3447_v16  ;;  %610 = vst.msk [vmem:[#allocation2 + $0x28] sm:$0xff] (!%p2786_p8), %vm604_vm0, %v3447_v16 }
  0x5b   : > { %611 = vst.msk [vmem:[#allocation2 + $0x30] sm:$0xff] (!%p2786_p8), %vm604_vm0, %v3447_v16  ;;  %612 = vst.msk [vmem:[#allocation2 + $0x38] sm:$0xff] (!%p2786_p8), %vm604_vm0, %v3447_v16 }
  0x5c   : > { %613 = vst.msk [vmem:[#allocation2 + $0x40] sm:$0xff] (!%p2786_p8), %vm604_vm0, %v3447_v16  ;;  %614 = vst.msk [vmem:[#allocation2 + $0x48] sm:$0xff] (!%p2786_p8), %vm604_vm0, %v3447_v16 }
  0x5d   : > { %615 = vst.msk [vmem:[#allocation2 + $0x50] sm:$0xff] (!%p2786_p8), %vm604_vm0, %v3447_v16  ;;  %616 = vst.msk [vmem:[#allocation2 + $0x58] sm:$0xff] (!%p2786_p8), %vm604_vm0, %v3447_v16 }
  0x5e   : > { %617 = vst.msk [vmem:[#allocation2 + $0x60] sm:$0xff] (!%p2786_p8), %vm604_vm0, %v3447_v16  ;;  %618 = vst.msk [vmem:[#allocation2 + $0x68] sm:$0xff] (!%p2786_p8), %vm604_vm0, %v3447_v16 }
  0x5f   : > { %619 = vst.msk [vmem:[#allocation2 + $0x70] sm:$0xff] %vm604_vm0, %v3447_v16  ;;  %620 = vst.msk [vmem:[#allocation2 + $0x78] sm:$0xff] %vm604_vm0, %v3447_v16 }
  0x60   : > { %621 = vst.msk [vmem:[#allocation3] sm:$0xff] %vm604_vm0, %v3448_v17  ;;  %622 = vst.msk [vmem:[#allocation3 + $0x8] sm:$0xff] %vm604_vm0, %v3448_v17 }
  0x61   : > { %623 = vst.msk [vmem:[#allocation3 + $0x10] sm:$0xff] %vm604_vm0, %v3448_v17  ;;  %624 = vst.msk [vmem:[#allocation3 + $0x18] sm:$0xff] %vm604_vm0, %v3448_v17 }
  0x62   : > { %625 = vst.msk [vmem:[#allocation3 + $0x20] sm:$0xff] %vm604_vm0, %v3448_v17  ;;  %626 = vst.msk [vmem:[#allocation3 + $0x28] sm:$0xff] %vm604_vm0, %v3448_v17 }
  0x63   : > { %627 = vst.msk [vmem:[#allocation3 + $0x30] sm:$0xff] %vm604_vm0, %v3448_v17  ;;  %628 = vst.msk [vmem:[#allocation3 + $0x38] sm:$0xff] %vm604_vm0, %v3448_v17 }
  0x64   : > { %629 = vst.msk [vmem:[#allocation3 + $0x40] sm:$0xff] %vm604_vm0, %v3448_v17  ;;  %630 = vst.msk [vmem:[#allocation3 + $0x48] sm:$0xff] %vm604_vm0, %v3448_v17 }
  0x65   : > { %631 = vst.msk [vmem:[#allocation3 + $0x50] sm:$0xff] %vm604_vm0, %v3448_v17  ;;  %632 = vst.msk [vmem:[#allocation3 + $0x58] sm:$0xff] %vm604_vm0, %v3448_v17 }
  0x66   : > { %633 = vst.msk [vmem:[#allocation3 + $0x60] sm:$0xff] %vm604_vm0, %v3448_v17  ;;  %634 = vst.msk [vmem:[#allocation3 + $0x68] sm:$0xff] %vm604_vm0, %v3448_v17 }
  0x67   : > { %635 = vst.msk [vmem:[#allocation3 + $0x70] sm:$0xff] %vm604_vm0, %v3448_v17  ;;  %636 = vst.msk [vmem:[#allocation3 + $0x78] sm:$0xff] %vm604_vm0, %v3448_v17 }
  0x68   : > { %654 = vst.msk [vmem:[#allocation5] sm:$0xff] %vm604_vm0, %v3448_v17  ;;  %655 = vst.msk [vmem:[#allocation5 + $0x8] sm:$0xff] %vm604_vm0, %v3448_v17 }
  0x69   : > { %656 = vst.msk [vmem:[#allocation5 + $0x10] sm:$0xff] %vm604_vm0, %v3448_v17  ;;  %657 = vst.msk [vmem:[#allocation5 + $0x18] sm:$0xff] %vm604_vm0, %v3448_v17 }
  0x6a   : > { %658 = vst.msk [vmem:[#allocation5 + $0x20] sm:$0xff] %vm604_vm0, %v3448_v17  ;;  %659 = vst.msk [vmem:[#allocation5 + $0x28] sm:$0xff] %vm604_vm0, %v3448_v17 }
  0x6b   : > { %660 = vst.msk [vmem:[#allocation5 + $0x30] sm:$0xff] %vm604_vm0, %v3448_v17  ;;  %661 = vst.msk [vmem:[#allocation5 + $0x38] sm:$0xff] %vm604_vm0, %v3448_v17 }
  0x6c   : > { %662 = vst.msk [vmem:[#allocation5 + $0x40] sm:$0xff] %vm604_vm0, %v3448_v17  ;;  %663 = vst.msk [vmem:[#allocation5 + $0x48] sm:$0xff] %vm604_vm0, %v3448_v17 }
  0x6d   : > { %664 = vst.msk [vmem:[#allocation5 + $0x50] sm:$0xff] %vm604_vm0, %v3448_v17  ;;  %665 = vst.msk [vmem:[#allocation5 + $0x58] sm:$0xff] %vm604_vm0, %v3448_v17 }
  0x6e   : > { %666 = vst.msk [vmem:[#allocation5 + $0x60] sm:$0xff] %vm604_vm0, %v3448_v17  ;;  %667 = vst.msk [vmem:[#allocation5 + $0x68] sm:$0xff] %vm604_vm0, %v3448_v17 }
  0x6f   : > { %668 = vst.msk [vmem:[#allocation5 + $0x70] sm:$0xff] %vm604_vm0, %v3448_v17  ;;  %669 = vst.msk [vmem:[#allocation5 + $0x78] sm:$0xff] %vm604_vm0, %v3448_v17 }
  0x70   : > { %638 = vst.msk [vmem:[#allocation4] sm:$0xff] %vm637_vm1, %v3448_v17  ;;  %639 = vst.msk [vmem:[#allocation4 + $0x8] sm:$0xff] %vm637_vm1, %v3448_v17 }
  0x71   : > { %640 = vst.msk [vmem:[#allocation4 + $0x10] sm:$0xff] %vm637_vm1, %v3448_v17  ;;  %641 = vst.msk [vmem:[#allocation4 + $0x18] sm:$0xff] %vm637_vm1, %v3448_v17 }
  0x72   : > { %642 = vst.msk [vmem:[#allocation4 + $0x20] sm:$0xff] %vm637_vm1, %v3448_v17  ;;  %643 = vst.msk [vmem:[#allocation4 + $0x28] sm:$0xff] %vm637_vm1, %v3448_v17 }
  0x73   : > { %644 = vst.msk [vmem:[#allocation4 + $0x30] sm:$0xff] %vm637_vm1, %v3448_v17  ;;  %645 = vst.msk [vmem:[#allocation4 + $0x38] sm:$0xff] %vm637_vm1, %v3448_v17 }
  0x74   : > { %646 = vst.msk [vmem:[#allocation4 + $0x40] sm:$0xff] %vm637_vm1, %v3448_v17  ;;  %647 = vst.msk [vmem:[#allocation4 + $0x48] sm:$0xff] %vm637_vm1, %v3448_v17 }
  0x75   : > { %648 = vst.msk [vmem:[#allocation4 + $0x50] sm:$0xff] %vm637_vm1, %v3448_v17  ;;  %649 = vst.msk [vmem:[#allocation4 + $0x58] sm:$0xff] %vm637_vm1, %v3448_v17 }
  0x76   : > { %650 = vst.msk [vmem:[#allocation4 + $0x60] sm:$0xff] %vm637_vm1, %v3448_v17  ;;  %651 = vst.msk [vmem:[#allocation4 + $0x68] sm:$0xff] %vm637_vm1, %v3448_v17 }
  0x77   : > { %652 = vst.msk [vmem:[#allocation4 + $0x70] sm:$0xff] %vm637_vm1, %v3448_v17  ;;  %653 = vst.msk [vmem:[#allocation4 + $0x78] sm:$0xff] %vm637_vm1, %v3448_v17 }
  0x78 PF: > { %v686_v18 = vld [vmem:[%s4840_s7] sm:$0xff]  ;;  %v687_v19 = vld [vmem:[%s4840_s7 + $0x8] sm:$0xff]  ;;  %v688_v20 = vld [vmem:[%s4840_s7 + $0x10] sm:$0xff]  ;;  %vm690_vm2 = vcmask 261120   ;;  %v3449_v24 = vmov 1   ;;  %s4934_s30 = scalar_lea.vmem %s4835_s2, %s3641_s25  ;;  %p2813_p9 = scmp.ne.s32.totalorder %s3429_s18, 1 }
  0x79   : > { %v3013_v21 = vpack.c.bf16 %v687_v19, %v686_v18  ;;  %v689_v22 = vld [vmem:[%s4840_s7 + $0x18] sm:$0xff]  ;;  %v670_v23 = vld [vmem:[%s3646_s27] sm:$0xff]  ;;  %3161 = vset.pattern.permute.xlu1 %v3449_v24  ;;  %3162 = vset.pattern.permute.xlu0 %v3449_v24  ;;  %v671_v26 = vld [vmem:[%s3646_s27 + $0x8] sm:$0xff] }
  0x7a   : > { %v3017_v25 = vpack.c.bf16 %v689_v22, %v688_v20  ;;  %2922 = vmatprep.mubr.msk.f32.mxu0 %vm690_vm2, %v670_v23  ;;  %v672_v27 = vld [vmem:[%s3646_s27 + $0x10] sm:$0xff]  ;;  %v673_v28 = vld [vmem:[%s3646_s27 + $0x18] sm:$0xff]  ;;  %v674_v29 = vld [vmem:[%s3646_s27 + $0x20] sm:$0xff] }
  0x7b   : > { %3014 = vmatprep.subr.bf16.mxu0 %v3013_v21  ;;  %v675_v30 = vld [vmem:[%s3646_s27 + $0x28] sm:$0xff]  ;;  %v676_v31 = vld [vmem:[%s3646_s27 + $0x30] sm:$0xff]  ;;  %v677_v32 = vld [vmem:[%s3646_s27 + $0x38] sm:$0xff] }
  0x7c   : > { %3016 = vmatpush3.bf16.msra.mxu0 %v3013_v21  ;;  %v678_v33 = vld [vmem:[%s3646_s27 + $0x40] sm:$0xff]  ;;  %v679_v34 = vld [vmem:[%s3646_s27 + $0x48] sm:$0xff]  ;;  %v680_v35 = vld [vmem:[%s3646_s27 + $0x50] sm:$0xff] }
  0x7d   : > { %3018 = vmatprep.subr.bf16.mxu0 %v3017_v25  ;;  %v681_v36 = vld [vmem:[%s3646_s27 + $0x58] sm:$0xff]  ;;  %v682_v37 = vld [vmem:[%s3646_s27 + $0x60] sm:$0xff]  ;;  %v683_v38 = vld [vmem:[%s3646_s27 + $0x68] sm:$0xff] }
  0x7e   : > { %v684_v39 = vld [vmem:[%s3646_s27 + $0x70] sm:$0xff]  ;;  %v685_v40 = vld [vmem:[%s3646_s27 + $0x78] sm:$0xff]  ;;  %v3836_v57 = vld [vmem:[%s3672_s20] sm:$0xff]  }
  0x7f   : > { %v3843_v58 = vld [vmem:[%s4934_s30] ss:$0 sm:$0xff]  ;;  %v4868_v60 = vunpack.c.h.bf16 %v3836_v57  ;;  %v4874_v63 = vunpack.c.l.bf16 %v3836_v57  ;;  %v3849_v0 = vld [vmem:[%s3672_s20 + $0x8] sm:$0xff]   ;;  %v3861_v12 = vld [vmem:[%s3672_s20 + $0x10] sm:$0xff]  }
  0x80   : > { %3020 = vmatpush3.bf16.msra.mxu0 %v3017_v25  ;;  %v4872_v5 = vunpack.c.h.bf16 %v3849_v0  ;;  %v4873_v9 = vunpack.c.l.bf16 %v3849_v0  ;;  %v4871_v19 = vunpack.c.h.bf16 %v3861_v12 }
  0x81   : > { %vm1156_vm3 = vcmp.gt.f32.partialorder %v4868_v60, 0.0  ;;  %vm1155_vm4 = vcmp.gt.f32.partialorder %v4874_v63, 0.0 }
  0x82   : > { %vm1158_vm5 = vcmp.gt.f32.partialorder %v4872_v5, 0.0  ;;  %vm1157_vm6 = vcmp.gt.f32.partialorder %v4873_v9, 0.0  ;;  %vm1160_vm7 = vcmp.gt.f32.partialorder %v4871_v19, 0.0 }
  0x83   : > { %2923 = vmatmul.mubr.msk.f32.vlgmr.msra.gmra.mrb[0].mxu0 %vm690_vm2, %v671_v26 }
  0x84   : > { %2925 = vmatprep.mubr.msk.f32.mxu0 %vm690_vm2, %v672_v27 }
  0x87   : > { %2926 = vmatmul.mubr.msk.f32.gmra.mrb[2].mxu0 %vm690_vm2, %v673_v28  ;;  %v4866_v28 = vunpack.c.l.bf16 %v3861_v12 }
  0x88   : > { %2928 = vmatprep.mubr.msk.f32.mxu0 %vm690_vm2, %v674_v29 }
  0x89   : > { %vm1159_vm8 = vcmp.gt.f32.partialorder %v4866_v28, 0.0 }
  0x8b   : > { %2929 = vmatmul.mubr.msk.f32.gmra.mrb[4].mxu0 %vm690_vm2, %v675_v30 }
  0x8c   : > { %2931 = vmatprep.mubr.msk.f32.mxu0 %vm690_vm2, %v676_v31  ;;  %v3887_v31 = vld [vmem:[%s3672_s20 + $0x20] sm:$0xff]  }
  0x8f   : > { %2932 = vmatmul.mubr.msk.f32.gmra.mrb[6].mxu0 %vm690_vm2, %v677_v32  ;;  %v3890_v32 = vld [vmem:[%s3672_s20 + $0x18] sm:$0xff]  }
  0x90   : > { %2934 = vmatprep.mubr.msk.f32.mxu0 %vm690_vm2, %v678_v33 }
  0x93   : > { %2935 = vmatmul.mubr.msk.f32.gmra.mrb[8].mxu0 %vm690_vm2, %v679_v34 }
  0x94   : > { %2937 = vmatprep.mubr.msk.f32.mxu0 %vm690_vm2, %v680_v35 }
  0x97   : > { %2938 = vmatmul.mubr.msk.f32.gmra.mrb[10].mxu0 %vm690_vm2, %v681_v36 }
  0x98   : > { %2940 = vmatprep.mubr.msk.f32.mxu0 %vm690_vm2, %v682_v37 }
  0x9b   : > { %2941 = vmatmul.mubr.msk.f32.gmra.mrb[12].mxu0 %vm690_vm2, %v683_v38 }
  0x9c   : > { %2943 = vmatprep.mubr.msk.f32.mxu0 %vm690_vm2, %v684_v39  ;;  %v4862_v39 = vunpack.c.l.bf16 %v3887_v31 }
  0x9e   : > { %vm1163_vm9 = vcmp.gt.f32.partialorder %v4862_v39, 0.0 }
  0x9f   : > { %2944 = vmatmul.mubr.msk.f32.gmra.mrb[14].mxu0 %vm690_vm2, %v685_v40  ;;  %v4870_v40 = vunpack.c.h.bf16 %v3890_v32 }
  0xa1   : > { %vm1162_vm10 = vcmp.gt.f32.partialorder %v4870_v40, 0.0 }
 0x156   : > { %v3787_v41 = vpop.f32.mrb[0].mxu0 }
 0x157   : > { %4918 = vst [vmem:[#allocation26_spill] sm:$0xff] %v3787_v41  ;;  %1028 = vperm.xlu1 %3161, %v3787_v41   ;;  %v3790_v42 = vpop.f32.mrb[1].mxu0 }
 0x158   : > { %4919 = vst [vmem:[#allocation27_spill] sm:$0xff] %v3790_v42  ;;  %1023 = vperm.xlu0 %3162, %v3790_v42  }
 0x15a   : > { %v3793_v43 = vpop.f32.mrb[2].mxu0 }
 0x15b   : > { %4920 = vst [vmem:[#allocation28_spill] sm:$0xff] %v3793_v43  ;;  %1038 = vperm.xlu1 %3161, %v3793_v43   ;;  %v3796_v44 = vpop.f32.mrb[3].mxu0  ;;  %v4944_v43 = vunpack.c.h.bf16 %v3849_v0 }
 0x15c   : > { %4921 = vst [vmem:[#allocation29_spill] sm:$0xff] %v3796_v44  ;;  %1033 = vperm.xlu0 %3162, %v3796_v44   ;;  %v4945_v44 = vunpack.c.h.bf16 %v3861_v12 }
 0x15e   : > { %v3799_v45 = vpop.f32.mrb[4].mxu0 }
 0x15f   : > { %4922 = vst [vmem:[#allocation30_spill] sm:$0xff] %v3799_v45  ;;  %v3801_v46 = vpop.f32.mrb[5].mxu0 }
 0x160   : > { %4923 = vst [vmem:[#allocation31_spill] sm:$0xff] %v3801_v46  ;;  %1048 = vperm.xlu0 %3162, %v3799_v45   ;;  %v4943_v45 = vunpack.c.l.bf16 %v3849_v0  ;;  %v4952_v0 = vunpack.c.l.bf16 %v3890_v32 }
 0x162   : > { %v3804_v47 = vpop.f32.mrb[6].mxu0 }
 0x163   : > { %4924 = vst [vmem:[#allocation32_spill] sm:$0xff] %v3804_v47  ;;  %1058 = vperm.xlu1 %3161, %v3804_v47   ;;  %v3807_v48 = vpop.f32.mrb[7].mxu0 }
 0x164   : > { %4925 = vst [vmem:[#allocation33_spill] sm:$0xff] %v3807_v48  ;;  %1043 = vperm.xlu0 %3162, %v3801_v46  }
 0x166   : > { %v3810_v49 = vpop.f32.mrb[8].mxu0 }
 0x167   : > { %4926 = vst [vmem:[#allocation34_spill] sm:$0xff] %v3810_v49  ;;  %1053 = vperm.xlu1 %3161, %v3807_v48   ;;  %v3813_v50 = vpop.f32.mrb[9].mxu0  ;;  %v4120_v48 = vld [vmem:[#allocation2 + $0x68] sm:$0xff] }
 0x168   : > { %4927 = vst [vmem:[#allocation35_spill] sm:$0xff] %v3813_v50  ;;  %1063 = vperm.xlu0 %3162, %v3813_v50  }
 0x16a   : > { %v3816_v51 = vpop.f32.mrb[10].mxu0 }
 0x16b   : > { %4928 = vst [vmem:[#allocation36_spill] sm:$0xff] %v3816_v51  ;;  %1068 = vperm.xlu1 %3161, %v3810_v49   ;;  %v3819_v52 = vpop.f32.mrb[11].mxu0 }
 0x16c   : > { %4929 = vst [vmem:[#allocation37_spill] sm:$0xff] %v3819_v52  ;;  %1073 = vperm.xlu0 %3162, %v3819_v52   ;;  %v4099_v52 = vld [vmem:[#allocation2 + $0x70] sm:$0xff] }
 0x16d   : > { %4938 = vst [vmem:[#allocation43_spill] sm:$0xff] %v4099_v52 }
 0x16e   : > { %v3822_v53 = vpop.f32.mrb[12].mxu0 }
 0x16f   : > { %4930 = vst [vmem:[#allocation38_spill] sm:$0xff] %v3822_v53  ;;  %1078 = vperm.xlu1 %3161, %v3816_v51   ;;  %v3825_v54 = vpop.f32.mrb[13].mxu0 }
 0x170   : > { %4931 = vst [vmem:[#allocation39_spill] sm:$0xff] %v3825_v54  ;;  %1083 = vperm.xlu0 %3162, %v3825_v54  }
 0x172   : > { %v3828_v55 = vpop.f32.mrb[14].mxu0 }
 0x173   : > { %4932 = vst [vmem:[#allocation40_spill] sm:$0xff] %v3828_v55  ;;  %1088 = vperm.xlu1 %3161, %v3822_v53   ;;  %v3831_v56 = vpop.f32.mrb[15].mxu0 }
 0x174   : > { %4933 = vst [vmem:[#allocation41_spill] sm:$0xff] %v3831_v56  ;;  %1093 = vperm.xlu0 %3162, %v3831_v56   ;;  %v4079_v56 = vld [vmem:[#allocation2 + $0x60] sm:$0xff] }
 0x177   : > { %1098 = vperm.xlu1 %3161, %v3828_v55  }
 0x1d6   : > { %v1029_v59 = vpop.permute.xlu1 %1028 }
 0x1d7   : > { %v1108_v61 = vadd.f32 %v3843_v58, %v1029_v59  ;;  %v1024_v62 = vpop.permute.xlu0 %1023 }
 0x1d8   : > { %v1107_v1 = vadd.f32 %v3843_v58, %v1024_v62  ;;  %v3902_v62 = vld [vmem:[%s3672_s20 + $0x28] sm:$0xff]  }
 0x1d9   : > { %v1124_v2 = vmul.f32 0.2, %v1108_v61 }
 0x1da   : > { %v1123_v3 = vmul.f32 0.2, %v1107_v1  ;;  %v1039_v4 = vpop.permute.xlu1 %1038 }
 0x1db   : > { %v1110_v6 = vadd.f32 %v3843_v58, %v1039_v4  ;;  %v1034_v7 = vpop.permute.xlu0 %1033  ;;  %v1140_v8 = vmax.f32 %v1108_v61, %v1124_v2 }
 0x1dc   : > { %v1109_v10 = vadd.f32 %v3843_v58, %v1034_v7  ;;  %v1139_v11 = vmax.f32 %v1107_v1, %v1123_v3  ;;  %v4864_v1 = vunpack.c.l.bf16 %v3890_v32 }
 0x1dd   : > { %v1126_v13 = vmul.f32 0.2, %v1110_v6  ;;  %v3863_v14 = vsel %vm1156_vm3, %v1140_v8, -1e+30 }
 0x1de   : > { %v1125_v15 = vmul.f32 0.2, %v1109_v10  ;;  %1205 = vmax.xlane.f32.xlu0 %v3863_v14  ;;  %v3866_v16 = vsel %vm1155_vm4, %v1139_v11, -1e+30  ;;  %v4859_v11 = vunpack.c.l.bf16 %v3902_v62  ;;  %vm3917_vm11 = vcmp.gt.f32.partialorder %v4864_v1, 0.0 }
 0x1df   : > { %v1049_v17 = vpop.permute.xlu0 %1048  ;;  %1203 = vmax.xlane.f32.xlu1 %v3866_v16  ;;  %v1142_v18 = vmax.f32 %v1110_v6, %v1126_v13  ;;  %vm1003_vm4 = vcmask 7168  }
 0x1e0   : > { %v1112_v20 = vadd.f32 %v3843_v58, %v1049_v17  ;;  %v1141_v21 = vmax.f32 %v1109_v10, %v1125_v15  ;;  %vm1165_vm12 = vcmp.gt.f32.partialorder %v4859_v11, 0.0 }
 0x1e1   : > { %v3875_v22 = vsel %vm1158_vm5, %v1142_v18, -1e+30  ;;  %v3922_v18 = vld [vmem:[%s3672_s20 + $0x30] sm:$0xff]  }
 0x1e2   : > { %v1128_v23 = vmul.f32 0.2, %v1112_v20  ;;  %v1059_v24 = vpop.permute.xlu1 %1058  ;;  %1209 = vmax.xlane.f32.xlu0 %v3875_v22  ;;  %v3878_v25 = vsel %vm1157_vm6, %v1141_v21, -1e+30 }
 0x1e3   : > { %v1114_v26 = vadd.f32 %v3843_v58, %v1059_v24  ;;  %v1044_v27 = vpop.permute.xlu0 %1043  ;;  %1207 = vmax.xlane.f32.xlu1 %v3878_v25 }
 0x1e4   : > { %v1111_v29 = vadd.f32 %v3843_v58, %v1044_v27  ;;  %v1144_v30 = vmax.f32 %v1112_v20, %v1128_v23  ;;  %v4869_v23 = vunpack.c.h.bf16 %v3887_v31 }
 0x1e5   : > { %v1130_v33 = vmul.f32 0.2, %v1114_v26 }
 0x1e6   : > { %v1127_v34 = vmul.f32 0.2, %v1111_v29  ;;  %v1054_v35 = vpop.permute.xlu1 %1053  ;;  %v3892_v36 = vsel %vm1160_vm7, %v1144_v30, -1e+30  ;;  %v3450_v30 = vmov 0   ;;  %vm1164_vm13 = vcmp.gt.f32.partialorder %v4869_v23, 0.0 }
 0x1e7   : > { %v1113_v37 = vadd.f32 %v3843_v58, %v1054_v35  ;;  %v1064_v38 = vpop.permute.xlu0 %1063  ;;  %1213 = vmax.xlane.f32.xlu1 %v3892_v36  ;;  %v1146_v7 = vmax.f32 %v1114_v26, %v1130_v33  ;;  %3163 = vset.pattern.permute.xlu0 %v3450_v30  ;;  %v4861_v35 = vunpack.c.l.bf16 %v3922_v18 }
 0x1e8   : > { %v1115_v59 = vadd.f32 %v3843_v58, %v1064_v38  ;;  %v1143_v61 = vmax.f32 %v1111_v29, %v1127_v34  ;;  %3164 = vset.pattern.permute.xlu1 %v3450_v30 }
 0x1e9   : > { %v1129_v2 = vmul.f32 0.2, %v1113_v37  ;;  %v3927_v29 = vsel %vm1162_vm10, %v1146_v7, -1e+30  ;;  %vm1167_vm14 = vcmp.gt.f32.partialorder %v4861_v35, 0.0 }
 0x1ea   : > { %v1131_v3 = vmul.f32 0.2, %v1115_v59  ;;  %v1069_v4 = vpop.permute.xlu1 %1068  ;;  %v3905_v6 = vsel %vm1159_vm8, %v1143_v61, -1e+30 }
 0x1eb   : > { %v1116_v8 = vadd.f32 %v3843_v58, %v1069_v4  ;;  %v1074_v10 = vpop.permute.xlu0 %1073  ;;  %1211 = vmax.xlane.f32.xlu0 %v3905_v6  ;;  %v1145_v21 = vmax.f32 %v1113_v37, %v1129_v2 }
 0x1ec   : > { %v1117_v13 = vadd.f32 %v3843_v58, %v1074_v10  ;;  %v1147_v15 = vmax.f32 %v1115_v59, %v1131_v3  ;;  %v3937_v59 = vld [vmem:[%s3672_s20 + $0x38] sm:$0xff]  }
 0x1ed   : > { %v1132_v20 = vmul.f32 0.2, %v1116_v8  ;;  %v3941_v61 = vsel %vm3917_vm11, %v1145_v21, -1e+30  ;;  %v4860_v17 = vunpack.c.l.bf16 %v3937_v59 }
 0x1ee   : > { %v1133_v24 = vmul.f32 0.2, %v1117_v13  ;;  %v1079_v26 = vpop.permute.xlu1 %1078  ;;  %v3925_v27 = vsel %vm1163_vm9, %v1147_v15, -1e+30 }
 0x1ef   : > { %v1118_v33 = vadd.f32 %v3843_v58, %v1079_v26  ;;  %v1084_v34 = vpop.permute.xlu0 %1083  ;;  %1219 = vmax.xlane.f32.xlu1 %v3925_v27  ;;  %1217 = vmax.xlane.f32.xlu0 %v3927_v29  ;;  %v1148_v2 = vmax.f32 %v1116_v8, %v1132_v20  ;;  %v4867_v8 = vunpack.c.h.bf16 %v3902_v62  ;;  %vm1169_vm0 = vcmp.gt.f32.partialorder %v4860_v17, 0.0  ;;  %v4001_v17 = vld [vmem:[#allocation2 + $0x10] sm:$0xff] }
 0x1f0   : > { %v1119_v37 = vadd.f32 %v3843_v58, %v1084_v34  ;;  %v1149_v38 = vmax.f32 %v1117_v13, %v1133_v24 }
 0x1f1   : > { %v1134_v3 = vmul.f32 0.2, %v1118_v33  ;;  %v3955_v24 = vsel %vm1164_vm13, %v1148_v2, -1e+30  ;;  %vm1166_vm15 = vcmp.gt.f32.partialorder %v4867_v8, 0.0  ;;  %v4042_v8 = vld [vmem:[#allocation2 + $0x40] sm:$0xff] }
 0x1f2   : > { %v1135_v4 = vmul.f32 0.2, %v1119_v37  ;;  %v1089_v7 = vpop.permute.xlu1 %1088  ;;  %v3945_v10 = vsel %vm1165_vm12, %v1149_v38, -1e+30 }
 0x1f3   : > { %v1120_v15 = vadd.f32 %v3843_v58, %v1089_v7  ;;  %1223 = vmax.xlane.f32.xlu1 %v3945_v10  ;;  %1215 = vmax.xlane.f32.xlu0 %v3941_v61  ;;  %v1094_v13 = vpop.permute.xlu0 %1093  ;;  %v1150_v7 = vmax.f32 %v1118_v33, %v1134_v3  ;;  %v4863_v3 = vunpack.c.h.bf16 %v3937_v59 }
 0x1f4   : > { %v1121_v20 = vadd.f32 %v3843_v58, %v1094_v13  ;;  %v1151_v21 = vmax.f32 %v1119_v37, %v1135_v4  ;;  %v4865_v37 = vunpack.c.h.bf16 %v3922_v18 }
 0x1f5   : > { %v1136_v26 = vmul.f32 0.2, %v1120_v15  ;;  %v3967_v13 = vsel %vm1166_vm15, %v1150_v7, -1e+30  ;;  %vm1170_vm3 = vcmp.gt.f32.partialorder %v4863_v3, 0.0  ;;  %v4019_v3 = vld [vmem:[#allocation2 + $0x28] sm:$0xff] }
 0x1f6   : > { %v1137_v30 = vmul.f32 0.2, %v1121_v20  ;;  %v1099_v34 = vpop.permute.xlu1 %1098  ;;  %v3957_v38 = vsel %vm1167_vm14, %v1151_v21, -1e+30  ;;  %vm1168_vm1 = vcmp.gt.f32.partialorder %v4865_v37, 0.0  ;;  %v4030_v37 = vld [vmem:[#allocation2 + $0x20] sm:$0xff] }
 0x1f7   : > { %v1122_v11 = vadd.f32 %v3843_v58, %v1099_v34  ;;  %1227 = vmax.xlane.f32.xlu1 %v3957_v38  ;;  %1221 = vmax.xlane.f32.xlu0 %v3955_v24  ;;  %v1152_v58 = vmax.f32 %v1120_v15, %v1136_v26  ;;  %v3165_v15 = vld [vmem:[%s3665_s16] sm:$0xff]   ;;  %v3985_v26 = vld [vmem:[#allocation2 + $0x8] sm:$0xff] }
 0x1f8   : > { %v1153_v2 = vmax.f32 %v1121_v20, %v1137_v30  ;;  %v3987_v30 = vld [vmem:[#allocation2] sm:$0xff]  ;;  %2946 = vmatprep.subr.bf16.mxu0 %v3165_v15  ;;  %3045 = vmatprep.subr.bf16.mxu1 %v3165_v15 }
 0x1f9   : > { %v1138_v4 = vmul.f32 0.2, %v1122_v11  ;;  %v3976_v21 = vsel %vm1168_vm1, %v1152_v58, -1e+30  ;;  %2947 = vmatpush3.bf16.msra.mxu0 %v3165_v15  ;;  %3053 = vmatpush3.bf16.msra.mxu1 %v3165_v15  ;;  %v3995_v58 = vld [vmem:[#allocation2 + $0x18] sm:$0xff] }
 0x1fa   : > { %v3969_v33 = vsel %vm1169_vm0, %v1153_v2, -1e+30 }
 0x1fb   : > { %1225 = vmax.xlane.f32.xlu0 %v3967_v13  ;;  %1231 = vmax.xlane.f32.xlu1 %v3969_v33  ;;  %v1154_v34 = vmax.f32 %v1122_v11, %v1138_v4 }
 0x1fd   : > { %v3981_v20 = vsel %vm1170_vm3, %v1154_v34, -1e+30 }
 0x1fe   : > { %4937 = vst [vmem:[#allocation42_spill] sm:$0xff] %v3981_v20 }
 0x1ff   : > { %1229 = vmax.xlane.f32.xlu0 %v3976_v21 }
 0x203   : > { %1233 = vmax.xlane.f32.xlu0 %v3981_v20 }
 0x26b   : > { %v1206_v7 = vpop.xlane.xlu0 %1205 }
 0x26c   : > { %v3990_v11 = vmax.f32 %v3985_v26, %v1206_v7  ;;  %v1204_v2 = vpop.xlane.xlu1 %1203 }
 0x26d   : > { %v3993_v4 = vmax.f32 %v3987_v30, %v1204_v2  ;;  %v3166_v2 = vld [vmem:[%s3665_s16 + $0x8] sm:$0xff]  }
 0x26e   : > { %1837 = vst.msk [vmem:[#allocation2 + $0x8] sm:$0xff] %vm1003_vm4, %v3990_v11  ;;  %2948 = vmatprep.subr.bf16.mxu0 %v3166_v2  ;;  %3046 = vmatprep.subr.bf16.mxu1 %v3166_v2 }
 0x26f   : > { %1836 = vst.msk [vmem:[#allocation2] sm:$0xff] %vm1003_vm4, %v3993_v4  ;;  %1301 = vperm.xlu1 %3164, %v3993_v4   ;;  %v1210_v7 = vpop.xlane.xlu0 %1209  ;;  %2949 = vmatpush3.bf16.msra.mxu0 %v3166_v2 }
 0x270   : > { %v4010_v35 = vmax.f32 %v3995_v58, %v1210_v7  ;;  %v1208_v34 = vpop.xlane.xlu1 %1207  ;;  %3054 = vmatpush3.bf16.msra.mxu1 %v3166_v2  ;;  %v3168_v7 = vld [vmem:[%s3665_s16 + $0x18] sm:$0xff]   ;;  %v4061_v2 = vld [vmem:[#allocation2 + $0x30] sm:$0xff] }
 0x271   : > { %v4013_v39 = vmax.f32 %v4001_v17, %v1208_v34  ;;  %v3167_v34 = vld [vmem:[%s3665_s16 + $0x10] sm:$0xff]  }
 0x272   : > { %1839 = vst.msk [vmem:[#allocation2 + $0x18] sm:$0xff] %vm1003_vm4, %v4010_v35  ;;  %2950 = vmatprep.subr.bf16.mxu0 %v3167_v34  ;;  %3047 = vmatprep.subr.bf16.mxu1 %v3167_v34 }
 0x273   : > { %1838 = vst.msk [vmem:[#allocation2 + $0x10] sm:$0xff] %vm1003_vm4, %v4013_v39  ;;  %1306 = vperm.xlu1 %3164, %v3990_v11   ;;  %2951 = vmatpush3.bf16.msra.mxu0 %v3167_v34 }
 0x274   : > { %v1214_v1 = vpop.xlane.xlu1 %1213  ;;  %3055 = vmatpush3.bf16.msra.mxu1 %v3167_v34  ;;  %2952 = vmatprep.subr.bf16.mxu0 %v3168_v7  ;;  %v4044_v34 = vld [vmem:[#allocation2 + $0x38] sm:$0xff] }
 0x275   : > { %v4028_v15 = vmax.f32 %v4019_v3, %v1214_v1  ;;  %3048 = vmatprep.subr.bf16.mxu1 %v3168_v7 }
 0x277   : > { %1841 = vst.msk [vmem:[#allocation2 + $0x28] sm:$0xff] %vm1003_vm4, %v4028_v15  ;;  %1326 = vperm.xlu0 %3163, %v4028_v15   ;;  %1316 = vperm.xlu1 %3164, %v4010_v35  }
 0x278   : > { %v1212_v1 = vpop.xlane.xlu0 %1211  ;;  %2953 = vmatpush3.bf16.msra.mxu0 %v3168_v7  ;;  %3056 = vmatpush3.bf16.msra.mxu1 %v3168_v7  ;;  %v4059_v7 = vld [vmem:[#allocation2 + $0x50] sm:$0xff] }
 0x279   : > { %v4040_v28 = vmax.f32 %v4030_v37, %v1212_v1  ;;  %v3169_v1 = vld [vmem:[%s3665_s16 + $0x20] sm:$0xff]  }
 0x27a   : > { %2954 = vmatprep.subr.bf16.mxu0 %v3169_v1  ;;  %3049 = vmatprep.subr.bf16.mxu1 %v3169_v1 }
 0x27b   : > { %1840 = vst.msk [vmem:[#allocation2 + $0x20] sm:$0xff] %vm1003_vm4, %v4040_v28  ;;  %1311 = vperm.xlu0 %3163, %v4013_v39   ;;  %1321 = vperm.xlu1 %3164, %v4040_v28  }
 0x27c   : > { %v1220_v60 = vpop.xlane.xlu1 %1219  ;;  %v1218_v23 = vpop.xlane.xlu0 %1217  ;;  %2955 = vmatpush3.bf16.msra.mxu0 %v3169_v1  ;;  %3057 = vmatpush3.bf16.msra.mxu1 %v3169_v1 }
 0x27d   : > { %v4054_v40 = vmax.f32 %v4042_v8, %v1220_v60  ;;  %v4057_v19 = vmax.f32 %v4044_v34, %v1218_v23  ;;  %v3170_v23 = vld [vmem:[%s3665_s16 + $0x28] sm:$0xff]  }
 0x27e   : > { %2956 = vmatprep.subr.bf16.mxu0 %v3170_v23  ;;  %3050 = vmatprep.subr.bf16.mxu1 %v3170_v23  ;;  %v4081_v60 = vld [vmem:[#allocation2 + $0x48] sm:$0xff] }
 0x27f   : > { %1844 = vst.msk [vmem:[#allocation2 + $0x40] sm:$0xff] %vm1003_vm4, %v4054_v40  ;;  %1843 = vst.msk [vmem:[#allocation2 + $0x38] sm:$0xff] %vm1003_vm4, %v4057_v19  ;;  %1336 = vperm.xlu1 %3164, %v4057_v19  }
 0x280   : > { %v1224_v9 = vpop.xlane.xlu1 %1223  ;;  %v1216_v63 = vpop.xlane.xlu0 %1215  ;;  %2957 = vmatpush3.bf16.msra.mxu0 %v3170_v23  ;;  %3058 = vmatpush3.bf16.msra.mxu1 %v3170_v23 }
 0x281   : > { %v4074_v1 = vmax.f32 %v4059_v7, %v1224_v9  ;;  %v4077_v5 = vmax.f32 %v4061_v2, %v1216_v63  ;;  %v3171_v63 = vld [vmem:[%s3665_s16 + $0x30] sm:$0xff]   ;;  %v4101_v9 = vld [vmem:[#allocation2 + $0x58] sm:$0xff] }
 0x282   : > { %2958 = vmatprep.subr.bf16.mxu0 %v3171_v63  ;;  %3051 = vmatprep.subr.bf16.mxu1 %v3171_v63 }
 0x283   : > { %1846 = vst.msk [vmem:[#allocation2 + $0x50] sm:$0xff] %vm1003_vm4, %v4074_v1  ;;  %1842 = vst.msk [vmem:[#allocation2 + $0x30] sm:$0xff] %vm1003_vm4, %v4077_v5  ;;  %1331 = vperm.xlu1 %3164, %v4077_v5  }
 0x284   : > { %v1228_v54 = vpop.xlane.xlu1 %1227  ;;  %v1222_v53 = vpop.xlane.xlu0 %1221  ;;  %2959 = vmatpush3.bf16.msra.mxu0 %v3171_v63  ;;  %3059 = vmatpush3.bf16.msra.mxu1 %v3171_v63 }
 0x285   : > { %v4094_v23 = vmax.f32 %v4079_v56, %v1228_v54  ;;  %v4097_v55 = vmax.f32 %v4081_v60, %v1222_v53  ;;  %v3172_v53 = vld [vmem:[%s3665_s16 + $0x38] sm:$0xff]  }
 0x286   : > { %2960 = vmatprep.subr.bf16.mxu0 %v3172_v53  ;;  %3052 = vmatprep.subr.bf16.mxu1 %v3172_v53 }
 0x287   : > { %1848 = vst.msk [vmem:[#allocation2 + $0x60] sm:$0xff] %vm1003_vm4, %v4094_v23  ;;  %1845 = vst.msk [vmem:[#allocation2 + $0x48] sm:$0xff] %vm1003_vm4, %v4097_v55  ;;  %1361 = vperm.xlu0 %3163, %v4094_v23   ;;  %1346 = vperm.xlu1 %3164, %v4097_v55  }
 0x288   : > { %v1232_v50 = vpop.xlane.xlu1 %1231  ;;  %v1226_v49 = vpop.xlane.xlu0 %1225  ;;  %2961 = vmatpush3.bf16.msra.mxu0 %v3172_v53  ;;  %3060 = vmatpush3.bf16.msra.mxu1 %v3172_v53  ;;  %v4135_v53 = vld [vmem:[#allocation2 + $0x78] sm:$0xff] }
 0x289   : > { %v4115_v63 = vmax.f32 %v4099_v52, %v1232_v50  ;;  %v4118_v51 = vmax.f32 %v4101_v9, %v1226_v49  ;;  %4940 = vst [vmem:[#allocation45_spill] sm:$0xff] %v4135_v53  ;;  %v4947_v52 = vunpack.c.h.bf16 %v3887_v31 }
 0x28b   : > { %4939 = vst [vmem:[#allocation44_spill] sm:$0xff] %v4115_v63  ;;  %1850 = vst.msk [vmem:[#allocation2 + $0x70] sm:$0xff] %vm1003_vm4, %v4115_v63  ;;  %1371 = vperm.xlu0 %3163, %v4115_v63   ;;  %1341 = vperm.xlu1 %3164, %v4054_v40  }
 0x28c   : > { %1847 = vst.msk [vmem:[#allocation2 + $0x58] sm:$0xff] %vm1003_vm4, %v4118_v51  ;;  %v1230_v49 = vpop.xlane.xlu0 %1229 }
 0x28d   : > { %v4133_v50 = vmax.f32 %v4120_v48, %v1230_v49  ;;  %v2803_v49 = vld [vmem:[%s582_s17] ss:$0 sm:$0xff] }
 0x28e   : > { %v941_v41 = vmul.f32 %v4943_v45, %v2803_v49  ;;  %v942_v42 = vmul.f32 %v4944_v43, %v2803_v49 }
 0x28f   : > { %1849 = vst.msk [vmem:[#allocation2 + $0x68] sm:$0xff] %vm1003_vm4, %v4133_v50  ;;  %1356 = vperm.xlu1 %3164, %v4118_v51  }
 0x290   : > { %v1234_v47 = vpop.xlane.xlu0 %1233 }
 0x291   : > { %v4143_v46 = vmax.f32 %v4135_v53, %v1234_v47  ;;  %v4942_v47 = vunpack.c.l.bf16 %v3836_v57  ;;  %v4946_v53 = vunpack.c.h.bf16 %v3890_v32  ;;  %v4957_v32 = vsub.f32 %v3985_v26, %v3990_v11 }
 0x293   : > { %4941 = vst [vmem:[#allocation46_spill] sm:$0xff] %v4143_v46  ;;  %1851 = vst.msk [vmem:[#allocation2 + $0x78] sm:$0xff] %vm1003_vm4, %v4143_v46  ;;  %1351 = vperm.xlu1 %3164, %v4074_v1   ;;  %v939_v54 = vmul.f32 %v4942_v47, %v2803_v49  ;;  %v946_v63 = vmul.f32 %v4946_v53, %v2803_v49  ;;  %v948_v47 = vmul.f32 %v4947_v52, %v2803_v49 }
 0x294   : > { %v4953_v52 = vunpack.c.h.bf16 %v3937_v59  ;;  %v4954_v53 = vunpack.c.l.bf16 %v3887_v31  ;;  %v4959_v31 = vsub.f32 %v4030_v37, %v4040_v28 }
 0x297   : > { %1366 = vperm.xlu1 %3164, %v4133_v50  }
 0x29b   : > { %1376 = vperm.xlu1 %3164, %v4143_v46   ;;  %v944_v46 = vmul.f32 %v4945_v44, %v2803_v49  ;;  %v4951_v44 = vunpack.c.h.bf16 %v3922_v18 }
 0x2aa   : > { %955 = vadd.xlane.f32.xlu0 %v939_v54  ;;  %v4948_v54 = vunpack.c.h.bf16 %v3836_v57  ;;  %v954_v57 = vmul.f32 %v4953_v52, %v2803_v49 }
 0x2ac   : > { %v940_v20 = vmul.f32 %v4948_v54, %v2803_v49  ;;  %v4956_v54 = vunpack.c.l.bf16 %v3922_v18  ;;  %v4961_v18 = vsub.f32 %v4061_v2, %v4077_v5  ;;  %v4965_v5 = vsub.f32 %v4059_v7, %v4074_v1 }
 0x2ae   : > { %959 = vadd.xlane.f32.xlu0 %v941_v41  ;;  %v4949_v41 = vunpack.c.h.bf16 %v3902_v62  ;;  %v1279_v26 = vmul.f32 1.442695, %v4961_v18 }
 0x2b0   : > { %v950_v45 = vmul.f32 %v4949_v41, %v2803_v49  ;;  %v951_v41 = vmul.f32 %v4956_v54, %v2803_v49 }
 0x2b2   : > { %961 = vadd.xlane.f32.xlu0 %v942_v42  ;;  %v4950_v42 = vunpack.c.l.bf16 %v3861_v12  ;;  %v4955_v12 = vunpack.c.l.bf16 %v3902_v62  ;;  %v4960_v62 = vsub.f32 %v3987_v30, %v3993_v4  ;;  %v4964_v30 = vsub.f32 %v3995_v58, %v4010_v35 }
 0x2b3   : > { %v4967_v35 = vsub.f32 %v4079_v56, %v4094_v23  ;;  %v4969_v56 = vsub.f32 %v4081_v60, %v4097_v55 }
 0x2b4   : > { %v943_v43 = vmul.f32 %v4950_v42, %v2803_v49  ;;  %v4958_v42 = vunpack.c.l.bf16 %v3937_v59  ;;  %v4962_v59 = vsub.f32 %v4001_v17, %v4013_v39  ;;  %v1273_v4 = vmul.f32 1.442695, %v4964_v30 }
 0x2b5   : > { %v1287_v39 = vmul.f32 1.442695, %v4965_v5  ;;  %v1291_v58 = vmul.f32 1.442695, %v4967_v35  ;;  %v1285_v23 = vmul.f32 1.442695, %v4969_v56 }
 0x2b6   : > { %965 = vadd.xlane.f32.xlu0 %v944_v46  ;;  %v952_v46 = vmul.f32 %v4951_v44, %v2803_v49  ;;  %v1275_v44 = vmul.f32 1.442695, %v4959_v31  ;;  %v1271_v11 = vmul.f32 1.442695, %v4962_v59 }
 0x2ba   : > { %969 = vadd.xlane.f32.xlu0 %v946_v63  ;;  %v945_v63 = vmul.f32 %v4952_v0, %v2803_v49 }
 0x2be   : > { %973 = vadd.xlane.f32.xlu0 %v948_v47  ;;  %v947_v47 = vmul.f32 %v4954_v53, %v2803_v49 }
 0x2bf   : > { %957 = vadd.xlane.f32.xlu1 %v940_v20  ;;  %v949_v20 = vmul.f32 %v4955_v12, %v2803_v49 }
 0x2c2   : > { %977 = vadd.xlane.f32.xlu0 %v950_v45  ;;  %v1269_v45 = vmul.f32 1.442695, %v4957_v32 }
 0x2c3   : > { %963 = vadd.xlane.f32.xlu1 %v943_v43  ;;  %v953_v43 = vmul.f32 %v4958_v42, %v2803_v49  ;;  %v4963_v49 = vsub.f32 %v4042_v8, %v4054_v40  ;;  %v4966_v40 = vsub.f32 %v4019_v3, %v4028_v15  ;;  %v4968_v3 = vsub.f32 %v4044_v34, %v4057_v19 }
 0x2c4   : > { %3173 = vpow2.f32 %v1269_v45  ;;  %v4970_v34 = vsub.f32 %v4101_v9, %v4118_v51 }
 0x2c5   : > { %3175 = vpow2.f32 %v1275_v44  ;;  %v1283_v28 = vmul.f32 1.442695, %v4963_v49  ;;  %v1277_v8 = vmul.f32 1.442695, %v4966_v40  ;;  %v1281_v15 = vmul.f32 1.442695, %v4968_v3 }
 0x2c6   : > { %981 = vadd.xlane.f32.xlu0 %v952_v46  ;;  %v1267_v46 = vmul.f32 1.442695, %v4960_v62  ;;  %v1289_v53 = vmul.f32 1.442695, %v4970_v34 }
 0x2c7   : > { %967 = vadd.xlane.f32.xlu1 %v945_v63 }
 0x2c8   : > { %3177 = vpow2.f32 %v1267_v46 }
 0x2c9   : > { %3179 = vpow2.f32 %v1279_v26 }
 0x2ca   : > { %985 = vadd.xlane.f32.xlu0 %v954_v57  ;;  %3181 = vpow2.f32 %v1271_v11 }
 0x2cb   : > { %971 = vadd.xlane.f32.xlu1 %v947_v47  ;;  %3183 = vpow2.f32 %v1283_v28 }
 0x2cc   : > { %3185 = vpow2.f32 %v1273_v4 }
 0x2cd   : > { %3187 = vpow2.f32 %v1287_v39 }
 0x2ce   : > { %v4207_v37 = vpop.eup %3173  ;;  %3189 = vpow2.f32 %v1277_v8 }
 0x2cf   : > { %975 = vadd.xlane.f32.xlu1 %v949_v20  ;;  %v4216_v17 = vpop.eup %3175  ;;  %3191 = vpow2.f32 %v1291_v58 }
 0x2d0   : > { %3193 = vpow2.f32 %v1281_v15 }
 0x2d1   : > { %3195 = vpow2.f32 %v1285_v23 }
 0x2d2   : > { %v4225_v2 = vpop.eup %3177  ;;  %3197 = vpow2.f32 %v1289_v53 }
 0x2d3   : > { %979 = vadd.xlane.f32.xlu1 %v951_v41  ;;  %v4227_v0 = vpop.eup %3179 }
 0x2d4   : > { %v4234_v7 = vpop.eup %3181 }
 0x2d5   : > { %v4236_v1 = vpop.eup %3183 }
 0x2d6   : > { %v4243_v63 = vpop.eup %3185 }
 0x2d7   : > { %983 = vadd.xlane.f32.xlu1 %v953_v43  ;;  %v4245_v57 = vpop.eup %3187 }
 0x2d8   : > { %v4253_v47 = vpop.eup %3189 }
 0x2d9   : > { %v4255_v12 = vpop.eup %3191 }
 0x2da   : > { %v4263_v32 = vpop.eup %3193 }
 0x2e0   : > { %1546 = vperm.xlu0 %3163, %v4207_v37  }
 0x2e4   : > { %1561 = vperm.xlu0 %3163, %v4216_v17  }
 0x2e8   : > { %1571 = vperm.xlu0 %3163, %v4227_v0   ;;  %1541 = vperm.xlu1 %3164, %v4225_v2  }
 0x2ec   : > { %1581 = vperm.xlu0 %3163, %v4236_v1   ;;  %1551 = vperm.xlu1 %3164, %v4234_v7  }
 0x2ee   : > { %v1302_v52 = vpop.permute.xlu1 %1301 }
 0x2ef   : > { %v1379_v19 = vsub.f32 %v3866_v16, %v1302_v52  ;;  %v4971_v16 = vsub.f32 %v4120_v48, %v4133_v50  ;;  %v4268_v48 = vpop.eup %3195 }
 0x2f0   : > { %1591 = vperm.xlu0 %3163, %v4245_v57   ;;  %1556 = vperm.xlu1 %3164, %v4243_v63   ;;  %v4273_v18 = vpop.eup %3197 }
 0x2f1   : > { %v1395_v55 = vmul.f32 1.442695, %v1379_v19  ;;  %v1293_v54 = vmul.f32 1.442695, %v4971_v16 }
 0x2f2   : > { %v1307_v60 = vpop.permute.xlu1 %1306 }
 0x2f3   : > { %v1380_v20 = vsub.f32 %v3863_v14, %v1307_v60  ;;  %3199 = vpow2.f32 %v1395_v55 }
 0x2f4   : > { %1601 = vperm.xlu0 %3163, %v4255_v12   ;;  %1566 = vperm.xlu1 %3164, %v4253_v47  }
 0x2f5   : > { %v1397_v41 = vmul.f32 1.442695, %v1380_v20 }
 0x2f6   : > { %v1317_v51 = vpop.permute.xlu1 %1316  ;;  %v1327_v9 = vpop.permute.xlu0 %1326 }
 0x2f7   : > { %3201 = vpow2.f32 %v1397_v41  ;;  %v1382_v45 = vsub.f32 %v3875_v22, %v1317_v51  ;;  %v1384_v14 = vsub.f32 %v3892_v36, %v1327_v9 }
 0x2f8   : > { %1576 = vperm.xlu1 %3164, %v4263_v32   ;;  %3203 = vpow2.f32 %v1293_v54 }
 0x2f9   : > { %v1401_v42 = vmul.f32 1.442695, %v1382_v45  ;;  %v1405_v43 = vmul.f32 1.442695, %v1384_v14 }
 0x2fa   : > { %v1322_v31 = vpop.permute.xlu1 %1321  ;;  %v1312_v44 = vpop.permute.xlu0 %1311 }
 0x2fb   : > { %v1383_v50 = vsub.f32 %v3905_v6, %v1322_v31  ;;  %v1381_v62 = vsub.f32 %v3878_v25, %v1312_v44  ;;  %3205 = vpow2.f32 %v1401_v42 }
 0x2fc   : > { %1586 = vperm.xlu1 %3164, %v4268_v48   ;;  %3207 = vpow2.f32 %v1405_v43 }
 0x2fd   : > { %v1403_v46 = vmul.f32 1.442695, %v1383_v50  ;;  %v1399_v22 = vmul.f32 1.442695, %v1381_v62  ;;  %v4276_v59 = vpop.eup %3199 }
 0x2fe   : > { %v1337_v36 = vpop.permute.xlu1 %1336 }
 0x2ff   : > { %3209 = vpow2.f32 %v1403_v46  ;;  %v1386_v26 = vsub.f32 %v3927_v29, %v1337_v36 }
 0x300   : > { %3211 = vpow2.f32 %v1399_v22  ;;  %1596 = vperm.xlu1 %3164, %v4273_v18  }
 0x301   : > { %v3202_v6 = vpop.eup %3201  ;;  %v1409_v11 = vmul.f32 1.442695, %v1386_v26 }
 0x302   : > { %v1332_v25 = vpop.permute.xlu1 %1331  ;;  %v1635_v49 = vpack.c.bf16 %v3202_v6, %v4276_v59  ;;  %v4280_v28 = vpop.eup %3203 }
 0x303   : > { %v1385_v30 = vsub.f32 %v3941_v61, %v1332_v25  ;;  %3213 = vpow2.f32 %v1409_v11 }
 0x304   : > { %2962 = vmatprep.mubr.bf16.mxu0 %v1635_v49  ;;  %1606 = vperm.xlu1 %3164, %v4280_v28   ;;  %v916_v49 = vld [vmem:[#allocation5] sm:$0xff] }
 0x305   : > { %v1407_v4 = vmul.f32 1.442695, %v1385_v30  ;;  %v3206_v5 = vpop.eup %3205  ;;  %v4973_v30 = vld [vmem:[#allocation43_spill] sm:$0xff] }
 0x306   : > { %v1347_v29 = vpop.permute.xlu1 %1346  ;;  %v3208_v40 = vpop.eup %3207 }
 0x307   : > { %3215 = vpow2.f32 %v1407_v4  ;;  %v1388_v39 = vsub.f32 %v3955_v24, %v1347_v29  ;;  %v1362_v23 = vpop.permute.xlu0 %1361  ;;  %v4974_v4 = vld [vmem:[#allocation44_spill] sm:$0xff] }
 0x308   : > { %v1391_v55 = vsub.f32 %v3957_v38, %v1362_v23  ;;  %v4975_v29 = vsub.f32 %v4973_v30, %v4974_v4  ;;  %v928_v4 = vld [vmem:[#allocation5 + $0x60] sm:$0xff] }
 0x309   : > { %v4285_v8 = vpop.eup %3209  ;;  %v1413_v58 = vmul.f32 1.442695, %v1388_v39 }
 0x30a   : > { %v3212_v35 = vpop.eup %3211  ;;  %v1342_v3 = vpop.permute.xlu1 %1341  ;;  %v1637_v15 = vpack.c.bf16 %v3208_v40, %v4285_v8  ;;  %v1419_v51 = vmul.f32 1.442695, %v1391_v55 }
 0x30b   : > { %v1387_v61 = vsub.f32 %v3925_v27, %v1342_v3  ;;  %v1636_v56 = vpack.c.bf16 %v3206_v5, %v3212_v35  ;;  %3217 = vpow2.f32 %v1413_v58  ;;  %v1372_v54 = vpop.permute.xlu0 %1371  ;;  %v918_v58 = vld [vmem:[#allocation5 + $0x10] sm:$0xff]  ;;  %v919_v3 = vld [vmem:[#allocation5 + $0x18] sm:$0xff] }
 0x30c   : > { %2966 = vmatprep.mubr.bf16.mxu1 %v1637_v15  ;;  %v1393_v9 = vsub.f32 %v3969_v33, %v1372_v54  ;;  %v917_v54 = vld [vmem:[#allocation5 + $0x8] sm:$0xff] }
 0x30d   : > { %v1411_v52 = vmul.f32 1.442695, %v1387_v61  ;;  %2963 = vmatmul.mubr.bf16.vlgmr.msra.gmra.mrb[16].mxu0 %v1636_v56  ;;  %v3214_v34 = vpop.eup %3213  ;;  %v921_v61 = vld [vmem:[#allocation5 + $0x28] sm:$0xff] }
 0x30e   : > { %v1357_v19 = vpop.permute.xlu1 %1356  ;;  %v1423_v43 = vmul.f32 1.442695, %v1393_v9 }
 0x30f   : > { %3219 = vpow2.f32 %v1411_v52  ;;  %v1390_v24 = vsub.f32 %v3967_v13, %v1357_v19  ;;  %v923_v19 = vld [vmem:[#allocation5 + $0x38] sm:$0xff] }
 0x311   : > { %v3216_v53 = vpop.eup %3215  ;;  %v1417_v60 = vmul.f32 1.442695, %v1390_v24  ;;  %v4976_v24 = vld [vmem:[#allocation45_spill] sm:$0xff] }
 0x312   : > { %v1352_v20 = vpop.permute.xlu1 %1351  ;;  %v1638_v16 = vpack.c.bf16 %v3214_v34, %v3216_v53 }
 0x313   : > { %v1389_v27 = vsub.f32 %v3945_v10, %v1352_v20  ;;  %1461 = vadd.xlane.f32.xlu0 %v3202_v6  ;;  %3221 = vpow2.f32 %v1417_v60  ;;  %v4972_v10 = vld [vmem:[#allocation42_spill] sm:$0xff] }
 0x314   : > { %2967 = vmatmul.mubr.bf16.vlgmr.msra.gmra.mrb[0].mxu1 %v1638_v16  ;;  %v925_v16 = vld [vmem:[#allocation5 + $0x48] sm:$0xff] }
 0x315   : > { %v1415_v41 = vmul.f32 1.442695, %v1389_v27  ;;  %v3218_v14 = vpop.eup %3217 }
 0x316   : > { %v1367_v45 = vpop.permute.xlu1 %1366 }
 0x317   : > { %3223 = vpow2.f32 %v1415_v41  ;;  %v1392_v13 = vsub.f32 %v3976_v21, %v1367_v45  ;;  %1465 = vadd.xlane.f32.xlu0 %v3206_v5  ;;  %v1295_v5 = vmul.f32 1.442695, %v4975_v29  ;;  %v927_v45 = vld [vmem:[#allocation5 + $0x58] sm:$0xff] }
 0x318   : > { %3225 = vpow2.f32 %v1419_v51 }
 0x319   : > { %v3220_v38 = vpop.eup %3219  ;;  %v1421_v42 = vmul.f32 1.442695, %v1392_v13  ;;  %v920_v13 = vld [vmem:[#allocation5 + $0x20] sm:$0xff] }
 0x31a   : > { %v1377_v31 = vpop.permute.xlu1 %1376  ;;  %v1639_v44 = vpack.c.bf16 %v3218_v14, %v3220_v38 }
 0x31b   : > { %3227 = vpow2.f32 %v1421_v42  ;;  %v1394_v50 = vsub.f32 %v4972_v10, %v1377_v31  ;;  %1469 = vadd.xlane.f32.xlu0 %v3208_v40  ;;  %v929_v31 = vld [vmem:[#allocation5 + $0x68] sm:$0xff] }
 0x31c   : > { %2970 = vmatprep.mubr.bf16.mxu1 %v1639_v44  ;;  %3229 = vpow2.f32 %v1423_v43  ;;  %v922_v44 = vld [vmem:[#allocation5 + $0x30] sm:$0xff] }
 0x31d   : > { %v1425_v62 = vmul.f32 1.442695, %v1394_v50  ;;  %v3222_v33 = vpop.eup %3221 }
 0x31f   : > { %3231 = vpow2.f32 %v1425_v62  ;;  %1473 = vadd.xlane.f32.xlu0 %v3214_v34  ;;  %v4977_v34 = vld [vmem:[#allocation46_spill] sm:$0xff] }
 0x320   : > { %3233 = vpow2.f32 %v1295_v5 }
 0x321   : > { %v3224_v46 = vpop.eup %3223 }
 0x322   : > { %v1640_v21 = vpack.c.bf16 %v3222_v33, %v3224_v46  ;;  %v3226_v22 = vpop.eup %3225 }
 0x323   : > { %1477 = vadd.xlane.f32.xlu0 %v3218_v14 }
 0x324   : > { %2971 = vmatmul.mubr.bf16.gmra.mrb[4].mxu1 %v1640_v21  ;;  %v931_v21 = vld [vmem:[#allocation5 + $0x78] sm:$0xff] }
 0x325   : > { %v3228_v36 = vpop.eup %3227 }
 0x326   : > { %v1641_v26 = vpack.c.bf16 %v3228_v36, %v3226_v22  ;;  %v3230_v6 = vpop.eup %3229 }
 0x327   : > { %1481 = vadd.xlane.f32.xlu0 %v3222_v33 }
 0x328   : > { %1459 = vadd.xlane.f32.xlu1 %v4276_v59  ;;  %2974 = vmatprep.mubr.bf16.mxu1 %v1641_v26 }
 0x329   : > { %v3232_v11 = vpop.eup %3231 }
 0x32a   : > { %v1642_v25 = vpack.c.bf16 %v3232_v11, %v3230_v6  ;;  %v4303_v23 = vpop.eup %3233 }
 0x32b   : > { %1485 = vadd.xlane.f32.xlu0 %v3228_v36 }
 0x32c   : > { %1463 = vadd.xlane.f32.xlu1 %v3212_v35  ;;  %2975 = vmatmul.mubr.bf16.gmra.mrb[8].mxu1 %v1642_v25  ;;  %v926_v25 = vld [vmem:[#allocation5 + $0x50] sm:$0xff] }
 0x32f   : > { %1489 = vadd.xlane.f32.xlu0 %v3232_v11 }
 0x330   : > { %1467 = vadd.xlane.f32.xlu1 %v4285_v8 }
 0x334   : > { %1471 = vadd.xlane.f32.xlu1 %v3216_v53  ;;  %v4978_v53 = vsub.f32 %v4976_v24, %v4977_v34  ;;  %v1428_v34 = vld [vmem:[#allocation3 + $0x8] sm:$0xff] }
 0x336   : > { %v1297_v55 = vmul.f32 1.442695, %v4978_v53 }
 0x337   : > { %v956_v39 = vpop.xlane.xlu0 %955 }
 0x338   : > { %1475 = vadd.xlane.f32.xlu1 %v3220_v38  ;;  %v987_v40 = vadd.f32 %v956_v39, %v916_v49  ;;  %3235 = vpow2.f32 %v1297_v55  ;;  %v930_v39 = vld [vmem:[#allocation5 + $0x70] sm:$0xff]  ;;  %v1444_v55 = vmul.f32 %v4207_v37, %v1428_v34 }
 0x33a   : > { %1004 = vst.msk [vmem:[#allocation5] sm:$0xff] %vm1003_vm4, %v987_v40 }
 0x33b   : > { %v960_v59 = vpop.xlane.xlu0 %959 }
 0x33c   : > { %1479 = vadd.xlane.f32.xlu1 %v3224_v46  ;;  %v989_v35 = vadd.f32 %v960_v59, %v918_v58 }
 0x33e   : > { %1006 = vst.msk [vmem:[#allocation5 + $0x10] sm:$0xff] %vm1003_vm4, %v989_v35 }
 0x33f   : > { %v962_v8 = vpop.xlane.xlu0 %961 }
 0x340   : > { %1483 = vadd.xlane.f32.xlu1 %v3226_v22  ;;  %v990_v15 = vadd.f32 %v962_v8, %v919_v3  ;;  %v924_v22 = vld [vmem:[#allocation5 + $0x40] sm:$0xff] }
 0x342   : > { %1007 = vst.msk [vmem:[#allocation5 + $0x18] sm:$0xff] %vm1003_vm4, %v990_v15  ;;  %v4315_v50 = vpop.eup %3235 }
 0x343   : > { %v966_v56 = vpop.xlane.xlu0 %965 }
 0x344   : > { %1487 = vadd.xlane.f32.xlu1 %v3230_v6  ;;  %v992_v52 = vadd.f32 %v966_v56, %v921_v61 }
 0x345   : > { %1611 = vperm.xlu0 %3163, %v4303_v23  }
 0x346   : > { %1009 = vst.msk [vmem:[#allocation5 + $0x28] sm:$0xff] %vm1003_vm4, %v992_v52 }
 0x347   : > { %v970_v60 = vpop.xlane.xlu0 %969 }
 0x348   : > { %v994_v20 = vadd.f32 %v970_v60, %v923_v19 }
 0x34a   : > { %1011 = vst.msk [vmem:[#allocation5 + $0x38] sm:$0xff] %vm1003_vm4, %v994_v20  ;;  %v1430_v20 = vld [vmem:[#allocation3 + $0x18] sm:$0xff] }
 0x34b   : > { %v974_v27 = vpop.xlane.xlu0 %973 }
 0x34c   : > { %v958_v41 = vpop.xlane.xlu1 %957  ;;  %v996_v51 = vadd.f32 %v974_v27, %v925_v16 }
 0x34d   : > { %v988_v9 = vadd.f32 %v958_v41, %v917_v54  ;;  %v1446_v54 = vmul.f32 %v4243_v63, %v1430_v20  ;;  %v1432_v41 = vld [vmem:[#allocation3 + $0x28] sm:$0xff] }
 0x34e   : > { %1013 = vst.msk [vmem:[#allocation5 + $0x48] sm:$0xff] %vm1003_vm4, %v996_v51  ;;  %v1436_v63 = vld [vmem:[#allocation3 + $0x48] sm:$0xff] }
 0x34f   : > { %1005 = vst.msk [vmem:[#allocation5 + $0x8] sm:$0xff] %vm1003_vm4, %v988_v9  ;;  %v978_v14 = vpop.xlane.xlu0 %977 }
 0x350   : > { %v964_v38 = vpop.xlane.xlu1 %963  ;;  %v998_v42 = vadd.f32 %v978_v14, %v927_v45  ;;  %v1448_v45 = vmul.f32 %v4253_v47, %v1432_v41  ;;  %v1434_v14 = vld [vmem:[#allocation3 + $0x38] sm:$0xff]  ;;  %v1437_v41 = vld [vmem:[#allocation3 + $0x50] sm:$0xff] }
 0x351   : > { %v991_v43 = vadd.f32 %v964_v38, %v920_v13 }
 0x352   : > { %1015 = vst.msk [vmem:[#allocation5 + $0x58] sm:$0xff] %vm1003_vm4, %v998_v42  ;;  %v1450_v42 = vmul.f32 %v4263_v32, %v1434_v14 }
 0x353   : > { %1008 = vst.msk [vmem:[#allocation5 + $0x20] sm:$0xff] %vm1003_vm4, %v991_v43  ;;  %v982_v10 = vpop.xlane.xlu0 %981 }
 0x354   : > { %v968_v62 = vpop.xlane.xlu1 %967  ;;  %v1000_v33 = vadd.f32 %v982_v10, %v929_v31 }
 0x355   : > { %v993_v46 = vadd.f32 %v968_v62, %v922_v44  ;;  %1616 = vperm.xlu1 %3164, %v4315_v50   ;;  %v1452_v44 = vmul.f32 %v4268_v48, %v1436_v63  ;;  %v1438_v62 = vld [vmem:[#allocation3 + $0x58] sm:$0xff] }
 0x356   : > { %1017 = vst.msk [vmem:[#allocation5 + $0x68] sm:$0xff] %vm1003_vm4, %v1000_v33 }
 0x357   : > { %1010 = vst.msk [vmem:[#allocation5 + $0x30] sm:$0xff] %vm1003_vm4, %v993_v46  ;;  %v986_v36 = vpop.xlane.xlu0 %985  ;;  %v1427_v46 = vld [vmem:[#allocation3] sm:$0xff] }
 0x358   : > { %v972_v26 = vpop.xlane.xlu1 %971  ;;  %v1002_v6 = vadd.f32 %v986_v36, %v931_v21  ;;  %v1454_v21 = vmul.f32 %v4273_v18, %v1438_v62  ;;  %v1443_v32 = vmul.f32 %v4225_v2, %v1427_v46  ;;  %v1440_v36 = vld [vmem:[#allocation3 + $0x68] sm:$0xff] }
 0x359   : > { %v995_v11 = vadd.f32 %v972_v26, %v924_v22  ;;  %v1456_v48 = vmul.f32 %v4280_v28, %v1440_v36  ;;  %v1524_v62 = vld [vmem:[#allocation4 + $0x8] sm:$0xff] }
 0x35a   : > { %1019 = vst.msk [vmem:[#allocation5 + $0x78] sm:$0xff] %vm1003_vm4, %v1002_v6 }
 0x35b   : > { %1012 = vst.msk [vmem:[#allocation5 + $0x40] sm:$0xff] %vm1003_vm4, %v995_v11  ;;  %v1429_v11 = vld [vmem:[#allocation3 + $0x10] sm:$0xff] }
 0x35c   : > { %v976_v49 = vpop.xlane.xlu1 %975 }
 0x35d   : > { %v997_v30 = vadd.f32 %v976_v49, %v926_v25 }
 0x35f   : > { %1014 = vst.msk [vmem:[#allocation5 + $0x50] sm:$0xff] %vm1003_vm4, %v997_v30  ;;  %v4325_v59 = vpop.permute.xlu0 %1546  ;;  %v1445_v30 = vmul.f32 %v4234_v7, %v1429_v11 }
 0x360   : > { %v980_v29 = vpop.xlane.xlu1 %979  ;;  %v1620_v36 = vmul.f32 %v4325_v59, %v1524_v62 }
 0x361   : > { %v999_v5 = vadd.f32 %v980_v29, %v928_v4  ;;  %v1442_v4 = vld [vmem:[#allocation3 + $0x78] sm:$0xff] }
 0x362   : > { %v1458_v2 = vmul.f32 %v4315_v50, %v1442_v4 }
 0x363   : > { %1016 = vst.msk [vmem:[#allocation5 + $0x60] sm:$0xff] %vm1003_vm4, %v999_v5  ;;  %v4327_v35 = vpop.permute.xlu0 %1561  ;;  %v1431_v5 = vld [vmem:[#allocation3 + $0x20] sm:$0xff] }
 0x364   : > { %v984_v40 = vpop.xlane.xlu1 %983 }
 0x365   : > { %v1001_v58 = vadd.f32 %v984_v40, %v930_v39 }
 0x367   : > { %1018 = vst.msk [vmem:[#allocation5 + $0x70] sm:$0xff] %vm1003_vm4, %v1001_v58  ;;  %v4331_v8 = vpop.permute.xlu0 %1571  ;;  %v1447_v58 = vmul.f32 %v4216_v17, %v1431_v5 }
 0x368   : > { %v4329_v3 = vpop.permute.xlu1 %1541 }
 0x36b   : > { %v4335_v61 = vpop.permute.xlu0 %1581 }
 0x36c   : > { %v4333_v15 = vpop.permute.xlu1 %1551 }
 0x36f   : > { %v4339_v52 = vpop.permute.xlu0 %1591 }
 0x370   : > { %v4337_v56 = vpop.permute.xlu1 %1556 }
 0x373   : > { %v4343_v24 = vpop.permute.xlu0 %1601 }
 0x374   : > { %v4341_v19 = vpop.permute.xlu1 %1566 }
 0x378   : > { %v4345_v53 = vpop.permute.xlu1 %1576 }
 0x37c   : > { %v4350_v51 = vpop.permute.xlu1 %1586 }
 0x380   : > { %v4354_v37 = vpop.permute.xlu1 %1596 }
 0x384   : > { %v4360_v33 = vpop.permute.xlu1 %1606 }
 0x3a0   : > { %v1462_v60 = vpop.xlane.xlu0 %1461 }
 0x3a1   : > { %v1492_v16 = vadd.f32 %v1462_v60, %v1444_v55  ;;  %v1433_v55 = vld [vmem:[#allocation3 + $0x30] sm:$0xff] }
 0x3a2   : > { %v1449_v7 = vmul.f32 %v4227_v0, %v1433_v55  ;;  %v1532_v55 = vld [vmem:[#allocation4 + $0x48] sm:$0xff] }
 0x3a3   : > { %1508 = vst.msk [vmem:[#allocation3 + $0x8] sm:$0xff] %vm1003_vm4, %v1492_v16  ;;  %v1435_v16 = vld [vmem:[#allocation3 + $0x40] sm:$0xff] }
 0x3a4   : > { %v1466_v27 = vpop.xlane.xlu0 %1465  ;;  %v1451_v50 = vmul.f32 %v4236_v1, %v1435_v16 }
 0x3a5   : > { %v1494_v9 = vadd.f32 %v1466_v27, %v1446_v54 }
 0x3a7   : > { %1510 = vst.msk [vmem:[#allocation3 + $0x18] sm:$0xff] %vm1003_vm4, %v1494_v9  ;;  %v1453_v9 = vmul.f32 %v4245_v57, %v1437_v41  ;;  %v1523_v57 = vld [vmem:[#allocation4] sm:$0xff] }
 0x3a8   : > { %v1470_v13 = vpop.xlane.xlu0 %1469  ;;  %v1619_v46 = vmul.f32 %v4329_v3, %v1523_v57 }
 0x3a9   : > { %v1496_v38 = vadd.f32 %v1470_v13, %v1448_v45  ;;  %v1439_v13 = vld [vmem:[#allocation3 + $0x60] sm:$0xff] }
 0x3aa   : > { %v1455_v0 = vmul.f32 %v4255_v12, %v1439_v13  ;;  %v1535_v13 = vld [vmem:[#allocation4 + $0x60] sm:$0xff] }
 0x3ab   : > { %1512 = vst.msk [vmem:[#allocation3 + $0x28] sm:$0xff] %vm1003_vm4, %v1496_v38 }
 0x3ac   : > { %v1474_v43 = vpop.xlane.xlu0 %1473 }
 0x3ad   : > { %v1498_v31 = vadd.f32 %v1474_v43, %v1450_v42  ;;  %v1441_v42 = vld [vmem:[#allocation3 + $0x70] sm:$0xff] }
 0x3ae   : > { %v1457_v1 = vmul.f32 %v4303_v23, %v1441_v42 }
 0x3af   : > { %1514 = vst.msk [vmem:[#allocation3 + $0x38] sm:$0xff] %vm1003_vm4, %v1498_v31 }
 0x3b0   : > { %v1478_v10 = vpop.xlane.xlu0 %1477 }
 0x3b1   : > { %v1500_v47 = vadd.f32 %v1478_v10, %v1452_v44  ;;  %v1525_v44 = vld [vmem:[#allocation4 + $0x10] sm:$0xff]  ;;  %v1526_v10 = vld [vmem:[#allocation4 + $0x18] sm:$0xff] }
 0x3b3   : > { %1516 = vst.msk [vmem:[#allocation3 + $0x48] sm:$0xff] %vm1003_vm4, %v1500_v47  ;;  %v1621_v47 = vmul.f32 %v4333_v15, %v1525_v44 }
 0x3b4   : > { %v1482_v22 = vpop.xlane.xlu0 %1481 }
 0x3b5   : > { %v1502_v26 = vadd.f32 %v1482_v22, %v1454_v21  ;;  %v1460_v6 = vpop.xlane.xlu1 %1459  ;;  %v1622_v21 = vmul.f32 %v4337_v56, %v1526_v10  ;;  %v1528_v56 = vld [vmem:[#allocation4 + $0x28] sm:$0xff] }
 0x3b6   : > { %v1491_v25 = vadd.f32 %v1460_v6, %v1443_v32  ;;  %v1529_v6 = vld [vmem:[#allocation4 + $0x30] sm:$0xff]  ;;  %v1624_v5 = vmul.f32 %v4341_v19, %v1528_v56 }
 0x3b7   : > { %1518 = vst.msk [vmem:[#allocation3 + $0x58] sm:$0xff] %vm1003_vm4, %v1502_v26  ;;  %v1625_v3 = vmul.f32 %v4331_v8, %v1529_v6  ;;  %v4982_v6 = vld [vmem:[#allocation26_spill] sm:$0xff] (!%p2813_p9) }
 0x3b8   : > { %1507 = vst.msk [vmem:[#allocation3] sm:$0xff] %vm1003_vm4, %v1491_v25  ;;  %v1486_v49 = vpop.xlane.xlu0 %1485 }
 0x3b9   : > { %v1504_v29 = vadd.f32 %v1486_v49, %v1456_v48  ;;  %v1464_v18 = vpop.xlane.xlu1 %1463  ;;  %v1527_v48 = vld [vmem:[#allocation4 + $0x20] sm:$0xff]  ;;  %v1530_v49 = vld [vmem:[#allocation4 + $0x38] sm:$0xff] }
 0x3ba   : > { %v1493_v39 = vadd.f32 %v1464_v18, %v1445_v30  ;;  %v1623_v59 = vmul.f32 %v4327_v35, %v1527_v48  ;;  %v1626_v4 = vmul.f32 %v4345_v53, %v1530_v49  ;;  %v1533_v35 = vld [vmem:[#allocation4 + $0x50] sm:$0xff]  ;;  %v1534_v53 = vld [vmem:[#allocation4 + $0x58] sm:$0xff]  ;;  %v2027_v48 = vld [vmem:[#allocation5 + $0x20] sm:$0xff] (!%p2813_p9) }
 0x3bb   : > { %1520 = vst.msk [vmem:[#allocation3 + $0x68] sm:$0xff] %vm1003_vm4, %v1504_v29 }
 0x3bc   : > { %1509 = vst.msk [vmem:[#allocation3 + $0x10] sm:$0xff] %vm1003_vm4, %v1493_v39  ;;  %v1490_v40 = vpop.xlane.xlu0 %1489 }
 0x3bd   : > { %v1506_v28 = vadd.f32 %v1490_v40, %v1458_v2  ;;  %v1468_v34 = vpop.xlane.xlu1 %1467 }
 0x3be   : > { %v1495_v60 = vadd.f32 %v1468_v34, %v1447_v58  ;;  %v1629_v34 = vmul.f32 %v4339_v52, %v1533_v35 }
 0x3bf   : > { %1522 = vst.msk [vmem:[#allocation3 + $0x78] sm:$0xff] %vm1003_vm4, %v1506_v28  ;;  %v1531_v28 = vld [vmem:[#allocation4 + $0x40] sm:$0xff] }
 0x3c0   : > { %1511 = vst.msk [vmem:[#allocation3 + $0x20] sm:$0xff] %vm1003_vm4, %v1495_v60  ;;  %v1627_v19 = vmul.f32 %v4335_v61, %v1531_v28  ;;  %v1538_v61 = vld [vmem:[#allocation4 + $0x78] sm:$0xff] }
 0x3c1   : > { %v1472_v20 = vpop.xlane.xlu1 %1471  ;;  %v2034_v28 = vld [vmem:[#allocation5 + $0x58] sm:$0xff] (!%p2813_p9) }
 0x3c2   : > { %v1497_v54 = vadd.f32 %v1472_v20, %v1449_v7  ;;  %v1630_v7 = vmul.f32 %v4354_v37, %v1534_v53  ;;  %v2033_v53 = vld [vmem:[#allocation5 + $0x50] sm:$0xff] (!%p2813_p9) }
 0x3c4   : > { %1513 = vst.msk [vmem:[#allocation3 + $0x30] sm:$0xff] %vm1003_vm4, %v1497_v54  ;;  %v1628_v54 = vmul.f32 %v4350_v51, %v1532_v55 }
 0x3c5   : > { %v1476_v27 = vpop.xlane.xlu1 %1475 }
 0x3c6   : > { %v1499_v17 = vadd.f32 %v1476_v27, %v1451_v50 }
 0x3c8   : > { %1515 = vst.msk [vmem:[#allocation3 + $0x40] sm:$0xff] %vm1003_vm4, %v1499_v17 }
 0x3c9   : > { %v1480_v45 = vpop.xlane.xlu1 %1479 }
 0x3ca   : > { %v1501_v14 = vadd.f32 %v1480_v45, %v1453_v9  ;;  %v1537_v9 = vld [vmem:[#allocation4 + $0x70] sm:$0xff]  ;;  %v1612_v45 = vpop.permute.xlu0 %1611 }
 0x3cb   : > { %v1633_v51 = vmul.f32 %v1612_v45, %v1537_v9  ;;  %v2037_v9 = vld [vmem:[#allocation5 + $0x70] sm:$0xff] (!%p2813_p9)  ;;  %v4993_v45 = vld [vmem:[#allocation40_spill] sm:$0xff] (!%p2813_p9) }
 0x3cc   : > { %1517 = vst.msk [vmem:[#allocation3 + $0x50] sm:$0xff] %vm1003_vm4, %v1501_v14  ;;  %v1536_v14 = vld [vmem:[#allocation4 + $0x68] sm:$0xff] }
 0x3cd   : > { %v1484_v38 = vpop.xlane.xlu1 %1483 }
 0x3ce   : > { %v1503_v43 = vadd.f32 %v1484_v38, %v1455_v0  ;;  %v1631_v0 = vmul.f32 %v4343_v24, %v1535_v13  ;;  %v2025_v24 = vld [vmem:[#allocation5 + $0x10] sm:$0xff] (!%p2813_p9)  ;;  %v4994_v13 = vld [vmem:[#allocation41_spill] sm:$0xff] (!%p2813_p9) }
 0x3d0   : > { %1519 = vst.msk [vmem:[#allocation3 + $0x60] sm:$0xff] %vm1003_vm4, %v1503_v43 }
 0x3d1   : > { %v1488_v63 = vpop.xlane.xlu1 %1487 }
 0x3d2   : > { %v1505_v31 = vadd.f32 %v1488_v63, %v1457_v1  ;;  %v1632_v63 = vmul.f32 %v4360_v33, %v1536_v14  ;;  %v3451_v33 = vmov (!%p2813_p9), 0  }
 0x3d3   : > { %3238 = vset.pattern.permute.xlu1 (!%p2813_p9), %v3451_v33  ;;  %3237 = vset.pattern.permute.xlu0 (!%p2813_p9), %v3451_v33  ;;  %v4505_v33 = vld [vmem:[%s3659_s14 + $0x48] sm:$0xff] (!%p2813_p9) }
 0x3d4   : > { %1521 = vst.msk [vmem:[#allocation3 + $0x70] sm:$0xff] %vm1003_vm4, %v1505_v31  ;;  %vm2080_vm13 = vcmp.gt.f32.partialorder (!%p2813_p9), %v4505_v33, 0.0 }
 0x3d5   : > { %v1617_v37 = vpop.permute.xlu1 %1616 }
 0x3d6   : > { %v1634_v42 = vmul.f32 %v1617_v37, %v1538_v61  ;;  %v4476_v61 = vadd.f32 (!%p2813_p9), %v2037_v9, %v4994_v13 }
 0x3e0   : > { %v2964_v12 = vpop.f32.mrb[16].mxu0 }
 0x3e1   : > { %v1806_v22 = vadd.f32 %v2964_v12, %v1621_v47  ;;  %v1741_v32 = vpop.f32.mrb[17].mxu0  ;;  %v2023_v47 = vld [vmem:[#allocation5] sm:$0xff] (!%p2813_p9) }
 0x3e2   : > { %v1804_v23 = vadd.f32 %v1741_v32, %v1619_v46  ;;  %v2965_v26 = vpop.f32.mrb[18].mxu0  ;;  %v2026_v46 = vld [vmem:[#allocation5 + $0x18] sm:$0xff] (!%p2813_p9)  ;;  %v4979_v12 = vld [vmem:[#allocation29_spill] sm:$0xff] (!%p2813_p9) }
 0x3e3   : > { %1822 = vst.msk [vmem:[#allocation4 + $0x10] sm:$0xff] %vm690_vm2, %v1806_v22  ;;  %v1807_v11 = vadd.f32 %v2965_v26, %v1622_v21  ;;  %v1744_v25 = vpop.f32.mrb[19].mxu0  ;;  %v4417_v21 = vadd.f32 (!%p2813_p9), %v2025_v24, %v4979_v12  ;;  %v4980_v22 = vld [vmem:[#allocation27_spill] sm:$0xff] (!%p2813_p9)  ;;  %v4508_v12 = vld [vmem:[%s3659_s14 + $0x40] sm:$0xff] (!%p2813_p9) }
 0x3e4   : > { %1820 = vst.msk [vmem:[#allocation4] sm:$0xff] %vm690_vm2, %v1804_v23  ;;  %v1805_v15 = vadd.f32 %v1744_v25, %v1620_v36  ;;  %v4420_v32 = vadd.f32 (!%p2813_p9), %v2023_v47, %v4980_v22  ;;  %v2024_v36 = vld [vmem:[#allocation5 + $0x8] sm:$0xff] (!%p2813_p9)  ;;  %v4981_v23 = vld [vmem:[#allocation28_spill] sm:$0xff] (!%p2813_p9)  ;;  %v4502_v47 = vld [vmem:[%s3659_s14 + $0x30] sm:$0xff] (!%p2813_p9)  ;;  %vm2079_vm14 = vcmp.gt.f32.partialorder (!%p2813_p9), %v4508_v12, 0.0 }
 0x3e5   : > { %1823 = vst.msk [vmem:[#allocation4 + $0x18] sm:$0xff] %vm690_vm2, %v1807_v11  ;;  %2099 = vperm.xlu1 (!%p2813_p9), %3238, %v4417_v21   ;;  %v4425_v26 = vadd.f32 (!%p2813_p9), %v4981_v23, %v2026_v46  ;;  %v4428_v11 = vadd.f32 (!%p2813_p9), %v4982_v6, %v2024_v36  ;;  %v2028_v25 = vld [vmem:[#allocation5 + $0x28] sm:$0xff] (!%p2813_p9)  ;;  %v4511_v22 = vld [vmem:[%s3659_s14 + $0x58] sm:$0xff] (!%p2813_p9)  ;;  %v4516_v36 = vld [vmem:[%s3659_s14 + $0x50] sm:$0xff] (!%p2813_p9)  ;;  %vm2077_vm12 = vcmp.gt.f32.partialorder (!%p2813_p9), %v4502_v47, 0.0 }
 0x3e6   : > { %1821 = vst.msk [vmem:[#allocation4 + $0x8] sm:$0xff] %vm690_vm2, %v1805_v15  ;;  %2089 = vperm.xlu0 (!%p2813_p9), %3237, %v4420_v32   ;;  %v4983_v15 = vld [vmem:[#allocation30_spill] sm:$0xff] (!%p2813_p9)  ;;  %v4522_v6 = vld [vmem:[%s3659_s14 + $0x60] sm:$0xff] (!%p2813_p9)  ;;  %vm2082_vm15 = vcmp.gt.f32.partialorder (!%p2813_p9), %v4511_v22, 0.0  ;;  %vm2081_vm0 = vcmp.gt.f32.partialorder (!%p2813_p9), %v4516_v36, 0.0 }
 0x3e7   : > { %v2968_v30 = vpop.f32.mrb[0].mxu1  ;;  %v4433_v49 = vadd.f32 (!%p2813_p9), %v4983_v15, %v2028_v25  ;;  %v4519_v23 = vld [vmem:[%s3659_s14 + $0x68] sm:$0xff] (!%p2813_p9)  ;;  %v4529_v25 = vld [vmem:[%s3659_s14 + $0x78] sm:$0xff] (!%p2813_p9)  ;;  %vm2083_vm3 = vcmp.gt.f32.partialorder (!%p2813_p9), %v4522_v6, 0.0 }
 0x3e8   : > { %v1810_v29 = vadd.f32 %v2968_v30, %v1625_v3  ;;  %v1757_v18 = vpop.f32.mrb[1].mxu1  ;;  %v4984_v3 = vld [vmem:[#allocation31_spill] sm:$0xff] (!%p2813_p9)  ;;  %vm2084_vm1 = vcmp.gt.f32.partialorder (!%p2813_p9), %v4519_v23, 0.0  ;;  %vm2086_vm4 = vcmp.gt.f32.partialorder (!%p2813_p9), %v4529_v25, 0.0 }
 0x3e9   : > { %v1808_v39 = vadd.f32 %v1757_v18, %v1623_v59  ;;  %v2969_v2 = vpop.f32.mrb[2].mxu1  ;;  %2104 = vperm.xlu1 (!%p2813_p9), %3238, %v4425_v26   ;;  %v4436_v56 = vadd.f32 (!%p2813_p9), %v2027_v48, %v4984_v3  ;;  %v2030_v59 = vld [vmem:[#allocation5 + $0x38] sm:$0xff] (!%p2813_p9)  ;;  %v2029_v30 = vld [vmem:[#allocation5 + $0x30] sm:$0xff] (!%p2813_p9)  ;;  %v4986_v18 = vld [vmem:[#allocation33_spill] sm:$0xff] (!%p2813_p9) }
 0x3ea   : > { %1826 = vst.msk [vmem:[#allocation4 + $0x30] sm:$0xff] %vm690_vm2, %v1810_v29  ;;  %v1811_v40 = vadd.f32 %v2969_v2, %v1626_v4  ;;  %v1760_v58 = vpop.f32.mrb[3].mxu1  ;;  %2094 = vperm.xlu0 (!%p2813_p9), %3237, %v4428_v11   ;;  %v4985_v4 = vld [vmem:[#allocation32_spill] sm:$0xff] (!%p2813_p9)  ;;  %v2031_v2 = vld [vmem:[#allocation5 + $0x40] sm:$0xff] (!%p2813_p9)  ;;  %v4532_v48 = vld [vmem:[%s3659_s14 + $0x70] sm:$0xff] (!%p2813_p9) }
 0x3eb   : > { %1824 = vst.msk [vmem:[#allocation4 + $0x20] sm:$0xff] %vm690_vm2, %v1808_v39  ;;  %v1809_v8 = vadd.f32 %v1760_v58, %v1624_v5  ;;  %v4441_v29 = vadd.f32 (!%p2813_p9), %v4985_v4, %v2030_v59  ;;  %v4444_v5 = vadd.f32 (!%p2813_p9), %v2029_v30, %v4986_v18  ;;  %v2032_v39 = vld [vmem:[#allocation5 + $0x48] sm:$0xff] (!%p2813_p9)  ;;  %vm2085_vm5 = vcmp.gt.f32.partialorder (!%p2813_p9), %v4532_v48, 0.0 }
 0x3ec   : > { %1827 = vst.msk [vmem:[#allocation4 + $0x38] sm:$0xff] %vm690_vm2, %v1811_v40  ;;  %v4987_v40 = vld [vmem:[#allocation34_spill] sm:$0xff] (!%p2813_p9) }
 0x3ed   : > { %1825 = vst.msk [vmem:[#allocation4 + $0x28] sm:$0xff] %vm690_vm2, %v1809_v8  ;;  %2114 = vperm.xlu1 (!%p2813_p9), %3238, %v4433_v49   ;;  %v4449_v58 = vadd.f32 (!%p2813_p9), %v4987_v40, %v2032_v39  ;;  %v4988_v8 = vld [vmem:[#allocation35_spill] sm:$0xff] (!%p2813_p9) }
 0x3ee   : > { %2109 = vperm.xlu0 (!%p2813_p9), %3237, %v4436_v56   ;;  %v4452_v35 = vadd.f32 (!%p2813_p9), %v2031_v2, %v4988_v8 }
 0x3f1   : > { %2124 = vperm.xlu1 (!%p2813_p9), %3238, %v4441_v29  }
 0x3f2   : > { %2119 = vperm.xlu0 (!%p2813_p9), %3237, %v4444_v5  }
 0x3f5   : > { %2134 = vperm.xlu1 (!%p2813_p9), %3238, %v4449_v58  }
 0x3f6   : > { %2129 = vperm.xlu0 (!%p2813_p9), %3237, %v4452_v35  }
 0x3f7   : > { %v2972_v60 = vpop.f32.mrb[4].mxu1 }
 0x3f8   : > { %v1814_v20 = vadd.f32 %v2972_v60, %v1629_v34  ;;  %v1773_v16 = vpop.f32.mrb[5].mxu1  ;;  %v4989_v34 = vld [vmem:[#allocation36_spill] sm:$0xff] (!%p2813_p9) }
 0x3f9   : > { %v1812_v50 = vadd.f32 %v1773_v16, %v1627_v19  ;;  %v2973_v27 = vpop.f32.mrb[6].mxu1  ;;  %v4457_v55 = vadd.f32 (!%p2813_p9), %v4989_v34, %v2034_v28  ;;  %v4990_v19 = vld [vmem:[#allocation37_spill] sm:$0xff] (!%p2813_p9) }
 0x3fa   : > { %1830 = vst.msk [vmem:[#allocation4 + $0x50] sm:$0xff] %vm690_vm2, %v1814_v20  ;;  %v1815_v41 = vadd.f32 %v2973_v27, %v1630_v7  ;;  %v1776_v17 = vpop.f32.mrb[7].mxu1  ;;  %v4460_v60 = vadd.f32 (!%p2813_p9), %v2033_v53, %v4990_v19  ;;  %v1872_v7 = vld [vmem:[#allocation3] sm:$0xff] (!%p2813_p9)  ;;  %v2036_v20 = vld [vmem:[#allocation5 + $0x68] sm:$0xff] (!%p2813_p9)  ;;  %v4992_v27 = vld [vmem:[#allocation39_spill] sm:$0xff] (!%p2813_p9) }
 0x3fb   : > { %1828 = vst.msk [vmem:[#allocation4 + $0x40] sm:$0xff] %vm690_vm2, %v1812_v50  ;;  %v1813_v52 = vadd.f32 %v1776_v17, %v1628_v54  ;;  %v2035_v16 = vld [vmem:[#allocation5 + $0x60] sm:$0xff] (!%p2813_p9)  ;;  %3239 = vrcp.f32 (!%p2813_p9), %v1872_v7  ;;  %2144 = vperm.xlu1 (!%p2813_p9), %3238, %v4457_v55   ;;  %v4991_v54 = vld [vmem:[#allocation38_spill] sm:$0xff] (!%p2813_p9)  ;;  %v2038_v17 = vld [vmem:[#allocation5 + $0x78] sm:$0xff] (!%p2813_p9) }
 0x3fc   : > { %1831 = vst.msk [vmem:[#allocation4 + $0x58] sm:$0xff] %vm690_vm2, %v1815_v41  ;;  %2139 = vperm.xlu0 (!%p2813_p9), %3237, %v4460_v60   ;;  %v4465_v50 = vadd.f32 (!%p2813_p9), %v4991_v54, %v2036_v20  ;;  %v4468_v41 = vadd.f32 (!%p2813_p9), %v2035_v16, %v4992_v27 }
 0x3fd   : > { %1829 = vst.msk [vmem:[#allocation4 + $0x48] sm:$0xff] %vm690_vm2, %v1813_v52  ;;  %v4473_v52 = vadd.f32 (!%p2813_p9), %v4993_v45, %v2038_v17 }
 0x3ff   : > { %v2976_v38 = vpop.f32.mrb[8].mxu1  ;;  %1855 = sbr.rel (%p2813_p9) target bundleno = 1716 (0x6b4), region = 105  ;;  %2154 = vperm.xlu1 (!%p2813_p9), %3238, %v4465_v50  }
 0x400   : > { %v1818_v43 = vadd.f32 %v2976_v38, %v1633_v51  ;;  %v1789_v1 = vpop.f32.mrb[9].mxu1  ;;  %2149 = vperm.xlu0 (!%p2813_p9), %3237, %v4468_v41  }
 0x401   : > { %v1816_v31 = vadd.f32 %v1789_v1, %v1631_v0  ;;  %v2977_v44 = vpop.f32.mrb[10].mxu1  ;;  %v4481_v1 = vld [vmem:[%s3659_s14 + $0x10] sm:$0xff] (!%p2813_p9) }
 0x402   : > { %1834 = vst.msk [vmem:[#allocation4 + $0x70] sm:$0xff] %vm690_vm2, %v1818_v43  ;;  %v1819_v57 = vadd.f32 %v2977_v44, %v1634_v42  ;;  %v1792_v10 = vpop.f32.mrb[11].mxu1  ;;  %v4490_v44 = vld [vmem:[%s3659_s14 + $0x8] sm:$0xff] (!%p2813_p9) }
 0x403   : > { %1832 = vst.msk [vmem:[#allocation4 + $0x60] sm:$0xff] %vm690_vm2, %v1816_v31  ;;  %v1817_v62 = vadd.f32 %v1792_v10, %v1632_v63  ;;  %2164 = vperm.xlu1 (!%p2813_p9), %3238, %v4473_v52   ;;  %v4484_v63 = vld [vmem:[%s3659_s14] sm:$0xff] (!%p2813_p9)  ;;  %v4487_v31 = vld [vmem:[%s3659_s14 + $0x18] sm:$0xff] (!%p2813_p9)  ;;  %vm2072_vm8 = vcmp.gt.f32.partialorder (!%p2813_p9), %v4490_v44, 0.0 }
 0x404   : > { %1835 = vst.msk [vmem:[#allocation4 + $0x78] sm:$0xff] %vm690_vm2, %v1819_v57  ;;  %2159 = vperm.xlu0 (!%p2813_p9), %3237, %v4476_v61   ;;  %v4493_v57 = vld [vmem:[%s3659_s14 + $0x28] sm:$0xff] (!%p2813_p9)  ;;  %v4496_v10 = vld [vmem:[%s3659_s14 + $0x20] sm:$0xff] (!%p2813_p9)  ;;  %vm2071_vm6 = vcmp.gt.f32.partialorder (!%p2813_p9), %v4484_v63, 0.0  ;;  %vm2074_vm7 = vcmp.gt.f32.partialorder (!%p2813_p9), %v4487_v31, 0.0 }
 0x405   : > { %1833 = vst.msk [vmem:[#allocation4 + $0x68] sm:$0xff] %vm690_vm2, %v1817_v62  ;;  %v3240_v37 = vpop.eup (!%p2813_p9), %3239  ;;  %v4499_v62 = vld [vmem:[%s3659_s14 + $0x38] sm:$0xff] (!%p2813_p9)  ;;  %vm2073_vm2 = vcmp.gt.f32.partialorder (!%p2813_p9), %v4481_v1, 0.0  ;;  %vm2076_vm9 = vcmp.gt.f32.partialorder (!%p2813_p9), %v4493_v57, 0.0  ;;  %vm2075_vm10 = vcmp.gt.f32.partialorder (!%p2813_p9), %v4496_v10, 0.0 }
 0x406   : > { %vm2078_vm11 = vcmp.gt.f32.partialorder %v4499_v62, 0.0 }
 0x407   : > { %1906 = vperm.xlu1 %3238, %v3240_v37  }
 0x464   : > { %v2100_v14 = vpop.permute.xlu1 %2099 }
 0x465   : > { %v2090_v51 = vpop.permute.xlu0 %2089  ;;  %v2169_v4 = vsel %vm2073_vm2, %v2100_v14, -1e+30 }
 0x466   : > { %v2167_v18 = vsel %vm2071_vm6, %v2090_v51, -1e+30 }
 0x468   : > { %v2105_v0 = vpop.permute.xlu1 %2104 }
 0x469   : > { %v2095_v38 = vpop.permute.xlu0 %2094  ;;  %v2170_v39 = vsel %vm2074_vm7, %v2105_v0, -1e+30 }
 0x46a   : > { %v2168_v2 = vsel %vm2072_vm8, %v2095_v38, -1e+30 }
 0x46c   : > { %v2115_v42 = vpop.permute.xlu1 %2114 }
 0x46d   : > { %v2110_v43 = vpop.permute.xlu0 %2109  ;;  %v2172_v59 = vsel %vm2076_vm9, %v2115_v42, -1e+30  ;;  %vm4995_vm9 = vcmask 15360  }
 0x46e   : > { %v2171_v30 = vsel %vm2075_vm10, %v2110_v43, -1e+30  ;;  %v2190_v34 = vsel %vm4995_vm9, %v2172_v59, -inf  ;;  %vm4996_vm2 = vmmov %vm4995_vm9 }
 0x46f   : > { %v2188_v19 = vsel %vm4996_vm2, %v2171_v30, -inf  ;;  %vm4997_vm6 = vmmov %vm4996_vm2 }
 0x470   : > { %v2125_v24 = vpop.permute.xlu1 %2124  ;;  %v2186_v16 = vsel %vm4997_vm6, %v2169_v4, -inf  ;;  %vm4998_vm7 = vmmov %vm4996_vm2 }
 0x471   : > { %v2120_v46 = vpop.permute.xlu0 %2119  ;;  %v2174_v40 = vsel %vm2078_vm11, %v2125_v24, -1e+30  ;;  %v2184_v54 = vsel %vm4998_vm7, %v2167_v18, -inf  ;;  %vm4999_vm8 = vmmov %vm4996_vm2 }
 0x472   : > { %v2173_v8 = vsel %vm2077_vm12, %v2120_v46, -1e+30  ;;  %v2187_v9 = vsel %vm4999_vm8, %v2170_v39, -inf  ;;  %vm5000_vm10 = vmmov %vm4996_vm2  ;;  %v2189_v51 = vmax.f32 %v2184_v54, %v2188_v19 }
 0x473   : > { %v2185_v45 = vsel %vm5000_vm10, %v2168_v2, -inf  ;;  %vm5001_vm11 = vmmov %vm4996_vm2 }
 0x474   : > { %v2135_v15 = vpop.permute.xlu1 %2134  ;;  %v2194_v13 = vsel %vm5001_vm11, %v2174_v40, -inf  ;;  %vm5002_vm12 = vmmov %vm4996_vm2  ;;  %v2191_v14 = vmax.f32 %v2185_v45, %v2190_v34 }
 0x475   : > { %v2130_v3 = vpop.permute.xlu0 %2129  ;;  %v2176_v7 = vsel %vm2080_vm13, %v2135_v15, -1e+30  ;;  %v2192_v37 = vsel %vm5002_vm12, %v2173_v8, -inf  ;;  %vm5003_vm13 = vmmov %vm4996_vm2  ;;  %v2195_v59 = vmax.f32 %v2187_v9, %v2194_v13 }
 0x476   : > { %v2175_v20 = vsel %vm2079_vm14, %v2130_v3, -1e+30  ;;  %v2198_v0 = vsel %vm5003_vm13, %v2176_v7, -inf  ;;  %vm5004_vm14 = vmmov %vm4996_vm2  ;;  %v2193_v30 = vmax.f32 %v2186_v16, %v2192_v37 }
 0x477   : > { %v2196_v38 = vsel %vm5004_vm14, %v2175_v20, -inf  ;;  %vm5006_vm9 = vmmov %vm4996_vm2  ;;  %v2199_v39 = vmax.f32 %v2191_v14, %v2198_v0 }
 0x478   : > { %v2197_v2 = vmax.f32 %v2189_v51, %v2196_v38 }
 0x47a   : > { %v2145_v28 = vpop.permute.xlu1 %2144 }
 0x47b   : > { %v2140_v53 = vpop.permute.xlu0 %2139  ;;  %v2178_v27 = vsel %vm2082_vm15, %v2145_v28, -1e+30  ;;  %vm5005_vm15 = vmmov %vm4996_vm2 }
 0x47c   : > { %v2177_v17 = vsel %vm2081_vm0, %v2140_v53, -1e+30  ;;  %v2202_v24 = vsel %vm5005_vm15, %v2178_v27, -inf  ;;  %vm5007_vm0 = vmmov %vm4996_vm2 }
 0x47d   : > { %v2200_v46 = vsel %vm5006_vm9, %v2177_v17, -inf  ;;  %vm5008_vm2 = vmmov %vm5007_vm0  ;;  %v2203_v40 = vmax.f32 %v2195_v59, %v2202_v24 }
 0x47e   : > { %v2155_v42 = vpop.permute.xlu1 %2154  ;;  %v2201_v8 = vmax.f32 %v2193_v30, %v2200_v46  ;;  %vm5013_vm6 = vmmov %vm5007_vm0 }
 0x47f   : > { %v2150_v43 = vpop.permute.xlu0 %2149  ;;  %v2180_v15 = vsel %vm2084_vm1, %v2155_v42, -1e+30  ;;  %vm5009_vm1 = vmmov %vm5007_vm0 }
 0x480   : > { %v2179_v3 = vsel %vm2083_vm3, %v2150_v43, -1e+30  ;;  %v2206_v4 = vsel %vm5007_vm0, %v2180_v15, -inf  ;;  %vm5010_vm3 = vmmov %vm5007_vm0 }
 0x481   : > { %v2204_v18 = vsel %vm5008_vm2, %v2179_v3, -inf  ;;  %v2207_v34 = vmax.f32 %v2199_v39, %v2206_v4  ;;  %vm5014_vm7 = vmmov %vm5007_vm0 }
 0x482   : > { %v2165_v28 = vpop.permute.xlu1 %2164  ;;  %v2205_v19 = vmax.f32 %v2197_v2, %v2204_v18  ;;  %vm5015_vm8 = vmmov %vm5007_vm0 }
 0x483   : > { %v2160_v53 = vpop.permute.xlu0 %2159  ;;  %v2182_v7 = vsel %vm2086_vm4, %v2165_v28, -1e+30  ;;  %vm5012_vm4 = vmmov %vm5007_vm0 }
 0x484   : > { %v2181_v20 = vsel %vm2085_vm5, %v2160_v53, -1e+30  ;;  %v2210_v16 = vsel %vm5009_vm1, %v2182_v7, -inf  ;;  %v2212_v9 = vmax.f32 %v2205_v19, %v2207_v34  ;;  %vm5011_vm5 = vmmov %vm5007_vm0 }
 0x485   : > { %v2208_v54 = vsel %vm5010_vm3, %v2181_v20, -inf  ;;  %v2211_v27 = vmax.f32 %v2203_v40, %v2210_v16  ;;  %vm5016_vm10 = vmmov %vm5007_vm0 }
 0x486   : > { %v2209_v17 = vmax.f32 %v2201_v8, %v2208_v54  ;;  %vm5017_vm11 = vmmov %vm5007_vm0 }
 0x487   : > { %vm5018_vm12 = vmmov %vm5007_vm0 }
 0x488   : > { %v2213_v45 = vmax.f32 %v2209_v17, %v2211_v27  ;;  %vm5019_vm13 = vmmov %vm5007_vm0 }
 0x489   : > { %vm5020_vm14 = vmmov %vm5007_vm0 }
 0x48a   : > { %v2214_v13 = vmax.f32 %v2212_v9, %v2213_v45  ;;  %vm5021_vm15 = vmmov %vm5007_vm0 }
 0x48b   : > { %vm5022_vm9 = vmmov %vm5007_vm0 }
 0x48c   : > { %v2215_v37 = vrot.slane %v2214_v13, 4  ;;  %vm5023_vm2 = vmmov %vm5007_vm0 }
 0x48d   : > { %vm5024_vm1 = vmmov %vm5007_vm0 }
 0x48e   : > { %v2216_v14 = vmax.f32 %v2214_v13, %v2215_v37  ;;  %vm5025_vm3 = vmmov %vm5007_vm0 }
 0x490   : > { %v2217_v51 = vrot.slane %v2216_v14, 2 }
 0x492   : > { %v2218_v0 = vmax.f32 %v2216_v14, %v2217_v51 }
 0x494   : > { %v2219_v38 = vrot.slane %v2218_v0, 1 }
 0x496   : > { %v4588_v42 = vmax.f32 %v2218_v0, %v2219_v38  ;;  %v1874_v0 = vld [vmem:[#allocation3 + $0x10] sm:$0xff] }
 0x497   : > { %3241 = vrcp.f32 %v1874_v0 }
 0x498   : > { %v2221_v43 = vmul.f32 %v4588_v42, %v4484_v63  ;;  %v2222_v24 = vmul.f32 %v4588_v42, %v4490_v44  ;;  %v2223_v3 = vmul.f32 %v4588_v42, %v4481_v1  ;;  %v2225_v59 = vmul.f32 %v4588_v42, %v4496_v10 }
 0x499   : > { %v2224_v18 = vmul.f32 %v4588_v42, %v4487_v31  ;;  %v2227_v39 = vmul.f32 %v4588_v42, %v4502_v47  ;;  %v2226_v8 = vmul.f32 %v4588_v42, %v4493_v57  ;;  %v2229_v28 = vmul.f32 %v4588_v42, %v4508_v12 }
 0x49a   : > { %v2237_v46 = vsel %vm5011_vm5, %v2221_v43, 0.0  ;;  %v2240_v15 = vsel %vm5012_vm4, %v2222_v24, 0.0  ;;  %v2243_v30 = vsel %vm5013_vm6, %v2223_v3, 0.0  ;;  %v2249_v4 = vsel %vm5014_vm7, %v2225_v59, 0.0  ;;  %v1875_v24 = vld [vmem:[#allocation3 + $0x18] sm:$0xff]  ;;  %vm5026_vm4 = vmmov %vm5007_vm0 }
 0x49b   : > { %2238 = vadd.xlane.f32.xlu0 %v2237_v46  ;;  %2241 = vadd.xlane.f32.xlu1 %v2240_v15  ;;  %v2246_v2 = vsel %vm5015_vm8, %v2224_v18, 0.0  ;;  %v2255_v40 = vsel %vm5016_vm10, %v2227_v39, 0.0  ;;  %v2252_v53 = vsel %vm5017_vm11, %v2226_v8, 0.0  ;;  %v2261_v34 = vsel %vm5018_vm12, %v2229_v28, 0.0  ;;  %v1877_v15 = vld [vmem:[#allocation3 + $0x28] sm:$0xff]  ;;  %v1879_v3 = vld [vmem:[#allocation3 + $0x38] sm:$0xff]  ;;  %vm5027_vm6 = vmmov %vm5007_vm0 }
 0x49c   : > { %v2228_v19 = vmul.f32 %v4588_v42, %v4499_v62  ;;  %v2231_v7 = vmul.f32 %v4588_v42, %v4516_v36  ;;  %v2230_v54 = vmul.f32 %v4588_v42, %v4505_v33  ;;  %v2233_v27 = vmul.f32 %v4588_v42, %v4522_v6  ;;  %v1876_v39 = vld [vmem:[#allocation3 + $0x20] sm:$0xff]  ;;  %v1878_v8 = vld [vmem:[#allocation3 + $0x30] sm:$0xff]  ;;  %v1885_v28 = vld [vmem:[#allocation3 + $0x68] sm:$0xff] }
 0x49d   : > { %v2232_v45 = vmul.f32 %v4588_v42, %v4511_v22  ;;  %v2235_v13 = vmul.f32 %v4588_v42, %v4532_v48  ;;  %v2234_v51 = vmul.f32 %v4588_v42, %v4519_v23  ;;  %v2236_v43 = vmul.f32 %v4588_v42, %v4529_v25  ;;  %vm5028_vm7 = vmmov %vm5007_vm0 }
 0x49e   : > { %v2258_v20 = vsel %vm5019_vm13, %v2228_v19, 0.0  ;;  %v2267_v16 = vsel %vm5020_vm14, %v2231_v7, 0.0  ;;  %v2264_v17 = vsel %vm5021_vm15, %v2230_v54, 0.0  ;;  %v2273_v9 = vsel %vm5022_vm9, %v2233_v27, 0.0  ;;  %v1887_v7 = vld [vmem:[#allocation3 + $0x78] sm:$0xff]  ;;  %vm5029_vm8 = vmmov %vm5007_vm0 }
 0x49f   : > { %2244 = vadd.xlane.f32.xlu0 %v2243_v30  ;;  %2250 = vadd.xlane.f32.xlu1 %v2249_v4  ;;  %v2270_v37 = vsel %vm5007_vm0, %v2232_v45, 0.0  ;;  %v2279_v14 = vsel %vm5023_vm2, %v2235_v13, 0.0  ;;  %v2276_v38 = vsel %vm5024_vm1, %v2234_v51, 0.0  ;;  %v2282_v46 = vsel %vm5025_vm3, %v2236_v43, 0.0  ;;  %v1873_v30 = vld [vmem:[#allocation3 + $0x8] sm:$0xff]  ;;  %v1886_v13 = vld [vmem:[#allocation3 + $0x70] sm:$0xff]  ;;  %v4638_v43 = vpop.permute.xlu1 %1906  ;;  %vm5030_vm10 = vmmov %vm5007_vm0 }
 0x4a0   : > { %3243 = vrcp.f32 %v1875_v24  ;;  %v1881_v4 = vld [vmem:[#allocation3 + $0x48] sm:$0xff]  ;;  %vm3453_vm5 = vmmov 0   ;;  %vm5031_vm11 = vmmov %vm5007_vm0 }
 0x4a1   : > { %3245 = vrcp.f32 %v1877_v15  ;;  %v3242_v59 = vpop.eup %3241  ;;  %vm5032_vm12 = vmmov %vm5007_vm0 }
 0x4a2   : > { %3247 = vrcp.f32 %v1879_v3  ;;  %vm5033_vm13 = vmmov %vm5007_vm0 }
 0x4a3   : > { %2247 = vadd.xlane.f32.xlu0 %v2246_v2  ;;  %2256 = vadd.xlane.f32.xlu1 %v2255_v40  ;;  %3249 = vrcp.f32 %v1873_v30  ;;  %v1883_v2 = vld [vmem:[#allocation3 + $0x58] sm:$0xff]  ;;  %vm5034_vm14 = vmmov %vm5007_vm0 }
 0x4a4   : > { %3251 = vrcp.f32 %v1881_v4  ;;  %vm5035_vm15 = vmmov %vm5007_vm0 }
 0x4a5   : > { %3253 = vrcp.f32 %v1876_v39  ;;  %vm5036_vm9 = vmmov %vm5007_vm0 }
 0x4a6   : > { %3255 = vrcp.f32 %v1883_v2  ;;  %vm5037_vm2 = vmmov %vm5007_vm0 }
 0x4a7   : > { %2253 = vadd.xlane.f32.xlu0 %v2252_v53  ;;  %2262 = vadd.xlane.f32.xlu1 %v2261_v34  ;;  %3257 = vrcp.f32 %v1878_v8  ;;  %v1880_v34 = vld [vmem:[#allocation3 + $0x40] sm:$0xff]  ;;  %vm5038_vm1 = vmmov %vm5007_vm0 }
 0x4a8   : > { %3259 = vrcp.f32 %v1885_v28  ;;  %vm5039_vm3 = vmmov %vm5007_vm0 }
 0x4a9   : > { %3261 = vrcp.f32 %v1880_v34 }
 0x4aa   : > { %v3244_v18 = vpop.eup %3243  ;;  %3263 = vrcp.f32 %v1887_v7 }
 0x4ab   : > { %2259 = vadd.xlane.f32.xlu0 %v2258_v20  ;;  %2268 = vadd.xlane.f32.xlu1 %v2267_v16  ;;  %v3246_v40 = vpop.eup %3245  ;;  %v1882_v16 = vld [vmem:[#allocation3 + $0x50] sm:$0xff] }
 0x4ac   : > { %v3248_v53 = vpop.eup %3247  ;;  %3265 = vrcp.f32 %v1882_v16 }
 0x4ad   : > { %v3250_v19 = vpop.eup %3249 }
 0x4ae   : > { %v3252_v20 = vpop.eup %3251 }
 0x4af   : > { %2265 = vadd.xlane.f32.xlu0 %v2264_v17  ;;  %2274 = vadd.xlane.f32.xlu1 %v2273_v9  ;;  %v3254_v54 = vpop.eup %3253  ;;  %v1884_v17 = vld [vmem:[#allocation3 + $0x60] sm:$0xff] }
 0x4b0   : > { %v3256_v27 = vpop.eup %3255  ;;  %3267 = vrcp.f32 %v1884_v17 }
 0x4b1   : > { %v3258_v9 = vpop.eup %3257  ;;  %3269 = vrcp.f32 %v1886_v13 }
 0x4b2   : > { %v3260_v45 = vpop.eup %3259 }
 0x4b3   : > { %2271 = vadd.xlane.f32.xlu0 %v2270_v37  ;;  %2280 = vadd.xlane.f32.xlu1 %v2279_v14  ;;  %v3262_v37 = vpop.eup %3261 }
 0x4b4   : > { %v3264_v14 = vpop.eup %3263 }
 0x4b6   : > { %v3266_v51 = vpop.eup %3265 }
 0x4b7   : > { %2277 = vadd.xlane.f32.xlu0 %v2276_v38 }
 0x4ba   : > { %v3268_v0 = vpop.eup %3267 }
 0x4bb   : > { %2283 = vadd.xlane.f32.xlu0 %v2282_v46  ;;  %v3270_v38 = vpop.eup %3269 }
 0x4c4   : > { %1916 = vperm.xlu1 %3238, %v3242_v59  }
 0x4c8   : > { %1921 = vperm.xlu1 %3238, %v3244_v18  }
 0x4cc   : > { %1931 = vperm.xlu1 %3238, %v3246_v40  }
 0x4d0   : > { %1941 = vperm.xlu1 %3238, %v3248_v53  }
 0x4d1   : > { %1911 = vperm.xlu0 %3237, %v3250_v19  }
 0x4d4   : > { %1951 = vperm.xlu1 %3238, %v3252_v20  }
 0x4d5   : > { %1926 = vperm.xlu0 %3237, %v3254_v54  }
 0x4d8   : > { %1961 = vperm.xlu1 %3238, %v3256_v27  }
 0x4d9   : > { %1936 = vperm.xlu0 %3237, %v3258_v9  }
 0x4dc   : > { %1971 = vperm.xlu1 %3238, %v3260_v45  }
 0x4dd   : > { %1946 = vperm.xlu0 %3237, %v3262_v37  }
 0x4e0   : > { %1981 = vperm.xlu1 %3238, %v3264_v14  }
 0x4e1   : > { %1956 = vperm.xlu0 %3237, %v3266_v51  }
 0x4e5   : > { %1966 = vperm.xlu0 %3237, %v3268_v0  }
 0x4e9   : > { %1976 = vperm.xlu0 %3237, %v3270_v38   ;;  %v3452_v38 = vmov 0.0|0.0  }
 0x4ea   : > { %3021 = vmatprep.subr.bf16.mxu0 %v3452_v38 }
 0x528   : > { %v2239_v24 = vpop.xlane.xlu0 %2238  ;;  %v2242_v46 = vpop.xlane.xlu1 %2241 }
 0x529   : > { %v2285_v15 = vsub.f32 %v4420_v32, %v2239_v24  ;;  %v2286_v3 = vsub.f32 %v4428_v11, %v2242_v46 }
 0x52b   : > { %v2301_v59 = vmul.f32 1.442695, %v2285_v15  ;;  %v2303_v30 = vmul.f32 1.442695, %v2286_v3 }
 0x52c   : > { %v2245_v4 = vpop.xlane.xlu0 %2244  ;;  %v2251_v18 = vpop.xlane.xlu1 %2250 }
 0x52d   : > { %3271 = vpow2.f32 %v2301_v59  ;;  %v2287_v39 = vsub.f32 %v4417_v21, %v2245_v4  ;;  %v2289_v2 = vsub.f32 %v4436_v56, %v2251_v18 }
 0x52e   : > { %3273 = vpow2.f32 %v2303_v30 }
 0x52f   : > { %v2305_v40 = vmul.f32 1.442695, %v2287_v39  ;;  %v2309_v8 = vmul.f32 1.442695, %v2289_v2 }
 0x530   : > { %v2248_v28 = vpop.xlane.xlu0 %2247  ;;  %v2257_v53 = vpop.xlane.xlu1 %2256 }
 0x531   : > { %3275 = vpow2.f32 %v2305_v40  ;;  %v2288_v34 = vsub.f32 %v4425_v26, %v2248_v28  ;;  %v2291_v32 = vsub.f32 %v4444_v5, %v2257_v53 }
 0x532   : > { %3277 = vpow2.f32 %v2309_v8 }
 0x533   : > { %v2307_v11 = vmul.f32 1.442695, %v2288_v34  ;;  %v2313_v19 = vmul.f32 1.442695, %v2291_v32 }
 0x534   : > { %v2254_v7 = vpop.xlane.xlu0 %2253  ;;  %v2263_v20 = vpop.xlane.xlu1 %2262 }
 0x535   : > { %3279 = vpow2.f32 %v2307_v11  ;;  %v2290_v21 = vsub.f32 %v4433_v49, %v2254_v7  ;;  %v2293_v56 = vsub.f32 %v4452_v35, %v2263_v20 }
 0x536   : > { %3281 = vpow2.f32 %v2313_v19 }
 0x537   : > { %v3272_v16 = vpop.eup %3271  ;;  %v2311_v54 = vmul.f32 1.442695, %v2290_v21  ;;  %v2317_v17 = vmul.f32 1.442695, %v2293_v56  ;;  %v3454_v21 = vmov 0.0  }
 0x538   : > { %v3274_v27 = vpop.eup %3273  ;;  %v2260_v9 = vpop.xlane.xlu0 %2259  ;;  %2335 = vperm.xlu0 %3237, %v3272_v16   ;;  %3010 = vmatprep.mubr.msk.f32.mxu0 %vm3453_vm5, %v3454_v21  ;;  %vm5040_vm5 = vmmov %vm5007_vm0 }
 0x539   : > { %v2269_v26 = vpop.xlane.xlu1 %2268  ;;  %3283 = vpow2.f32 %v2311_v54  ;;  %v2292_v5 = vsub.f32 %v4441_v29, %v2260_v9  ;;  %2340 = vperm.xlu1 %3238, %v3274_v27  }
 0x53a   : > { %v2295_v45 = vsub.f32 %v4460_v60, %v2269_v26  ;;  %3285 = vpow2.f32 %v2317_v17 }
 0x53b   : > { %v3276_v13 = vpop.eup %3275  ;;  %v2315_v37 = vmul.f32 1.442695, %v2292_v5 }
 0x53c   : > { %v2321_v49 = vmul.f32 1.442695, %v2295_v45  ;;  %v2266_v14 = vpop.xlane.xlu0 %2265  ;;  %2345 = vperm.xlu0 %3237, %v3276_v13   ;;  %v3278_v24 = vpop.eup %3277 }
 0x53d   : > { %v2275_v35 = vpop.xlane.xlu1 %2274  ;;  %3287 = vpow2.f32 %v2315_v37  ;;  %v2294_v51 = vsub.f32 %v4449_v58, %v2266_v14  ;;  %v1856_v14 = vld [vmem:[#allocation4] sm:$0xff] }
 0x53e   : > { %v2297_v0 = vsub.f32 %v4468_v41, %v2275_v35  ;;  %3289 = vpow2.f32 %v2321_v49  ;;  %v1857_v35 = vld [vmem:[#allocation4 + $0x8] sm:$0xff] }
 0x53f   : > { %v3280_v29 = vpop.eup %3279  ;;  %v2319_v46 = vmul.f32 1.442695, %v2294_v51  ;;  %v1984_v51 = vmul.f32 %v4638_v43, %v1856_v14 }
 0x540   : > { %v2325_v60 = vmul.f32 1.442695, %v2297_v0  ;;  %v2272_v15 = vpop.xlane.xlu0 %2271  ;;  %2350 = vperm.xlu1 %3238, %v3280_v29   ;;  %2355 = vperm.xlu0 %3237, %v3278_v24   ;;  %v3282_v58 = vpop.eup %3281  ;;  %v4673_v0 = vld [vmem:[%s4841_s8] ss:$0 sm:$0xff] }
 0x541   : > { %v2281_v3 = vpop.xlane.xlu1 %2280  ;;  %3291 = vpow2.f32 %v2319_v46  ;;  %v2296_v59 = vsub.f32 %v4457_v55, %v2272_v15  ;;  %v1858_v15 = vld [vmem:[#allocation4 + $0x10] sm:$0xff] }
 0x542   : > { %v2299_v30 = vsub.f32 %v4476_v61, %v2281_v3  ;;  %3293 = vpow2.f32 %v2325_v60  ;;  %v2007_v60 = vadd.f32 %v4673_v0, %v1984_v51  ;;  %v1859_v3 = vld [vmem:[#allocation4 + $0x18] sm:$0xff] }
 0x543   : > { %v3284_v4 = vpop.eup %3283  ;;  %v2323_v41 = vmul.f32 1.442695, %v2296_v59 }
 0x544   : > { %v2329_v18 = vmul.f32 1.442695, %v2299_v30  ;;  %v2278_v39 = vpop.xlane.xlu0 %2277  ;;  %2360 = vperm.xlu1 %3238, %v3284_v4   ;;  %2365 = vperm.xlu0 %3237, %v3282_v58   ;;  %v3286_v40 = vpop.eup %3285 }
 0x545   : > { %3295 = vpow2.f32 %v2323_v41  ;;  %v2298_v2 = vsub.f32 %v4465_v50, %v2278_v39 }
 0x546   : > { %3297 = vpow2.f32 %v2329_v18 }
 0x547   : > { %v3288_v8 = vpop.eup %3287  ;;  %v2327_v28 = vmul.f32 1.442695, %v2298_v2 }
 0x548   : > { %v2284_v53 = vpop.xlane.xlu0 %2283  ;;  %2370 = vperm.xlu1 %3238, %v3288_v8   ;;  %2375 = vperm.xlu0 %3237, %v3286_v40   ;;  %v3290_v61 = vpop.eup %3289  ;;  %v1860_v40 = vld [vmem:[#allocation4 + $0x20] sm:$0xff]  ;;  %v1861_v8 = vld [vmem:[#allocation4 + $0x28] sm:$0xff] }
 0x549   : > { %3299 = vpow2.f32 %v2327_v28  ;;  %v2300_v55 = vsub.f32 %v4473_v52, %v2284_v53  ;;  %v1917_v52 = vpop.permute.xlu1 %1916 }
 0x54a   : > { %v1986_v39 = vmul.f32 %v1917_v52, %v1858_v15 }
 0x54b   : > { %v3292_v34 = vpop.eup %3291  ;;  %v2331_v32 = vmul.f32 1.442695, %v2300_v55 }
 0x54c   : > { %2380 = vperm.xlu1 %3238, %v3292_v34   ;;  %2385 = vperm.xlu0 %3237, %v3290_v61   ;;  %v3294_v11 = vpop.eup %3293 }
 0x54d   : > { %3301 = vpow2.f32 %v2331_v32  ;;  %v1922_v16 = vpop.permute.xlu1 %1921 }
 0x54e   : > { %v1987_v2 = vmul.f32 %v1922_v16, %v1859_v3 }
 0x54f   : > { %v3296_v19 = vpop.eup %3295 }
 0x550   : > { %2390 = vperm.xlu1 %3238, %v3296_v19   ;;  %2395 = vperm.xlu0 %3237, %v3294_v11   ;;  %v3298_v50 = vpop.eup %3297  ;;  %v1912_v56 = vpop.permute.xlu0 %1911  ;;  %v2010_v11 = vadd.f32 %v4673_v0, %v1987_v2  ;;  %v1862_v19 = vld [vmem:[#allocation4 + $0x30] sm:$0xff] }
 0x551   : > { %v1932_v27 = vpop.permute.xlu1 %1931  ;;  %v1985_v24 = vmul.f32 %v1912_v56, %v1857_v35 }
 0x553   : > { %v3300_v7 = vpop.eup %3299  ;;  %v2008_v59 = vadd.f32 %v4673_v0, %v1985_v24 }
 0x554   : > { %2400 = vperm.xlu1 %3238, %v3300_v7   ;;  %2405 = vperm.xlu0 %3237, %v3298_v50   ;;  %v1927_v54 = vpop.permute.xlu0 %1926  ;;  %v1863_v7 = vld [vmem:[#allocation4 + $0x38] sm:$0xff] }
 0x555   : > { %v1942_v9 = vpop.permute.xlu1 %1941  ;;  %v1988_v32 = vmul.f32 %v1927_v54, %v1860_v40 }
 0x556   : > { %v1991_v24 = vmul.f32 %v1942_v9, %v1863_v7 }
 0x557   : > { %v3302_v20 = vpop.eup %3301  ;;  %v2011_v14 = vadd.f32 %v4673_v0, %v1988_v32 }
 0x558   : > { %2410 = vperm.xlu1 %3238, %v3302_v20   ;;  %v1937_v17 = vpop.permute.xlu0 %1936  ;;  %v2014_v2 = vadd.f32 %v4673_v0, %v1991_v24 }
 0x559   : > { %v4659_v5 = vpop.permute.xlu1 %1951  ;;  %v1990_v35 = vmul.f32 %v1937_v17, %v1862_v19 }
 0x55c   : > { %v4657_v26 = vpop.permute.xlu0 %1946 }
 0x55d   : > { %v4663_v13 = vpop.permute.xlu1 %1961 }
 0x560   : > { %v4661_v45 = vpop.permute.xlu0 %1956 }
 0x561   : > { %v4667_v49 = vpop.permute.xlu1 %1971 }
 0x564   : > { %v4665_v37 = vpop.permute.xlu0 %1966 }
 0x565   : > { %v4677_v46 = vpop.permute.xlu1 %1981 }
 0x568   : > { %v4675_v29 = vpop.permute.xlu0 %1976 }
 0x5b7   : > { %v2336_v30 = vpop.permute.xlu0 %2335 }
 0x5b8   : > { %v2413_v58 = vmul.f32 %v2336_v30, %v4484_v63  ;;  %v2467_v43 = vmul.f32 %v2336_v30, %v2007_v60  ;;  %v2341_v4 = vpop.permute.xlu1 %2340  ;;  %v2009_v63 = vadd.f32 %v4673_v0, %v1986_v39  ;;  %v1864_v60 = vld [vmem:[#allocation4 + $0x40] sm:$0xff] }
 0x5b9   : > { %v2414_v41 = vmul.f32 %v2341_v4, %v4490_v44  ;;  %v2468_v18 = vmul.f32 %v2341_v4, %v2008_v59  ;;  %v1989_v44 = vmul.f32 %v1932_v27, %v1861_v8  ;;  %v1865_v59 = vld [vmem:[#allocation4 + $0x48] sm:$0xff]  ;;  %v1992_v9 = vmul.f32 %v4657_v26, %v1864_v60  ;;  %v1866_v8 = vld [vmem:[#allocation4 + $0x50] sm:$0xff] }
 0x5ba   : > { %v2429_v55 = vsel %vm5026_vm4, %v2413_v58, 0.0  ;;  %v1993_v40 = vmul.f32 %v4659_v5, %v1865_v59  ;;  %v1994_v5 = vmul.f32 %v4661_v45, %v1866_v8  ;;  %v1871_v59 = vld [vmem:[#allocation4 + $0x78] sm:$0xff]  ;;  %vm2555_vm4 = vcmask 1040384  }
 0x5bb   : > { %v2346_v28 = vpop.permute.xlu0 %2345  ;;  %v3022_v53 = vpack.c.bf16 %v2468_v18, %v2467_v43  ;;  %v2430_v61 = vsel %vm5027_vm6, %v2414_v41, 0.0  ;;  %v2012_v27 = vadd.f32 %v4673_v0, %v1989_v44  ;;  %v2013_v18 = vadd.f32 %v4673_v0, %v1990_v35 }
 0x5bc   : > { %v2415_v34 = vmul.f32 %v2346_v28, %v4481_v1  ;;  %v2431_v20 = vadd.f32 %v2430_v61, %v2429_v55  ;;  %v2469_v56 = vmul.f32 %v2346_v28, %v2009_v63  ;;  %v2015_v44 = vadd.f32 %v4673_v0, %v1992_v9 }
 0x5bd   : > { %3023 = vmatpush3.bf16.msra.mxu0 %v3022_v53  ;;  %vm2557_vm6 = vcmask 9216  }
 0x5be   : > { %v2432_v50 = vsel %vm5028_vm7, %v2415_v34, 0.0  ;;  %3024 = vmatprep.subr.bf16.mxu0 %v3452_v38  ;;  %vm2553_vm7 = vcmask 254976  }
 0x5bf   : > { %v2356_v21 = vpop.permute.xlu0 %2355  ;;  %v2351_v52 = vpop.permute.xlu1 %2350  ;;  %v2433_v51 = vadd.f32 %v2432_v50, %v2431_v20  ;;  %v2016_v50 = vadd.f32 %v4673_v0, %v1993_v40  ;;  %v1869_v20 = vld [vmem:[#allocation4 + $0x68] sm:$0xff] }
 0x5c0   : > { %v2417_v16 = vmul.f32 %v2356_v21, %v4496_v10  ;;  %v2416_v1 = vmul.f32 %v2351_v52, %v4487_v31  ;;  %v2470_v54 = vmul.f32 %v2351_v52, %v2010_v11  ;;  %v2471_v30 = vmul.f32 %v2356_v21, %v2011_v14  ;;  %v1868_v21 = vld [vmem:[#allocation4 + $0x60] sm:$0xff] }
 0x5c2   : > { %v2434_v15 = vsel %vm5029_vm8, %v2416_v1, 0.0  ;;  %v3025_v3 = vpack.c.bf16 %v2470_v54, %v2469_v56  ;;  %v2436_v10 = vsel %vm5030_vm10, %v2417_v16, 0.0 }
 0x5c3   : > { %v2435_v58 = vadd.f32 %v2434_v15, %v2433_v51  ;;  %v2366_v43 = vpop.permute.xlu0 %2365  ;;  %v2361_v4 = vpop.permute.xlu1 %2360  ;;  %v1997_v51 = vmul.f32 %v4667_v49, %v1869_v20 }
 0x5c4   : > { %v2419_v31 = vmul.f32 %v2366_v43, %v4502_v47  ;;  %v2418_v41 = vmul.f32 %v2361_v4, %v4493_v57  ;;  %v2472_v17 = vmul.f32 %v2361_v4, %v2012_v27  ;;  %3026 = vmatpush3.bf16.msra.mxu0 %v3025_v3  ;;  %v1867_v47 = vld [vmem:[#allocation4 + $0x58] sm:$0xff]  ;;  %v2473_v55 = vmul.f32 %v2366_v43, %v2013_v18 }
 0x5c5   : > { %v2437_v39 = vadd.f32 %v2436_v10, %v2435_v58  ;;  %3027 = vmatprep.subr.bf16.mxu0 %v3452_v38  ;;  %v1995_v7 = vmul.f32 %v4663_v13, %v1867_v47  ;;  %v2017_v13 = vadd.f32 %v4673_v0, %v1994_v5  ;;  %v1996_v27 = vmul.f32 %v4665_v37, %v1868_v21 }
 0x5c6   : > { %v2438_v28 = vsel %vm5031_vm11, %v2418_v41, 0.0  ;;  %v3028_v53 = vpack.c.bf16 %v2472_v17, %v2471_v30  ;;  %v2440_v32 = vsel %vm5032_vm12, %v2419_v31, 0.0  ;;  %v2020_v31 = vadd.f32 %v4673_v0, %v1997_v51 }
 0x5c7   : > { %v2439_v57 = vadd.f32 %v2438_v28, %v2437_v39  ;;  %v2376_v61 = vpop.permute.xlu0 %2375  ;;  %v2371_v34 = vpop.permute.xlu1 %2370  ;;  %v2018_v60 = vadd.f32 %v4673_v0, %v1995_v7  ;;  %v2019_v41 = vadd.f32 %v4673_v0, %v1996_v27  ;;  %v1999_v18 = vmul.f32 %v4677_v46, %v1871_v59 }
 0x5c8   : > { %v2421_v26 = vmul.f32 %v2376_v61, %v4508_v12  ;;  %v2420_v63 = vmul.f32 %v2371_v34, %v4499_v62  ;;  %v2474_v11 = vmul.f32 %v2371_v34, %v2014_v2  ;;  %3029 = vmatpush3.bf16.msra.mxu0 %v3028_v53  ;;  %v2475_v56 = vmul.f32 %v2376_v61, %v2015_v44 }
 0x5c9   : > { %v2441_v19 = vadd.f32 %v2440_v32, %v2439_v57  ;;  %3030 = vmatprep.subr.bf16.mxu0 %v3452_v38  ;;  %v2022_v34 = vadd.f32 %v4673_v0, %v1999_v18 }
 0x5ca   : > { %v2442_v52 = vsel %vm5033_vm13, %v2420_v63, 0.0  ;;  %v3031_v12 = vpack.c.bf16 %v2474_v11, %v2473_v55  ;;  %v2444_v54 = vsel %vm5034_vm14, %v2421_v26, 0.0 }
 0x5cb   : > { %v2443_v62 = vadd.f32 %v2442_v52, %v2441_v19  ;;  %v2386_v16 = vpop.permute.xlu0 %2385  ;;  %v2381_v1 = vpop.permute.xlu1 %2380 }
 0x5cc   : > { %v2423_v45 = vmul.f32 %v2386_v16, %v4516_v36  ;;  %v2422_v14 = vmul.f32 %v2381_v1, %v4505_v33  ;;  %v2476_v35 = vmul.f32 %v2381_v1, %v2016_v50  ;;  %3032 = vmatpush3.bf16.msra.mxu0 %v3031_v12  ;;  %v1870_v36 = vld [vmem:[#allocation4 + $0x70] sm:$0xff]  ;;  %v2477_v30 = vmul.f32 %v2386_v16, %v2017_v13 }
 0x5cd   : > { %v2445_v24 = vadd.f32 %v2444_v54, %v2443_v62  ;;  %3033 = vmatprep.subr.bf16.mxu0 %v3452_v38  ;;  %v1998_v9 = vmul.f32 %v4675_v29, %v1870_v36 }
 0x5ce   : > { %v2446_v15 = vsel %vm5035_vm15, %v2422_v14, 0.0  ;;  %v3034_v3 = vpack.c.bf16 %v2476_v35, %v2475_v56  ;;  %v2448_v49 = vsel %vm5036_vm9, %v2423_v45, 0.0 }
 0x5cf   : > { %v2447_v33 = vadd.f32 %v2446_v15, %v2445_v24  ;;  %v2396_v58 = vpop.permute.xlu0 %2395  ;;  %v2391_v43 = vpop.permute.xlu1 %2390  ;;  %v2021_v29 = vadd.f32 %v4673_v0, %v1998_v9  ;;  %v2466_v0 = vld [vmem:[%s3670_s21] sm:$0x3] }
 0x5d0   : > { %v2425_v4 = vmul.f32 %v2396_v58, %v4522_v6  ;;  %v2424_v37 = vmul.f32 %v2391_v43, %v4511_v22  ;;  %v2478_v10 = vmul.f32 %v2391_v43, %v2018_v60  ;;  %3035 = vmatpush3.bf16.msra.mxu0 %v3034_v3  ;;  %v2479_v40 = vmul.f32 %v2396_v58, %v2019_v41 }
 0x5d1   : > { %v2449_v17 = vadd.f32 %v2448_v49, %v2447_v33  ;;  %3036 = vmatprep.subr.bf16.mxu0 %v3452_v38 }
 0x5d2   : > { %v2450_v39 = vsel %vm5007_vm0, %v2424_v37, 0.0  ;;  %v3037_v2 = vpack.c.bf16 %v2478_v10, %v2477_v30  ;;  %v2452_v28 = vsel %vm5037_vm2, %v2425_v4, 0.0 }
 0x5d3   : > { %v2451_v6 = vadd.f32 %v2450_v39, %v2449_v17  ;;  %v2406_v8 = vpop.permute.xlu0 %2405  ;;  %v2401_v22 = vpop.permute.xlu1 %2400 }
 0x5d4   : > { %v2427_v53 = vmul.f32 %v2406_v8, %v4532_v48  ;;  %v2426_v47 = vmul.f32 %v2401_v22, %v4519_v23  ;;  %v2480_v55 = vmul.f32 %v2401_v22, %v2020_v31  ;;  %3038 = vmatpush3.bf16.msra.mxu0 %v3037_v2  ;;  %v2481_v48 = vmul.f32 %v2406_v8, %v2021_v29 }
 0x5d5   : > { %v2453_v57 = vadd.f32 %v2452_v28, %v2451_v6  ;;  %3039 = vmatprep.subr.bf16.mxu0 %v3452_v38 }
 0x5d6   : > { %v2454_v46 = vsel %vm5038_vm1, %v2426_v47, 0.0  ;;  %v3040_v61 = vpack.c.bf16 %v2480_v55, %v2479_v40  ;;  %v2456_v63 = vsel %vm5039_vm3, %v2427_v53, 0.0 }
 0x5d7   : > { %v2455_v32 = vadd.f32 %v2454_v46, %v2453_v57  ;;  %v2411_v26 = vpop.permute.xlu1 %2410 }
 0x5d8   : > { %v2428_v23 = vmul.f32 %v2411_v26, %v4529_v25  ;;  %v2482_v11 = vmul.f32 %v2411_v26, %v2022_v34  ;;  %3041 = vmatpush3.bf16.msra.mxu0 %v3040_v61 }
 0x5d9   : > { %v2457_v44 = vadd.f32 %v2456_v63, %v2455_v32  ;;  %3042 = vmatprep.subr.bf16.mxu0 %v3452_v38 }
 0x5da   : > { %v2458_v5 = vsel %vm5040_vm5, %v2428_v23, 0.0  ;;  %v3043_v19 = vpack.c.bf16 %v2482_v11, %v2481_v48 }
 0x5db   : > { %v2459_v50 = vadd.f32 %v2458_v5, %v2457_v44 }
 0x5dc   : > { %3044 = vmatpush3.bf16.msra.mxu0 %v3043_v19 }
 0x5dd   : > { %v2460_v7 = vrot.slane %v2459_v50, 4 }
 0x5df   : > { %v2461_v20 = vadd.f32 %v2460_v7, %v2459_v50  ;;  %3011 = vmatmul.mubr.f32.vlgmr.msra.gmra.mrb[0].mxu0 %v2466_v0 }
 0x5e1   : > { %v2462_v21 = vrot.slane %v2461_v20, 2 }
 0x5e3   : > { %v2463_v52 = vadd.f32 %v2462_v21, %v2461_v20 }
 0x5e5   : > { %v2464_v12 = vrot.slane %v2463_v52, 1 }
 0x5e7   : > { %v2465_v25 = vadd.f32 %v2464_v12, %v2463_v52 }
 0x5e9   : > { %v2556_v56 = vsel %vm2555_vm4, %v4588_v42, %v2465_v25 }
 0x5ea   : > { %2558 = vst.msk [vmem:[%s3676_s9] sm:$0x3] %vm2557_vm6, %v2556_v56 }
 0x6b2   : > { %v2549_v38 = vpop.f32.mrb[0].mxu0 }
 0x6b3   : > { %2554 = vst.msk [vmem:[%s3674_s23] sm:$0x3] %vm2553_vm7, %v2549_v38  ;;  %v3012_v62 = vpop.f32.mrb[1].mxu0 }
 0x6b4 PF: > { %s2817_s21 = sshll.u32 %s3433_s19, 5  ;;  %s5042_s20 = sld [smem:[#allocation49_spill]] }
 0x6b5   : > { %s2578_s22 = sshll.u32 %s3674_s23, 4  ;;  %s2560_s11 = scalar_lea.sflag [#allocation8], %s3633_s13  ;;  %s2579_s22 = int_to_ptr.vmem [resolvable:$true] %s2578_s22 }
 0x6b6   : > { %s3303_s26 = scalar_lea.vmem %s2579_s22, 32  ;;  %s3455_s29 = smov [#allocation7]  }
 0x6b7   : > { %p3304_p10 = scmp.ne.s32.totalorder %s2579_s22, %s3303_s26  ;;  %s3307_s28 = sshll.u32 %s3455_s29, 4  ;;  %s3308_s28 = int_to_ptr.vmem [resolvable:$false] %s3307_s28 }
 0x6b8   : > { %s3309_s12 = scalar_lea.vmem %s3308_s28, 64  ;;  %p3310_p0 = scmp.lt.s32.totalorder %s2579_s22, %s3308_s28 }
 0x6b9   : > { %p3305_p11 = pnand %p3304_p10, %p3584_p7  ;;  %p3311_p1 = scmp.lt.s32.totalorder %s3309_s12, %s3303_s26 }
 0x6ba   : > { %s5043_s0 = smov %s5042_s20  ;;  %s4752_s15 = scalar_lea.hbm %s5042_s20, %s2817_s21 }
 0x6bb   : > { %p3306_p13 = pneg %p3305_p11  ;;  %p3312_p2 = por %p3311_p1, %p3310_p0 }
 0x6bd   : > { %p3313_p3 = pnand %p3312_p2, %p3306_p13 }
 0x6bf   : > { %3316 = shalt.err (!%p3313_p3)
}
 0x6c0   : > { %s3317_s23 = scalar_lea.hbm %s4752_s15, 32  ;;  %s3321_s30 = scalar_lea.hbm %s5043_s0, 64 }
 0x6c1   : > { %p3318_p4 = scmp.ne.s32.totalorder %s4752_s15, %s3317_s23  ;;  %p3322_p8 = scmp.lt.u32.totalorder %s4752_s15, %s5043_s0 }
 0x6c2   : > { %p3323_p9 = scmp.lt.u32.totalorder %s3321_s30, %s3317_s23  ;;  %p3325_p11 = scmp.lt.u32.totalorder %s3317_s23, %s4752_s15 }
 0x6c3   : > { %p3319_p5 = pnand %p3318_p4, %p3584_p7 }
 0x6c4   : > { %p3324_p10 = por %p3323_p9, %p3322_p8 }
 0x6c5   : > { %p3320_p6 = pneg %p3319_p5 }
 0x6c6   : > { %p3326_p13 = por %p3325_p11, %p3324_p10 }
 0x6c8   : > { %p3327_p0 = pnand %p3326_p13, %p3320_p6 }
 0x6ca   : > { %3330 = shalt.err (!%p3327_p0)
}
 0x6cb   : > { %3061 = dma.vmem_to_hbm [thread:$0]  (%p3584_p7), %s2579_s22, 32, %s4752_s15, %s2560_s11  }
 0x6cc   : > { %s5044_s25 = sld [smem:[#allocation50_spill]]  ;;  %s2591_s20 = sshll.u32 %s3676_s9, 4  ;;  %s2592_s20 = int_to_ptr.vmem [resolvable:$true] %s2591_s20 }
 0x6cd   : > { %s2565_s26 = scalar_lea.sflag [#allocation10], %s3633_s13  ;;  %s3331_s29 = scalar_lea.vmem %s2592_s20, 32 }
 0x6ce   : > { %p3332_p1 = scmp.ne.s32.totalorder %s2592_s20, %s3331_s29  ;;  %s3456_s28 = smov [#allocation9]  }
 0x6cf   : > { %s3335_s12 = sshll.u32 %s3456_s28, 4  ;;  %s3336_s12 = int_to_ptr.vmem [resolvable:$false] %s3335_s12 }
 0x6d0   : > { %p3333_p2 = pnand %p3332_p1, %p3584_p7  ;;  %s3337_s23 = scalar_lea.vmem %s3336_s12, 64 }
 0x6d1   : > { %p3338_p4 = scmp.lt.s32.totalorder %s2592_s20, %s3336_s12  ;;  %p3339_p5 = scmp.lt.s32.totalorder %s3337_s23, %s3331_s29 }
 0x6d2   : > { %s4778_s10 = scalar_lea.hbm %s5044_s25, %s2817_s21  ;;  %p3334_p3 = pneg %p3333_p2 }
 0x6d3   : > { %p3340_p6 = por %p3339_p5, %p3338_p4 }
 0x6d5   : > { %p3341_p8 = pnand %p3340_p6, %p3334_p3 }
 0x6d7   : > { %3344 = shalt.err (!%p3341_p8)
}
 0x6d8   : > { %s3345_s19 = scalar_lea.hbm %s4778_s10, 32  ;;  %s3349_s21 = scalar_lea.hbm %s5044_s25, 64 }
 0x6d9   : > { %p3346_p9 = scmp.ne.s32.totalorder %s4778_s10, %s3345_s19  ;;  %p3350_p13 = scmp.lt.u32.totalorder %s4778_s10, %s5044_s25 }
 0x6da   : > { %p3351_p0 = scmp.lt.u32.totalorder %s3349_s21, %s3345_s19  ;;  %p3353_p2 = scmp.lt.u32.totalorder %s3345_s19, %s4778_s10 }
 0x6db   : > { %p3347_p10 = pnand %p3346_p9, %p3584_p7 }
 0x6dc   : > { %p3352_p1 = por %p3351_p0, %p3350_p13 }
 0x6dd   : > { %p3348_p11 = pneg %p3347_p10 }
 0x6de   : > { %p3354_p3 = por %p3353_p2, %p3352_p1 }
 0x6e0   : > { %p3355_p4 = pnand %p3354_p3, %p3348_p11 }
 0x6e2   : > { %3358 = shalt.err (!%p3355_p4)
}
 0x6e3   : > { %3062 = dma.vmem_to_hbm [thread:$0]  (%p3584_p7), %s2592_s20, 32, %s4778_s10, %s2565_s26  }
 0x6e4 PF: > { %s5045_s11 = sld [smem:[#allocation19_spill]]  ;;  %s5046_s27 = sld [smem:[#allocation13_spill]] }
 0x6ea   : > { %p3072_p5 = scmp.ge.s32.totalorder %s5045_s11, 2  ;;  %s2603_s30 = sand.u32 1, %s5046_s27  }
 0x6eb   : > { %s2604_s16 = scalar_lea.sflag [#allocation8], %s2603_s30 }
 0x6ec   : > { %p3066_p6 = pnand %p3072_p5, %p3592_p12 }
 0x6ee   : > { %3400 = dma.done.wait (!%p3066_p6), %s2604_s16, 32  }
 0x6ef   : > { %3402 = vsyncadd (!%p3066_p6), %s2604_s16, 4294967264  ;;  %s2613_s1 = scalar_lea.sflag [#allocation10], %s2603_s30 }
 0x6f0   : > { %3404 = dma.done.wait (!%p3066_p6), %s2613_s1, 32  }
 0x6f1   : > { %3406 = vsyncadd (!%p3066_p6), %s2613_s1, 4294967264  ;;  %s27_s22 = sadd.s32 1, %s5045_s11   ;;  %s5048_s13 = sld [smem:[#allocation14_spill]] }
 0x6f2   : > { %p24_p8 = scmp.ge.s32.totalorder %s27_s22, 6   ;;  %s5049_s14 = sld [smem:[#allocation15_spill]] }
 0x6f3   : > { %s5050_s15 = sld [smem:[#allocation24_spill]]  ;;  %s5051_s16 = sld [smem:[#allocation16_spill]] }
 0x6f4   : > { %s5052_s17 = sld [smem:[#allocation25_spill]]  ;;  %s5053_s18 = sld [smem:[#allocation17_spill]] }
 0x6f5   : > { %s5054_s19 = sld [smem:[#allocation18_spill]]  ;;  %s5055_s20 = sld [smem:[#allocation20_spill]] }
 0x6f6   : > { %s5056_s21 = sld [smem:[#allocation21_spill]]  ;;  %26 = sbr.rel (!%p24_p8) target bundleno = 13 (0xd), region = 180 }
 0x6fd   :  { %2618 = vsyncpa [#allocation8], 1 }
 0x6fe   :  { %2620 = vsyncpa [#allocation8 + $0x1], 1 }
 0x6ff   :  { %2621 = vsyncpa [#allocation10], 1 }
 0x700   :  { %2623 = vsyncpa [#allocation10 + $0x1], 1 }

</bundles_post_ra>
